<compile_context>
chip_gen: v7x
topology: tpu7x:2x2x1
jax: 0.10.0
libtpu: 0.0.40
codegen_flags: <defaults>
</compile_context>

<pallas_src>
import math

import jax
import jax.numpy as jnp
from jax.experimental import pallas as pl
from jax.experimental.pallas import tpu as pltpu

HIDDEN_DIM = 1000  # hardcoded in the PyTorch module (logical size)


def _round_up(x, m=128):
    return ((x + m - 1) // m) * m


def pairrec_kernel(x_ref, thresh_ref, noise_ref,
                   w1_ref, b1_ref, w2_ref, b2_ref,
                   w3_ref, b3_ref, w4_ref, b4_ref,
                   prob_ref, mu_ref):
    """Encode + binarize + noisy decode for one document block (doc or neighbor)."""
    x = x_ref[...].astype(jnp.bfloat16)                               # (B, V)

    # ---- encoder: Linear + ReLU, Linear + ReLU (Dropout p=0 -> identity) ----
    h = jnp.dot(x, w1_ref[...], preferred_element_type=jnp.float32) + b1_ref[...]
    h = jnp.maximum(h, 0.0).astype(jnp.bfloat16)                      # (B, Hp)
    h = jnp.dot(h, w2_ref[...], preferred_element_type=jnp.float32) + b2_ref[...]
    h = jnp.maximum(h, 0.0).astype(jnp.bfloat16)

    # ---- h_to_mu: Linear + Sigmoid ----
    # Padded latent lanes see zero weights/bias -> sigmoid(0)=0.5; sliced off
    # outside. Padded rows of w4 are zero so they never affect the logits.
    mu = jax.nn.sigmoid(
        jnp.dot(h, w3_ref[...], preferred_element_type=jnp.float32) + b3_ref[...]
    )                                                                 # (B, Lp)
    mu_ref[...] = mu

    # ---- binarization: 1[mu > thresh]  (compare+select, cheaper than sign) ----
    z = jnp.where(mu > thresh_ref[...], 1.0, 0.0)                     # (B, Lp)

    # ---- make_noisy_hashcode + decoder (Linear + LogSoftmax over vocab) ----
    noisy = (z + noise_ref[...]).astype(jnp.bfloat16)
    logits = jnp.dot(noisy, w4_ref[...],
                     preferred_element_type=jnp.float32) + b4_ref[...]  # (B, V)
    m = jnp.max(logits, axis=-1, keepdims=True)
    lse = jnp.log(jnp.sum(jnp.exp(logits - m), axis=-1, keepdims=True)) + m
    prob_ref[...] = logits - lse


def _nbytes(a):
    return int(a.size) * a.dtype.itemsize


def pairrec_fused(doc_stacked, thresh, noise, padded_params, batch_per_doc):
    """Single pallas_call over grid=(n_docs,) (doc, neighbor).

    Weight BlockSpecs use constant index_maps so they are fetched once and stay
    resident in VMEM across grid steps; the doc axis is "parallel" so v7x can
    shard the two documents across its two TensorCores (free on v5e/v6e).
    """
    (w1, b1, w2, b2, w3, b3, w4, b4) = padded_params
    b = batch_per_doc
    n_docs = doc_stacked.shape[0] // b
    vocab = doc_stacked.shape[1]
    hidden_p = w1.shape[1]
    latent_p = w3.shape[1]

    def const_spec(arr):
        return pl.BlockSpec(arr.shape, lambda d: (0, 0))

    def row_spec(cols):
        return pl.BlockSpec((b, cols), lambda d: (d, 0))

    in_specs = [
        row_spec(vocab),        # document block
        row_spec(latent_p),     # binarization threshold block
        row_spec(latent_p),     # decoder noise block
        const_spec(w1), const_spec(b1),
        const_spec(w2), const_spec(b2),
        const_spec(w3), const_spec(b3),
        const_spec(w4), const_spec(b4),
    ]
    out_specs = (row_spec(vocab), row_spec(latent_p))
    out_shape = (
        jax.ShapeDtypeStruct((n_docs * b, vocab), jnp.float32),    # log p(w)
        jax.ShapeDtypeStruct((n_docs * b, latent_p), jnp.float32),  # mu (padded)
    )

    inputs = (doc_stacked, thresh, noise, w1, b1, w2, b2, w3, b3, w4, b4)

    # VMEM budget: 2x the per-step working set (double-buffering) + headroom,
    # capped well under v7x's 64 MiB per-TensorCore VMEM.
    block_bytes = sum(_nbytes(a) for a in (w1, b1, w2, b2, w3, b3, w4, b4))
    block_bytes += (b * vocab + 2 * b * latent_p) * 4              # x, thresh, noise
    block_bytes += (b * vocab + b * latent_p) * 4                  # outputs
    vmem_limit = int(min(2 * block_bytes + (8 << 20), 48 << 20))

    flops = 2 * n_docs * b * (vocab * hidden_p + hidden_p * hidden_p
                              + hidden_p * latent_p + latent_p * vocab)
    out_bytes = sum(math.prod(s.shape) * s.dtype.itemsize for s in out_shape)
    cost = pl.CostEstimate(
        flops=flops,
        transcendentals=n_docs * b * (latent_p + vocab),
        bytes_accessed=sum(_nbytes(a) for a in inputs) + out_bytes,
    )

    return pl.pallas_call(
        pairrec_kernel,
        out_shape=out_shape,
        grid=(n_docs,),
        in_specs=in_specs,
        out_specs=out_specs,
        compiler_params=pltpu.CompilerParams(
            dimension_semantics=("parallel",),
            vmem_limit_bytes=vmem_limit),
        cost_estimate=cost,
    )(*inputs)


def init_params(key, vocab_size, latent_dim, hidden_dim=HIDDEN_DIM):
    """PyTorch-style Linear init; weights stored as (in, out). Logical shapes."""
    ks = jax.random.split(key, 8)

    def lin(kw, kb, fan_in, fan_out):
        bound = 1.0 / jnp.sqrt(fan_in)
        w = jax.random.uniform(kw, (fan_in, fan_out), jnp.float32, -bound, bound)
        b = jax.random.uniform(kb, (1, fan_out), jnp.float32, -bound, bound)
        return w, b

    w1, b1 = lin(ks[0], ks[1], vocab_size, hidden_dim)   # encoder layer 1
    w2, b2 = lin(ks[2], ks[3], hidden_dim, hidden_dim)   # encoder layer 2
    w3, b3 = lin(ks[4], ks[5], hidden_dim, latent_dim)   # h_to_mu
    w4, b4 = lin(ks[6], ks[7], latent_dim, vocab_size)   # decoder
    return (w1, b1, w2, b2, w3, b3, w4, b4)


def prepare_params(params):
    """Zero-pad hidden -> mult-of-128 and latent -> mult-of-128 (exact), and
    cast weight matrices to bf16 (biases stay f32 for the f32 epilogue)."""
    (w1, b1, w2, b2, w3, b3, w4, b4) = params
    hidden = w1.shape[1]
    latent = w3.shape[1]
    dh = _round_up(hidden) - hidden
    dl = _round_up(latent) - latent

    w1p = jnp.pad(w1, ((0, 0), (0, dh))).astype(jnp.bfloat16)
    b1p = jnp.pad(b1, ((0, 0), (0, dh)))
    w2p = jnp.pad(w2, ((0, dh), (0, dh))).astype(jnp.bfloat16)
    b2p = jnp.pad(b2, ((0, 0), (0, dh)))
    w3p = jnp.pad(w3, ((0, dh), (0, dl))).astype(jnp.bfloat16)
    b3p = jnp.pad(b3, ((0, 0), (0, dl)))
    w4p = jnp.pad(w4, ((0, dl), (0, 0))).astype(jnp.bfloat16)
    b4p = b4
    return (w1p, b1p, w2p, b2p, w3p, b3p, w4p, b4p)


def pairrec_forward(doc_mat, doc_mat_neighbor, params, key, is_stochastic=False):
    """Mirrors PairRec.forward: returns (prob_w, mu, prob_w_neighbor, mu_neighbor)."""
    batch = doc_mat.shape[0]
    latent = params[4].shape[1]            # w3: (hidden, latent)
    padded = prepare_params(params)
    latent_p = padded[4].shape[1]

    # Fuse the two branches: stack doc and neighbor along batch so every weight
    # streams from HBM exactly once.
    doc_stacked = jnp.concatenate([doc_mat, doc_mat_neighbor], axis=0)

    k_t, k_n = jax.random.split(key, 2)
    if is_stochastic:
        thresh = jax.random.uniform(k_t, (2 * batch, latent_p), dtype=jnp.float32)
    else:
        thresh = jnp.full((2 * batch, latent_p), 0.5, dtype=jnp.float32)
    noise = jax.random.normal(k_n, (2 * batch, latent_p), dtype=jnp.float32)

    prob_all, mu_all = pairrec_fused(doc_stacked, thresh, noise, padded, batch)

    mu_all = mu_all[:, :latent]            # drop zero-padded latent lanes
    prob_w, prob_w_n = prob_all[:batch], prob_all[batch:]
    mu, mu_n = mu_all[:batch], mu_all[batch:]
    return prob_w, mu, prob_w_n, mu_n


if __name__ == "__main__":
    vocab_size = 256
    latent_dim = 32
    batch_size = 8

    key = jax.random.PRNGKey(0)
    k_params, k_doc, k_doc_n, k_rand = jax.random.split(key, 4)

    params = init_params(k_params, vocab_size, latent_dim)

    # Bag-of-words style document matrices (non-negative counts).
    doc_mat = jax.random.poisson(
        k_doc, 0.3, (batch_size, vocab_size)).astype(jnp.float32)
    doc_mat_neighbor = jax.random.poisson(
        k_doc_n, 0.3, (batch_size, vocab_size)).astype(jnp.float32)

    prob_w, mu, prob_w_n, mu_n = pairrec_forward(
        doc_mat, doc_mat_neighbor, params, k_rand, is_stochastic=False)

    jax.block_until_ready((prob_w, mu, prob_w_n, mu_n))

    # sanity: shapes / ranges
    assert prob_w.shape == (batch_size, vocab_size)
    assert mu.shape == (batch_size, latent_dim)
    assert prob_w_n.shape == (batch_size, vocab_size)
    assert mu_n.shape == (batch_size, latent_dim)
    assert bool(jnp.all(prob_w <= 0.0))                  # log-probabilities
    assert bool(jnp.all((mu >= 0.0) & (mu <= 1.0)))      # sigmoid outputs

    print("KERNEL_OK")
</pallas_src>

<mosaic_0001>
module attributes {stable_mosaic.version = 11 : i64} {
  func.func @pairrec_kernel(%arg0: i32, %arg1: memref<8x256xf32, #tpu.memory_space<vmem>>, %arg2: memref<8x128xf32, #tpu.memory_space<vmem>>, %arg3: memref<8x128xf32, #tpu.memory_space<vmem>>, %arg4: memref<256x1024xbf16, #tpu.memory_space<vmem>>, %arg5: memref<1x1024xf32, #tpu.memory_space<vmem>>, %arg6: memref<1024x1024xbf16, #tpu.memory_space<vmem>>, %arg7: memref<1x1024xf32, #tpu.memory_space<vmem>>, %arg8: memref<1024x128xbf16, #tpu.memory_space<vmem>>, %arg9: memref<1x128xf32, #tpu.memory_space<vmem>>, %arg10: memref<128x256xbf16, #tpu.memory_space<vmem>>, %arg11: memref<1x256xf32, #tpu.memory_space<vmem>>, %arg12: memref<8x256xf32, #tpu.memory_space<vmem>>, %arg13: memref<8x128xf32, #tpu.memory_space<vmem>>) attributes {dimension_semantics = [#tpu.dimension_semantics<parallel>], iteration_bounds = array<i64: 2>, scalar_prefetch = 0 : i64, scratch_operands = 0 : i64, tpu.core_type = #tpu.core_type<tc>, window_params = [{transform_indices = @transform_0, window_bounds = array<i64: 8, 256>}, {transform_indices = @transform_1, window_bounds = array<i64: 8, 128>}, {transform_indices = @transform_2, window_bounds = array<i64: 8, 128>}, {pipeline_mode = #tpu.pipeline_mode<synchronous>, transform_indices = @transform_3, window_bounds = array<i64: 256, 1024>}, {pipeline_mode = #tpu.pipeline_mode<synchronous>, transform_indices = @transform_4, window_bounds = array<i64: 1, 1024>}, {pipeline_mode = #tpu.pipeline_mode<synchronous>, transform_indices = @transform_5, window_bounds = array<i64: 1024, 1024>}, {pipeline_mode = #tpu.pipeline_mode<synchronous>, transform_indices = @transform_6, window_bounds = array<i64: 1, 1024>}, {pipeline_mode = #tpu.pipeline_mode<synchronous>, transform_indices = @transform_7, window_bounds = array<i64: 1024, 128>}, {pipeline_mode = #tpu.pipeline_mode<synchronous>, transform_indices = @transform_8, window_bounds = array<i64: 1, 128>}, {pipeline_mode = #tpu.pipeline_mode<synchronous>, transform_indices = @transform_9, window_bounds = array<i64: 128, 256>}, {pipeline_mode = #tpu.pipeline_mode<synchronous>, transform_indices = @transform_10, window_bounds = array<i64: 1, 256>}, {transform_indices = @transform_11, window_bounds = array<i64: 8, 256>}, {transform_indices = @transform_12, window_bounds = array<i64: 8, 128>}]} {
    %c0 = arith.constant 0 : index
    %c0_0 = arith.constant 0 : index
    %0 = vector.load %arg1[%c0, %c0_0] : memref<8x256xf32, #tpu.memory_space<vmem>>, vector<8x256xf32>
    %1 = arith.truncf %0 : vector<8x256xf32> to vector<8x256xbf16>
    %c0_1 = arith.constant 0 : index
    %c0_2 = arith.constant 0 : index
    %2 = vector.load %arg4[%c0_1, %c0_2] : memref<256x1024xbf16, #tpu.memory_space<vmem>>, vector<256x1024xbf16>
    %cst = arith.constant dense<0.000000e+00> : vector<8x1024xf32>
    %3 = tpu.matmul %1, %2, %cst {dimension_numbers = #tpu.dot_dimension_numbers<[1], [0], [0], [1], [0, 0, 1, 1], [], []>} : vector<8x256xbf16>, vector<256x1024xbf16>, vector<8x1024xf32> -> vector<8x1024xf32>
    %c0_3 = arith.constant 0 : index
    %c0_4 = arith.constant 0 : index
    %4 = vector.load %arg5[%c0_3, %c0_4] : memref<1x1024xf32, #tpu.memory_space<vmem>>, vector<1x1024xf32>
    %5 = vector.broadcast %4 : vector<1x1024xf32> to vector<8x1024xf32>
    %6 = arith.addf %3, %5 : vector<8x1024xf32>
    %cst_5 = arith.constant 0.000000e+00 : f32
    %7 = vector.broadcast %cst_5 : f32 to vector<8x1024xf32>
    %8 = arith.maximumf %6, %7 : vector<8x1024xf32>
    %9 = arith.truncf %8 : vector<8x1024xf32> to vector<8x1024xbf16>
    %c0_6 = arith.constant 0 : index
    %c0_7 = arith.constant 0 : index
    %10 = vector.load %arg6[%c0_6, %c0_7] : memref<1024x1024xbf16, #tpu.memory_space<vmem>>, vector<1024x1024xbf16>
    %cst_8 = arith.constant dense<0.000000e+00> : vector<8x1024xf32>
    %11 = tpu.matmul %9, %10, %cst_8 {dimension_numbers = #tpu.dot_dimension_numbers<[1], [0], [0], [1], [0, 0, 1, 1], [], []>} : vector<8x1024xbf16>, vector<1024x1024xbf16>, vector<8x1024xf32> -> vector<8x1024xf32>
    %c0_9 = arith.constant 0 : index
    %c0_10 = arith.constant 0 : index
    %12 = vector.load %arg7[%c0_9, %c0_10] : memref<1x1024xf32, #tpu.memory_space<vmem>>, vector<1x1024xf32>
    %13 = vector.broadcast %12 : vector<1x1024xf32> to vector<8x1024xf32>
    %14 = arith.addf %11, %13 : vector<8x1024xf32>
    %cst_11 = arith.constant 0.000000e+00 : f32
    %15 = vector.broadcast %cst_11 : f32 to vector<8x1024xf32>
    %16 = arith.maximumf %14, %15 : vector<8x1024xf32>
    %17 = arith.truncf %16 : vector<8x1024xf32> to vector<8x1024xbf16>
    %c0_12 = arith.constant 0 : index
    %c0_13 = arith.constant 0 : index
    %18 = vector.load %arg8[%c0_12, %c0_13] : memref<1024x128xbf16, #tpu.memory_space<vmem>>, vector<1024x128xbf16>
    %cst_14 = arith.constant dense<0.000000e+00> : vector<8x128xf32>
    %19 = tpu.matmul %17, %18, %cst_14 {dimension_numbers = #tpu.dot_dimension_numbers<[1], [0], [0], [1], [0, 0, 1, 1], [], []>} : vector<8x1024xbf16>, vector<1024x128xbf16>, vector<8x128xf32> -> vector<8x128xf32>
    %c0_15 = arith.constant 0 : index
    %c0_16 = arith.constant 0 : index
    %20 = vector.load %arg9[%c0_15, %c0_16] : memref<1x128xf32, #tpu.memory_space<vmem>>, vector<1x128xf32>
    %21 = vector.broadcast %20 : vector<1x128xf32> to vector<8x128xf32>
    %22 = arith.addf %19, %21 : vector<8x128xf32>
    %23 = arith.negf %22 : vector<8x128xf32>
    %24 = math.exp %23 : vector<8x128xf32>
    %cst_17 = arith.constant 1.000000e+00 : f32
    %25 = vector.broadcast %cst_17 : f32 to vector<8x128xf32>
    %26 = arith.addf %25, %24 : vector<8x128xf32>
    %27 = arith.divf %25, %26 : vector<8x128xf32>
    %c0_18 = arith.constant 0 : index
    %c0_19 = arith.constant 0 : index
    %28 = vector.load %arg13[%c0_18, %c0_19] : memref<8x128xf32, #tpu.memory_space<vmem>>, vector<8x128xf32>
    tpu.vector_store %arg13[%c0_18, %c0_19], %27 {strides = array<i32>} : memref<8x128xf32, #tpu.memory_space<vmem>>, vector<8x128xf32>,
    %c0_20 = arith.constant 0 : index
    %c0_21 = arith.constant 0 : index
    %29 = vector.load %arg2[%c0_20, %c0_21] : memref<8x128xf32, #tpu.memory_space<vmem>>, vector<8x128xf32>
    %30 = arith.cmpf ogt, %27, %29 : vector<8x128xf32>
    %cst_22 = arith.constant 1.000000e+00 : f32
    %cst_23 = arith.constant 0.000000e+00 : f32
    %31 = vector.broadcast %cst_22 : f32 to vector<8x128xf32>
    %32 = vector.broadcast %cst_23 : f32 to vector<8x128xf32>
    %33 = arith.select %30, %31, %32 : vector<8x128xi1>, vector<8x128xf32>
    %c0_24 = arith.constant 0 : index
    %c0_25 = arith.constant 0 : index
    %34 = vector.load %arg3[%c0_24, %c0_25] : memref<8x128xf32, #tpu.memory_space<vmem>>, vector<8x128xf32>
    %35 = arith.addf %33, %34 : vector<8x128xf32>
    %36 = arith.truncf %35 : vector<8x128xf32> to vector<8x128xbf16>
    %c0_26 = arith.constant 0 : index
    %c0_27 = arith.constant 0 : index
    %37 = vector.load %arg10[%c0_26, %c0_27] : memref<128x256xbf16, #tpu.memory_space<vmem>>, vector<128x256xbf16>
    %cst_28 = arith.constant dense<0.000000e+00> : vector<8x256xf32>
    %38 = tpu.matmul %36, %37, %cst_28 {dimension_numbers = #tpu.dot_dimension_numbers<[1], [0], [0], [1], [0, 0, 1, 1], [], []>} : vector<8x128xbf16>, vector<128x256xbf16>, vector<8x256xf32> -> vector<8x256xf32>
    %c0_29 = arith.constant 0 : index
    %c0_30 = arith.constant 0 : index
    %39 = vector.load %arg11[%c0_29, %c0_30] : memref<1x256xf32, #tpu.memory_space<vmem>>, vector<1x256xf32>
    %40 = vector.broadcast %39 : vector<1x256xf32> to vector<8x256xf32>
    %41 = arith.addf %38, %40 : vector<8x256xf32>
    %cst_31 = arith.constant dense<0xFF800000> : vector<8xf32>
    %42 = vector.multi_reduction <maximumf>, %41, %cst_31 [1] : vector<8x256xf32> to vector<8xf32>
    %43 = vector.shape_cast %42 : vector<8xf32> to vector<8x1xf32>
    %44 = vector.broadcast %43 : vector<8x1xf32> to vector<8x256xf32>
    %45 = arith.subf %41, %44 : vector<8x256xf32>
    %46 = math.exp %45 : vector<8x256xf32>
    %cst_32 = arith.constant dense<0.000000e+00> : vector<8xf32>
    %47 = vector.multi_reduction <add>, %46, %cst_32 [1] : vector<8x256xf32> to vector<8xf32>
    %48 = vector.shape_cast %47 : vector<8xf32> to vector<8x1xf32>
    %49 = math.log %48 : vector<8x1xf32>
    %50 = arith.addf %49, %43 : vector<8x1xf32>
    %51 = vector.broadcast %50 : vector<8x1xf32> to vector<8x256xf32>
    %52 = arith.subf %41, %51 : vector<8x256xf32>
    %c0_33 = arith.constant 0 : index
    %c0_34 = arith.constant 0 : index
    %53 = vector.load %arg12[%c0_33, %c0_34] : memref<8x256xf32, #tpu.memory_space<vmem>>, vector<8x256xf32>
    tpu.vector_store %arg12[%c0_33, %c0_34], %52 {strides = array<i32>} : memref<8x256xf32, #tpu.memory_space<vmem>>, vector<8x256xf32>,
    return
  }
  func.func @transform_0(%arg0: i32) -> (i32, i32) {
    %c0_i32 = arith.constant 0 : i32
    %c0_i32_0 = arith.constant 0 : i32
    return %arg0, %c0_i32 : i32, i32
  }
  func.func @transform_1(%arg0: i32) -> (i32, i32) {
    %c0_i32 = arith.constant 0 : i32
    %c0_i32_0 = arith.constant 0 : i32
    return %arg0, %c0_i32 : i32, i32
  }
  func.func @transform_2(%arg0: i32) -> (i32, i32) {
    %c0_i32 = arith.constant 0 : i32
    %c0_i32_0 = arith.constant 0 : i32
    return %arg0, %c0_i32 : i32, i32
  }
  func.func @transform_3(%arg0: i32) -> (i32, i32) {
    %c0_i32 = arith.constant 0 : i32
    %c0_i32_0 = arith.constant 0 : i32
    %c0_i32_1 = arith.constant 0 : i32
    return %c0_i32, %c0_i32_0 : i32, i32
  }
  func.func @transform_4(%arg0: i32) -> (i32, i32) {
    %c0_i32 = arith.constant 0 : i32
    %c0_i32_0 = arith.constant 0 : i32
    %c0_i32_1 = arith.constant 0 : i32
    return %c0_i32, %c0_i32_0 : i32, i32
  }
  func.func @transform_5(%arg0: i32) -> (i32, i32) {
    %c0_i32 = arith.constant 0 : i32
    %c0_i32_0 = arith.constant 0 : i32
    %c0_i32_1 = arith.constant 0 : i32
    return %c0_i32, %c0_i32_0 : i32, i32
  }
  func.func @transform_6(%arg0: i32) -> (i32, i32) {
    %c0_i32 = arith.constant 0 : i32
    %c0_i32_0 = arith.constant 0 : i32
    %c0_i32_1 = arith.constant 0 : i32
    return %c0_i32, %c0_i32_0 : i32, i32
  }
  func.func @transform_7(%arg0: i32) -> (i32, i32) {
    %c0_i32 = arith.constant 0 : i32
    %c0_i32_0 = arith.constant 0 : i32
    %c0_i32_1 = arith.constant 0 : i32
    return %c0_i32, %c0_i32_0 : i32, i32
  }
  func.func @transform_8(%arg0: i32) -> (i32, i32) {
    %c0_i32 = arith.constant 0 : i32
    %c0_i32_0 = arith.constant 0 : i32
    %c0_i32_1 = arith.constant 0 : i32
    return %c0_i32, %c0_i32_0 : i32, i32
  }
  func.func @transform_9(%arg0: i32) -> (i32, i32) {
    %c0_i32 = arith.constant 0 : i32
    %c0_i32_0 = arith.constant 0 : i32
    %c0_i32_1 = arith.constant 0 : i32
    return %c0_i32, %c0_i32_0 : i32, i32
  }
  func.func @transform_10(%arg0: i32) -> (i32, i32) {
    %c0_i32 = arith.constant 0 : i32
    %c0_i32_0 = arith.constant 0 : i32
    %c0_i32_1 = arith.constant 0 : i32
    return %c0_i32, %c0_i32_0 : i32, i32
  }
  func.func @transform_11(%arg0: i32) -> (i32, i32) {
    %c0_i32 = arith.constant 0 : i32
    %c0_i32_0 = arith.constant 0 : i32
    return %arg0, %c0_i32 : i32, i32
  }
  func.func @transform_12(%arg0: i32) -> (i32, i32) {
    %c0_i32 = arith.constant 0 : i32
    %c0_i32_0 = arith.constant 0 : i32
    return %arg0, %c0_i32 : i32, i32
  }
}

</mosaic_0001>

<bundles_post_ra>
// kernel: tpu_custom_call.1
= control target key start
LH: loop header
LB: loop body
LE: loop exit
PB: predicated region body
PF: predicated region fallthrough
CT: control target
= control target key end

     0   :  { %s8855_s0 = inlined_call_operand.hbm [shape: f32[16,256], index: 0, kind: input, shape index: {}]   ;;  %s8856_s1 = inlined_call_operand.hbm [shape: f32[16,128], index: 1, kind: input, shape index: {}]   ;;  %s8857_s2 = inlined_call_operand.hbm [shape: f32[16,128], index: 2, kind: input, shape index: {}]   ;;  %s8858_s3 = inlined_call_operand.hbm [shape: bf16[256,1024], index: 3, kind: input, shape index: {}]   ;;  %s8859_s4 = inlined_call_operand.hbm [shape: f32[1,1024], index: 4, kind: input, shape index: {}]   ;;  %s8860_s5 = inlined_call_operand.hbm [shape: bf16[1024,1024], index: 5, kind: input, shape index: {}]   ;;  %s8861_s6 = inlined_call_operand.hbm [shape: f32[1,1024], index: 6, kind: input, shape index: {}]   ;;  %s8862_s7 = inlined_call_operand.hbm [shape: bf16[1024,128], index: 7, kind: input, shape index: {}]   ;;  %s8863_s8 = inlined_call_operand.hbm [shape: f32[1,128], index: 8, kind: input, shape index: {}]   ;;  %s8864_s9 = inlined_call_operand.hbm [shape: bf16[128,256], index: 9, kind: input, shape index: {}]   ;;  %s8865_s10 = inlined_call_operand.hbm [shape: f32[1,256], index: 10, kind: input, shape index: {}]   ;;  %s8866_s11 = inlined_call_operand.hbm [shape: f32[16,256], index: 11, kind: output, shape index: {0}]   ;;  %s8867_s12 = inlined_call_operand.hbm [shape: f32[16,128], index: 12, kind: output, shape index: {1}]  }
   0x1   :  { %8891 = sst [smem:[#allocation37_spill]] %s8855_s0 }
   0x2   :  { %8892 = sst [smem:[#allocation38_spill]] %s8856_s1 }
   0x3   :  { %8893 = sst [smem:[#allocation39_spill]] %s8858_s3 }
   0x4   :  { %8894 = sst [smem:[#allocation40_spill]] %s8860_s5 }
   0x5   :  { %8895 = sst [smem:[#allocation41_spill]] %s8862_s7 }
   0x6   :  { %8896 = sst [smem:[#allocation42_spill]] %s8864_s9 }
   0x7   :  { %8897 = sst [smem:[#allocation43_spill]] %s8866_s11 }
   0x8   :  { %8898 = sst [smem:[#allocation44_spill]] %s8867_s12 }
   0x9   :  { %18 = vsyncpa [#allocation3], 0 }
   0xa   :  { %20 = vsyncpa [#allocation3 + $0x1], 0 }
   0xb   :  { %21 = vsyncpa [#allocation6], 0 }
   0xc   :  { %23 = vsyncpa [#allocation6 + $0x1], 0 }
   0xd   :  { %24 = vsyncpa [#allocation9], 0 }
   0xe   :  { %25 = vsyncpa [#allocation12], 0 }
   0xf   :  { %26 = vsyncpa [#allocation15], 0 }
  0x10   :  { %27 = vsyncpa [#allocation18], 0 }
  0x11   :  { %28 = vsyncpa [#allocation4], 0 }
  0x12   :  { %30 = vsyncpa [#allocation4 + $0x1], 0 }
  0x13   :  { %31 = vsyncpa [#allocation22], 0 }
  0x14   :  { %33 = vsyncpa [#allocation22 + $0x1], 0  ;;  %s8191_s21 = smov 0   ;;  %s8193_s22 = smov 0  }
  0x15   :  { %s8195_s23 = smov 0   ;;  %s8197_s24 = smov 0  }
  0x16 LB: > { %8899 = sst [smem:[#allocation31_spill]] %s8091_s21  ;;  %s8105_s25 = smov [#allocation8]   ;;  %s8103_s24 = sphi %s8197_s24, %s8946_s24   ;;  %s8099_s23 = sphi %s8195_s23, %s8948_s23   ;;  %s8095_s22 = sphi %s8193_s22, %s8950_s22   ;;  %s8091_s21 = sphi %s8191_s21, %s8949_s21  }
  0x17   : > { %8900 = sst [smem:[#allocation32_spill]] %s8099_s23  ;;  %s354_s26 = sshll.u32 %s8105_s25, 4  ;;  %s8217_s26 = int_to_ptr.vmem [resolvable:$true] %s354_s26 }
  0x18   : > { %s8212_s27 = sadd.s32 4294967295, %s8103_s24   ;;  %p6516_p0 = scmp.ge.s32.totalorder %s8103_s24, 1 }
  0x19   : > { %p8872_p1 = scmp.eq.s32.totalorder %s8212_s27, 0  ;;  %p342_p2 = scmp.lt.s32.totalorder %s8103_s24, 3 }
  0x1a   : > { %s8106_s29 = smov [#allocation11]   ;;  %s8107_s14 = smov [#allocation14]  }
  0x1b   : > { %p8219_p3 = pnand %p6516_p0, %p342_p2  ;;  %s378_s30 = sshll.u32 %s8106_s29, 4  ;;  %s8232_s30 = int_to_ptr.vmem [resolvable:$true] %s378_s30 }
  0x1c   : > { %s402_s15 = sshll.u32 %s8107_s14, 4  ;;  %s8904_s3 = sld [smem:[#allocation39_spill]]  ;;  %s8234_s15 = int_to_ptr.vmem [resolvable:$true] %s402_s15 }
  0x1d   : > { %s8901_s28 = scalar_select %p8219_p3, 1, 0 }
  0x1e   : > { %p7464_p5 = pneg %p8219_p3 }
  0x1f   : > { %8902 = sst [smem:[#allocation33_spill]] %s8901_s28 }
  0x20   : > { %p8228_p6 = pnand %p7464_p5, %p8872_p1 }
  0x22   : > { %s8903_s13 = scalar_select %p8228_p6, 1, 0 }
  0x23   : > { %s7671_s18 = scalar_lea.hbm %s8904_s3, 16384  ;;  %p8244_p8 = pneg %p8228_p6 }
  0x24   : > { %p7672_p7 = scmp.ne.s32.totalorder %s8904_s3, %s7671_s18  ;;  %p7678_p11 = scmp.lt.u32.totalorder %s7671_s18, %s8904_s3 }
  0x25   : > { %s8905_s25 = scalar_select %p8244_p8, 1, 0 }
  0x26   : > { %p7674_p9 = pnand %p8244_p8, %p7672_p7 }
  0x28   : > { %p7675_p10 = pneg %p7674_p9 }
  0x2a   : > { %p7680_p12 = pnand %p7678_p11, %p7675_p10 }
  0x2c   : > { %7683 = shalt.err (!%p7680_p12)
}
  0x2d   : > { %s7684_s16 = scalar_lea.vmem %s8217_s26, 16384  ;;  %p7692_p5 = scmp.lt.s32.totalorder %s8217_s26, %s8217_s26 }
  0x2e   : > { %p7685_p13 = scmp.ne.s32.totalorder %s8217_s26, %s7684_s16  ;;  %p7693_p4 = scmp.lt.s32.totalorder %s7684_s16, %s7684_s16 }
  0x30   : > { %p7687_p0 = pnand %p7685_p13, %p8244_p8  ;;  %p7694_p7 = por %p7693_p4, %p7692_p5 }
  0x32   : > { %p7688_p2 = pneg %p7687_p0 }
  0x34   : > { %p7695_p9 = pnand %p7694_p7, %p7688_p2 }
  0x36   : > { %7698 = shalt.err (!%p7695_p9)
}
  0x37   : > { %s8108_s17 = smov 512   ;;  %s8109_s18 = smov 32  }
  0x38   : > { %7467 = dma.hbm_to_vmem [thread:$0]  (!%p8228_p6), %s8904_s3, 16384, %s8217_s26, [#allocation9], %s8108_s17, %s8108_s17, %s8109_s18  }
  0x39   : > { %s8906_s5 = sld [smem:[#allocation40_spill]] }
  0x3f   : > { %s7699_s11 = scalar_lea.hbm %s8906_s5, 65536 }
  0x40   : > { %p7700_p4 = scmp.ne.s32.totalorder %s8906_s5, %s7699_s11  ;;  %p7706_p12 = scmp.lt.u32.totalorder %s7699_s11, %s8906_s5 }
  0x42   : > { %p7702_p10 = pnand %p7700_p4, %p8244_p8 }
  0x44   : > { %p7703_p11 = pneg %p7702_p10 }
  0x46   : > { %p7708_p13 = pnand %p7706_p12, %p7703_p11 }
  0x48   : > { %7711 = shalt.err (!%p7708_p13)
}
  0x49   : > { %s7712_s26 = scalar_lea.vmem %s8232_s30, 65536  ;;  %p7720_p7 = scmp.lt.s32.totalorder %s8232_s30, %s8232_s30 }
  0x4a   : > { %p7713_p0 = scmp.ne.s32.totalorder %s8232_s30, %s7712_s26  ;;  %p7721_p9 = scmp.lt.s32.totalorder %s7712_s26, %s7712_s26 }
  0x4c   : > { %p7715_p2 = pnand %p7713_p0, %p8244_p8  ;;  %p7722_p4 = por %p7721_p9, %p7720_p7 }
  0x4e   : > { %p7716_p5 = pneg %p7715_p2 }
  0x50   : > { %p7723_p10 = pnand %p7722_p4, %p7716_p5 }
  0x52   : > { %7726 = shalt.err (!%p7723_p10)
}
  0x53   : > { %7473 = dma.hbm_to_vmem [thread:$0]  (!%p8228_p6), %s8906_s5, 65536, %s8232_s30, [#allocation12], %s8108_s17, %s8108_s17, %s8109_s18  }
  0x54   : > { %s8907_s7 = sld [smem:[#allocation41_spill]] }
  0x5a   : > { %s7727_s19 = scalar_lea.hbm %s8907_s7, 8192 }
  0x5b   : > { %p7728_p11 = scmp.ne.s32.totalorder %s8907_s7, %s7727_s19  ;;  %p7734_p0 = scmp.lt.u32.totalorder %s7727_s19, %s8907_s7 }
  0x5d   : > { %p7730_p12 = pnand %p7728_p11, %p8244_p8 }
  0x5f   : > { %p7731_p13 = pneg %p7730_p12 }
  0x61   : > { %p7736_p2 = pnand %p7734_p0, %p7731_p13 }
  0x63   : > { %7739 = shalt.err (!%p7736_p2)
}
  0x64   : > { %s7740_s30 = scalar_lea.vmem %s8234_s15, 8192  ;;  %p7748_p4 = scmp.lt.s32.totalorder %s8234_s15, %s8234_s15 }
  0x65   : > { %p7741_p5 = scmp.ne.s32.totalorder %s8234_s15, %s7740_s30  ;;  %p7749_p10 = scmp.lt.s32.totalorder %s7740_s30, %s7740_s30 }
  0x67   : > { %p7743_p7 = pnand %p7741_p5, %p8244_p8  ;;  %p7750_p11 = por %p7749_p10, %p7748_p4 }
  0x69   : > { %p7744_p9 = pneg %p7743_p7 }
  0x6b   : > { %p7751_p12 = pnand %p7750_p11, %p7744_p9 }
  0x6d   : > { %7754 = shalt.err (!%p7751_p12)
}
  0x6e   : > { %s8110_s17 = smov 64   ;;  %s8111_s18 = smov 4  }
  0x6f   : > { %7479 = dma.hbm_to_vmem [thread:$0]  (!%p8228_p6), %s8907_s7, 8192, %s8234_s15, [#allocation15], %s8110_s17, %s8110_s17, %s8111_s18  }
  0x70   : > { %s8112_s11 = smov [#allocation17]   ;;  %s8908_s9 = sld [smem:[#allocation42_spill]] }
  0x71   : > { %s426_s12 = sshll.u32 %s8112_s11, 4  ;;  %s427_s12 = int_to_ptr.vmem [resolvable:$true] %s426_s12 }
  0x76   : > { %s7755_s20 = scalar_lea.hbm %s8908_s9, 2048 }
  0x77   : > { %p7756_p13 = scmp.ne.s32.totalorder %s8908_s9, %s7755_s20  ;;  %p7762_p5 = scmp.lt.u32.totalorder %s7755_s20, %s8908_s9 }
  0x79   : > { %p7758_p0 = pnand %p7756_p13, %p8244_p8 }
  0x7b   : > { %p7759_p2 = pneg %p7758_p0 }
  0x7d   : > { %p7764_p7 = pnand %p7762_p5, %p7759_p2 }
  0x7f   : > { %7767 = shalt.err (!%p7764_p7)
}
  0x80   : > { %s7768_s15 = scalar_lea.vmem %s427_s12, 2048  ;;  %p7776_p11 = scmp.lt.s32.totalorder %s427_s12, %s427_s12 }
  0x81   : > { %p7769_p9 = scmp.ne.s32.totalorder %s427_s12, %s7768_s15  ;;  %p7777_p12 = scmp.lt.s32.totalorder %s7768_s15, %s7768_s15 }
  0x83   : > { %p7771_p4 = pnand %p7769_p9, %p8244_p8  ;;  %p7778_p1 = por %p7777_p12, %p7776_p11 }
  0x85   : > { %p7772_p10 = pneg %p7771_p4 }
  0x87   : > { %p7779_p3 = pnand %p7778_p1, %p7772_p10 }
  0x89   : > { %7782 = shalt.err (!%p7779_p3)
}
  0x8a   : > { %s8113_s17 = smov 128   ;;  %s8114_s18 = smov 8  }
  0x8b   : > { %7485 = dma.hbm_to_vmem [thread:$0]  (!%p8228_p6), %s8908_s9, 2048, %s427_s12, [#allocation18], %s8113_s17, %s8113_s17, %s8114_s18  }
  0x8c   : > { %s6515_s11 = sadd.s32 4294967294, %s8103_s24   ;;  %s8331_s28 = sadd.s32 1, %s8103_s24  }
  0x8d   : > { %8909 = sst [smem:[#allocation34_spill]] %s8331_s28  ;;  %s43_s19 = ssub.s32 %s8103_s24, %s8331_s28 }
  0x8e   : > { %s46_s20 = sadd.s32 1, %s8099_s23  ;;  %p44_p1 = scmp.eq.s32.totalorder %s43_s19, 0 }
  0x8f   : > { %p53_p3 = scmp.ne.s32.totalorder %s8099_s23, %s8095_s22  ;;  %p54_p13 = scmp.eq.s32.totalorder %s8103_s24, 0 }
  0x90   : > { %p59_p0 = scmp.ne.s32.totalorder %s8095_s22, %s8091_s21  ;;  %p8911_p5 = scmp.eq.s32.totalorder %s8212_s27, 0 }
  0x91   : > { %s8342_s29 = scalar_select %p44_p1, %s8099_s23, %s46_s20  }
  0x92   : > { %p55_p2 = por %p54_p13, %p53_p3  ;;  %p8346_p7 = por %p8911_p5, %p59_p0 }
  0x93   : > { %8910 = sst [smem:[#allocation35_spill]] %s8342_s29  ;;  %p303_p9 = scmp.eq.s32.totalorder %s8212_s27, 1 }
  0x94   : > { %s8912_s14 = scalar_select %p8346_p7, 1, 0 }
  0x95   : > { %p309_p4 = scmp.eq.s32.totalorder %s6515_s11, 1  ;;  %p7514_p10 = scmp.lt.s32.totalorder %s8103_s24, 2 }
  0x96   : > { %s8353_s12 = sand.u32 1, %s8099_s23   ;;  %p8355_p11 = por %p303_p9, %p53_p3 }
  0x97   : > { %p8359_p12 = por %p309_p4, %p59_p0  ;;  %p8363_p1 = pnand %p7514_p10, %p55_p2 }
  0x98   : > { %s8913_s16 = scalar_select %p8355_p11, 1, 0 }
  0x99   : > { %s8914_s30 = scalar_select %p8359_p12, 1, 0 }
  0x9a   : > { %s8916_s15 = scalar_select %p8363_p1, 1, 0 }
  0x9b   : > { %8915 = sst [smem:[#allocation36_spill]] %s8914_s30  ;;  %s470_s17 = sand.u32 1, %s8103_s24  }
  0x9c   : > { %s8874_s18 = sshll.u32 %s8353_s12, 3  ;;  %s8875_s26 = sshll.u32 %s8103_s24, 7 }
  0x9d   : > { %s474_s0 = scalar_lea.vmem [#allocation5], %s8874_s18  ;;  %s8917_s1 = sld [smem:[#allocation38_spill]] }
  0x9e   : > { %s481_s11 = sshll.u32 %s474_s0, 4  ;;  %s8381_s5 = scalar_lea.sflag [#allocation6], %s470_s17  ;;  %s8379_s11 = int_to_ptr.vmem [resolvable:$true] %s481_s11 }
  0x9f   : > { %p8387_p13 = pneg %p8363_p1 }
  0xa1   : > { %s8918_s18 = scalar_select %p8387_p13, 1, 0 }
  0xa3   : > { %s8377_s3 = scalar_lea.hbm %s8917_s1, %s8875_s26  ;;  %s7788_s20 = scalar_lea.hbm %s8917_s1, 256 }
  0xa4   : > { %s7783_s7 = scalar_lea.hbm %s8377_s3, 128  ;;  %p7789_p5 = scmp.lt.u32.totalorder %s8377_s3, %s8917_s1 }
  0xa5   : > { %p7784_p3 = scmp.ne.s32.totalorder %s8377_s3, %s7783_s7  ;;  %p7790_p9 = scmp.lt.u32.totalorder %s7788_s20, %s7783_s7 }
  0xa6   : > { %p7792_p10 = scmp.lt.u32.totalorder %s7783_s7, %s8377_s3 }
  0xa7   : > { %p7786_p0 = pnand %p8387_p13, %p7784_p3  ;;  %p7791_p4 = por %p7790_p9, %p7789_p5 }
  0xa9   : > { %p7787_p2 = pneg %p7786_p0  ;;  %p7793_p12 = por %p7792_p10, %p7791_p4 }
  0xab   : > { %p7794_p11 = pnand %p7793_p12, %p7787_p2 }
  0xad   : > { %7797 = shalt.err (!%p7794_p11)
}
  0xae   : > { %s7798_s17 = scalar_lea.vmem %s8379_s11, 128  ;;  %s8115_s0 = smov [#allocation5]  }
  0xaf   : > { %p7799_p3 = scmp.ne.s32.totalorder %s8379_s11, %s7798_s17  ;;  %s7803_s19 = sshll.u32 %s8115_s0, 4  ;;  %s7804_s19 = int_to_ptr.vmem [resolvable:$false] %s7803_s19 }
  0xb0   : > { %s7805_s9 = scalar_lea.vmem %s7804_s19, 256  ;;  %p7806_p6 = scmp.lt.s32.totalorder %s8379_s11, %s7804_s19 }
  0xb1   : > { %p7801_p0 = pnand %p7799_p3, %p8387_p13  ;;  %p7807_p8 = scmp.lt.s32.totalorder %s7805_s9, %s7798_s17 }
  0xb3   : > { %p7802_p7 = pneg %p7801_p0  ;;  %p7808_p5 = por %p7807_p8, %p7806_p6 }
  0xb5   : > { %p7809_p9 = pnand %p7808_p5, %p7802_p7 }
  0xb7   : > { %7812 = shalt.err (!%p7809_p9)
}
  0xb8   : > { %7495 = dma.hbm_to_vmem [thread:$0]  (!%p8363_p1), %s8377_s3, 128, %s8379_s11, %s8381_s5  }
  0xb9   : > { %s8919_s7 = sshll.u32 %s8103_s24, 7  ;;  %s8116_s1 = smov [#allocation10]  }
  0xba   : > { %s8416_s0 = scalar_lea.hbm %s8857_s2, %s8919_s7  ;;  %s368_s19 = sshll.u32 %s8116_s1, 4  ;;  %s369_s19 = int_to_ptr.vmem [resolvable:$true] %s368_s19 }
  0xbb   : > { %s8117_s17 = smov [#allocation13]   ;;  %s7813_s28 = scalar_lea.hbm %s8859_s4, 128 }
  0xbc   : > { %s392_s9 = sshll.u32 %s8117_s17, 4  ;;  %p7814_p6 = scmp.ne.s32.totalorder %s8859_s4, %s7813_s28  ;;  %s8418_s9 = int_to_ptr.vmem [resolvable:$true] %s392_s9 }
  0xbd   : > { %p8920_p8 = scmp.ne.s32.totalorder %s8905_s25, 0  ;;  %p7820_p12 = scmp.lt.u32.totalorder %s7813_s28, %s8859_s4 }
  0xbf   : > { %p7816_p7 = pnand %p7814_p6, %p8920_p8 }
  0xc1   : > { %p7817_p11 = pneg %p7816_p7 }
  0xc3   : > { %p7822_p2 = pnand %p7820_p12, %p7817_p11 }
  0xc5   : > { %7825 = shalt.err (!%p7822_p2)
}
  0xc6   : > { %s7826_s1 = scalar_lea.vmem %s369_s19, 128  ;;  %p7834_p0 = scmp.lt.s32.totalorder %s369_s19, %s369_s19 }
  0xc7   : > { %p7827_p4 = scmp.ne.s32.totalorder %s369_s19, %s7826_s1  ;;  %p7835_p5 = scmp.lt.s32.totalorder %s7826_s1, %s7826_s1 }
  0xc9   : > { %p7829_p10 = pnand %p7827_p4, %p8920_p8  ;;  %p7836_p9 = por %p7835_p5, %p7834_p0 }
  0xcb   : > { %p7830_p3 = pneg %p7829_p10 }
  0xcd   : > { %p7837_p1 = pnand %p7836_p9, %p7830_p3 }
  0xcf   : > { %7840 = shalt.err (!%p7837_p1)
}
  0xd0   : > { %p8921_p6 = scmp.ne.s32.totalorder %s8903_s13, 0  ;;  %s7841_s30 = scalar_lea.hbm %s8861_s6, 128 }
  0xd1   : > { %p7842_p7 = scmp.ne.s32.totalorder %s8861_s6, %s7841_s30  ;;  %p7848_p1 = scmp.lt.u32.totalorder %s7841_s30, %s8861_s6 }
  0xd2   : > { %7470 = dma.hbm_to_vmem [thread:$0]  (!%p8921_p6), %s8859_s4, 128, %s369_s19, [#allocation9]  }
  0xd3   : > { %p7844_p11 = pnand %p7842_p7, %p8920_p8 }
  0xd5   : > { %p7845_p12 = pneg %p7844_p11 }
  0xd7   : > { %p7850_p2 = pnand %p7848_p1, %p7845_p12 }
  0xd9   : > { %7853 = shalt.err (!%p7850_p2)
}
  0xda   : > { %s7854_s19 = scalar_lea.vmem %s8418_s9, 128  ;;  %p7862_p0 = scmp.lt.s32.totalorder %s8418_s9, %s8418_s9 }
  0xdb   : > { %p7855_p4 = scmp.ne.s32.totalorder %s8418_s9, %s7854_s19  ;;  %p7863_p5 = scmp.lt.s32.totalorder %s7854_s19, %s7854_s19 }
  0xdd   : > { %p7857_p10 = pnand %p7855_p4, %p8920_p8  ;;  %p7864_p9 = por %p7863_p5, %p7862_p0 }
  0xdf   : > { %p7858_p3 = pneg %p7857_p10 }
  0xe1   : > { %p7865_p7 = pnand %p7864_p9, %p7858_p3 }
  0xe3   : > { %7868 = shalt.err (!%p7865_p7)
}
  0xe4   : > { %7476 = dma.hbm_to_vmem [thread:$0]  (!%p8921_p6), %s8861_s6, 128, %s8418_s9, [#allocation12]  }
  0xe5   : > { %s8118_s1 = smov [#allocation16]   ;;  %s8119_s23 = smov [#allocation19]  }
  0xe6   : > { %s416_s21 = sshll.u32 %s8118_s1, 4  ;;  %s440_s28 = sshll.u32 %s8119_s23, 4  ;;  %s417_s21 = int_to_ptr.vmem [resolvable:$true] %s416_s21  ;;  %s8461_s28 = int_to_ptr.vmem [resolvable:$true] %s440_s28 }
  0xe7   : > { %s7869_s7 = scalar_lea.hbm %s8863_s8, 16 }
  0xe8   : > { %p7870_p11 = scmp.ne.s32.totalorder %s8863_s8, %s7869_s7  ;;  %p7876_p2 = scmp.lt.u32.totalorder %s7869_s7, %s8863_s8 }
  0xea   : > { %p7872_p12 = pnand %p7870_p11, %p8920_p8 }
  0xec   : > { %p7873_p1 = pneg %p7872_p12 }
  0xee   : > { %p7878_p4 = pnand %p7876_p2, %p7873_p1 }
  0xf0   : > { %7881 = shalt.err (!%p7878_p4)
}
  0xf1   : > { %s7882_s19 = scalar_lea.vmem %s417_s21, 16  ;;  %s7889_s3 = scalar_lea.vmem %s417_s21, 32 }
  0xf2   : > { %p7883_p10 = scmp.ne.s32.totalorder %s417_s21, %s7882_s19  ;;  %p7890_p5 = scmp.lt.s32.totalorder %s417_s21, %s417_s21 }
  0xf3   : > { %p7891_p9 = scmp.lt.s32.totalorder %s7889_s3, %s7882_s19 }
  0xf4   : > { %p7885_p3 = pnand %p7883_p10, %p8920_p8 }
  0xf5   : > { %p7892_p7 = por %p7891_p9, %p7890_p5 }
  0xf6   : > { %p7886_p0 = pneg %p7885_p3 }
  0xf8   : > { %p7893_p13 = pnand %p7892_p7, %p7886_p0 }
  0xfa   : > { %7896 = shalt.err (!%p7893_p13)
}
  0xfb   : > { %7482 = dma.hbm_to_vmem [thread:$0]  (!%p8921_p6), %s8863_s8, 16, %s417_s21, [#allocation15]  }
  0xfc   : > { %s7897_s30 = scalar_lea.hbm %s8865_s10, 32 }
  0xfd   : > { %p7898_p11 = scmp.ne.s32.totalorder %s8865_s10, %s7897_s30  ;;  %p7904_p13 = scmp.lt.u32.totalorder %s7897_s30, %s8865_s10 }
  0xff   : > { %p7900_p12 = pnand %p7898_p11, %p8920_p8 }
 0x101   : > { %p7901_p1 = pneg %p7900_p12 }
 0x103   : > { %p7906_p2 = pnand %p7904_p13, %p7901_p1 }
 0x105   : > { %7909 = shalt.err (!%p7906_p2)
}
 0x106   : > { %s7910_s21 = scalar_lea.vmem %s8461_s28, 32  ;;  %p7918_p0 = scmp.lt.s32.totalorder %s8461_s28, %s8461_s28 }
 0x107   : > { %p7911_p4 = scmp.ne.s32.totalorder %s8461_s28, %s7910_s21  ;;  %p7919_p5 = scmp.lt.s32.totalorder %s7910_s21, %s7910_s21 }
 0x109   : > { %p7913_p10 = pnand %p7911_p4, %p8920_p8  ;;  %p7920_p9 = por %p7919_p5, %p7918_p0 }
 0x10b   : > { %p7914_p3 = pneg %p7913_p10 }
 0x10d   : > { %p7921_p7 = pnand %p7920_p9, %p7914_p3 }
 0x10f   : > { %7924 = shalt.err (!%p7921_p7)
}
 0x110   : > { %7488 = dma.hbm_to_vmem [thread:$0]  (!%p8921_p6), %s8865_s10, 32, %s8461_s28, [#allocation18]  }
 0x111   : > { %s6526_s25 = sshll.u32 %s8353_s12, 4  ;;  %s7276_s3 = sshll.u32 %s8103_s24, 8 }
 0x112   : > { %s8922_s23 = sld [smem:[#allocation37_spill]]  ;;  %s455_s13 = scalar_lea.vmem [#allocation2], %s6526_s25 }
 0x113   : > { %s463_s7 = sshll.u32 %s455_s13, 4  ;;  %s8924_s26 = sshll.u32 %s8353_s12, 3  ;;  %s8511_s7 = int_to_ptr.vmem [resolvable:$true] %s463_s7 }
 0x114   : > { %s8515_s20 = scalar_lea.vmem [#allocation7], %s8924_s26  ;;  %s452_s17 = scalar_lea.sflag [#allocation3], %s8353_s12 }
 0x115   : > { %s499_s28 = sshll.u32 %s8515_s20, 4  ;;  %p8925_p6 = scmp.ne.s32.totalorder %s8918_s18, 0  ;;  %s500_s28 = int_to_ptr.vmem [resolvable:$true] %s499_s28 }
 0x118   : > { %s8923_s29 = smov %s8922_s23  ;;  %s8509_s30 = scalar_lea.hbm %s8922_s23, %s7276_s3 }
 0x119   : > { %s7925_s21 = scalar_lea.hbm %s8509_s30, 256  ;;  %s7930_s3 = scalar_lea.hbm %s8923_s29, 512 }
 0x11a   : > { %p7926_p8 = scmp.ne.s32.totalorder %s8509_s30, %s7925_s21  ;;  %p7931_p1 = scmp.lt.u32.totalorder %s8509_s30, %s8923_s29 }
 0x11b   : > { %p7932_p13 = scmp.lt.u32.totalorder %s7930_s3, %s7925_s21  ;;  %p7934_p4 = scmp.lt.u32.totalorder %s7925_s21, %s8509_s30 }
 0x11c   : > { %p7928_p11 = pnand %p7926_p8, %p8925_p6 }
 0x11d   : > { %p7933_p2 = por %p7932_p13, %p7931_p1 }
 0x11e   : > { %p7929_p12 = pneg %p7928_p11 }
 0x11f   : > { %p7935_p10 = por %p7934_p4, %p7933_p2 }
 0x121   : > { %p7936_p3 = pnand %p7935_p10, %p7929_p12 }
 0x123   : > { %7939 = shalt.err (!%p7936_p3)
}
 0x124   : > { %s7940_s12 = scalar_lea.vmem %s8511_s7, 256  ;;  %s8120_s1 = smov [#allocation2]  }
 0x125   : > { %p7941_p0 = scmp.ne.s32.totalorder %s8511_s7, %s7940_s12  ;;  %s7945_s23 = sshll.u32 %s8120_s1, 4  ;;  %s7946_s23 = int_to_ptr.vmem [resolvable:$false] %s7945_s23 }
 0x126   : > { %s7947_s13 = scalar_lea.vmem %s7946_s23, 512  ;;  %p7948_p7 = scmp.lt.s32.totalorder %s8511_s7, %s7946_s23 }
 0x127   : > { %p7943_p5 = pnand %p7941_p0, %p8925_p6  ;;  %p7949_p8 = scmp.lt.s32.totalorder %s7947_s13, %s7940_s12 }
 0x129   : > { %p7944_p9 = pneg %p7943_p5  ;;  %p7950_p11 = por %p7949_p8, %p7948_p7 }
 0x12b   : > { %p7951_p1 = pnand %p7950_p11, %p7944_p9 }
 0x12d   : > { %7954 = shalt.err (!%p7951_p1)
}
 0x12e   : > { %p8926_p12 = scmp.ne.s32.totalorder %s8916_s15, 0  ;;  %s7955_s26 = scalar_lea.hbm %s8416_s0, 128 }
 0x12f   : > { %p7956_p13 = scmp.ne.s32.totalorder %s8416_s0, %s7955_s26  ;;  %s7960_s19 = scalar_lea.hbm %s8857_s2, 256 }
 0x130   : > { %7492 = dma.hbm_to_vmem [thread:$0]  (!%p8926_p12), %s8509_s30, 256, %s8511_s7, %s452_s17  }
 0x131   : > { %p7958_p2 = pnand %p7956_p13, %p8925_p6  ;;  %p7961_p10 = scmp.lt.u32.totalorder %s8416_s0, %s8857_s2 }
 0x132   : > { %p7962_p3 = scmp.lt.u32.totalorder %s7960_s19, %s7955_s26  ;;  %p7964_p5 = scmp.lt.u32.totalorder %s7955_s26, %s8416_s0 }
 0x133   : > { %p7959_p4 = pneg %p7958_p2 }
 0x134   : > { %p7963_p0 = por %p7962_p3, %p7961_p10 }
 0x136   : > { %p7965_p9 = por %p7964_p5, %p7963_p0 }
 0x138   : > { %p7966_p7 = pnand %p7965_p9, %p7959_p4 }
 0x13a   : > { %7969 = shalt.err (!%p7966_p7)
}
 0x13b   : > { %s7970_s30 = scalar_lea.vmem %s500_s28, 128  ;;  %s8121_s7 = smov [#allocation7]  }
 0x13c   : > { %p7971_p8 = scmp.ne.s32.totalorder %s500_s28, %s7970_s30  ;;  %s7975_s20 = sshll.u32 %s8121_s7, 4  ;;  %s7976_s20 = int_to_ptr.vmem [resolvable:$false] %s7975_s20 }
 0x13d   : > { %s7977_s17 = scalar_lea.vmem %s7976_s20, 256  ;;  %p7978_p13 = scmp.lt.s32.totalorder %s500_s28, %s7976_s20 }
 0x13e   : > { %p7973_p11 = pnand %p7971_p8, %p8925_p6  ;;  %p7979_p2 = scmp.lt.s32.totalorder %s7977_s17, %s7970_s30 }
 0x140   : > { %p7974_p1 = pneg %p7973_p11  ;;  %p7980_p12 = por %p7979_p2, %p7978_p13 }
 0x142   : > { %p7981_p3 = pnand %p7980_p12, %p7974_p1 }
 0x144   : > { %7984 = shalt.err (!%p7981_p3)
}
 0x145   : > { %p8927_p10 = scmp.ne.s32.totalorder %s8916_s15, 0  ;;  %s8928_s25 = sld [smem:[#allocation33_spill]] }
 0x147   : > { %7498 = dma.hbm_to_vmem [thread:$0]  (!%p8927_p10), %s8416_s0, 128, %s500_s28, %s8381_s5  }
 0x14b   : > { %p8929_p4 = scmp.ne.s32.totalorder %s8928_s25, 0 }
 0x14c   : > { %s8563_s18 = sand.u32 (!%p8929_p4), 1, %s8095_s22   ;;  %p8930_p6 = scmp.ne.s32.totalorder (!%p8929_p4), %s8912_s14, 0 }
 0x14d   : > { %508 = sbr.rel (%p8929_p4) target bundleno = 2114 (0x842), region = 64  ;;  %s6534_s12 = sshll.u32 (!%p8929_p4), %s8563_s18, 4 }
 0x14e   : > { %s511_s1 = scalar_lea.sflag (!%p8929_p4), [#allocation3], %s8563_s18  ;;  %s8569_s23 = scalar_lea.vmem (!%p8929_p4), [#allocation2], %s6534_s12 }
 0x154   : > { %8058 = dma.done.wait (%p8930_p6), %s511_s1, 256  }
 0x155   : > { %8060 = vsyncadd (%p8930_p6), %s511_s1, 4294967040  ;;  %s519_s5 = sand.u32 1, %s8212_s27   ;;  %s8577_s15 = sshll.u32 %s8563_s18, 3 }
 0x156   : > { %s520_s0 = scalar_lea.sflag [#allocation6], %s519_s5  ;;  %s523_s28 = scalar_lea.vmem [#allocation5], %s8577_s15 }
 0x157   : > { %8062 = dma.done.wait (%p8930_p6), %s520_s0, 256  }
 0x158   : > { %8064 = vsyncadd (%p8930_p6), %s520_s0, 4294967040  ;;  %s532_s13 = scalar_lea.vmem [#allocation7], %s8577_s15  ;;  %p8931_p12 = scmp.eq.s32.totalorder %s8212_s27, 0 }
 0x15a   : > { %8066 = dma.done.wait (%p8931_p12), [#allocation9], 16512   ;;  %p8932_p0 = pmov %p8931_p12 }
 0x15c   : > { %8068 = vsyncadd (%p8932_p0), [#allocation9], 4294950784  ;;  %p8933_p5 = pmov %p8932_p0 }
 0x15d   : > { %p8934_p9 = pmov %p8932_p0 }
 0x15e   : > { %8070 = dma.done.wait (%p8933_p5), [#allocation12], 65664  }
 0x15f   : > { %8072 = vsyncadd (%p8934_p9), [#allocation12], 4294901632  ;;  %p8935_p7 = pmov %p8932_p0 }
 0x160   : > { %p8936_p8 = pmov %p8932_p0 }
 0x161   : > { %8074 = dma.done.wait (%p8935_p7), [#allocation15], 8208  }
 0x162   : > { %8076 = vsyncadd (%p8936_p8), [#allocation15], 4294959088  ;;  %p8937_p11 = pmov %p8932_p0 }
 0x163   : > { %p8938_p1 = pmov %p8932_p0 }
 0x164   : > { %8078 = dma.done.wait (%p8937_p11), [#allocation18], 2080  }
 0x165   : > { %8080 = vsyncadd (%p8938_p1), [#allocation18], 4294965216  ;;  %v625_v0 = vld [vmem:[#allocation8] sm:$0xff]  ;;  %v626_v17 = vld [vmem:[#allocation8 + $0x8] sm:$0xff]  ;;  %s619_s14 = scalar_lea.vmem [#allocation21], %s8577_s15  ;;  %s7273_s26 = sshll.u32 %s8212_s27, 7 }
 0x166   : > { %v629_v1 = vld [vmem:[#allocation8 + $0x20] sm:$0xff]  ;;  %v630_v18 = vld [vmem:[#allocation8 + $0x28] sm:$0xff]  ;;  %s6294_s21 = sshll.u32 %s619_s14, 4  ;;  %s8939_s3 = sld [smem:[#allocation44_spill]]  ;;  %s6295_s21 = int_to_ptr.vmem [resolvable:$true] %s6294_s21 }
 0x167   : > { %v633_v2 = vld [vmem:[#allocation8 + $0x40] sm:$0xff]  ;;  %v6548_v3 = vcombine.high %v625_v0, %v629_v1  ;;  %v6547_v4 = vcombine.low %v625_v0, %v629_v1  ;;  %v622_v19 = vld [vmem:[%s8569_s23 + $0x8] sm:$0xff]  ;;  %v6550_v21 = vcombine.high %v626_v17, %v630_v18  ;;  %v6549_v22 = vcombine.low %v626_v17, %v630_v18  ;;  %s6267_s30 = scalar_lea.sflag [#allocation22], %s8563_s18  ;;  %s7985_s7 = scalar_lea.vmem %s6295_s21, 128 }
 0x168   : > { %v637_v5 = vld [vmem:[#allocation8 + $0x60] sm:$0xff]  ;;  %v8602_v23 = vpack.c.bf16 %v622_v19, %v622_v19  ;;  %v634_v24 = vld [vmem:[#allocation8 + $0x48] sm:$0xff]  ;;  %p7986_p13 = scmp.ne.s32.totalorder %s6295_s21, %s7985_s7  ;;  %p8940_p2 = scmp.ne.s32.totalorder %s8913_s16, 0 }
 0x169   : > { %v6556_v6 = vcombine.high %v633_v2, %v637_v5  ;;  %v641_v7 = vld [vmem:[#allocation8 + $0x80] sm:$0xff]  ;;  %1435 = vmatprep.subr.bf16.mxu0 %v6548_v3  ;;  %v6555_v9 = vcombine.low %v633_v2, %v637_v5  ;;  %v638_v25 = vld [vmem:[#allocation8 + $0x68] sm:$0xff]  ;;  %1476 = vmatprep.subr.bf16.mxu1 %v6550_v21  ;;  %s8124_s20 = smov [#allocation21]  }
 0x16a   : > { %v645_v8 = vld [vmem:[#allocation8 + $0xa0] sm:$0xff]  ;;  %1436 = vmatpush1.bf16.msra.mxu0 %v6547_v4  ;;  %v6558_v27 = vcombine.high %v634_v24, %v638_v25  ;;  %v642_v28 = vld [vmem:[#allocation8 + $0x88] sm:$0xff]  ;;  %1467 = vmatprep.mubr.bf16.mxu0 %v8602_v23  ;;  %v6557_v32 = vcombine.low %v634_v24, %v638_v25  ;;  %p7987_p3 = pnand %p7986_p13, %p8940_p2  ;;  %s7989_s17 = sshll.u32 %s8124_s20, 4  ;;  %s7990_s17 = int_to_ptr.vmem [resolvable:$false] %s7989_s17 }
 0x16b   : > { %1437 = vmatprep.subr.bf16.mxu0 %v6556_v6  ;;  %v6564_v10 = vcombine.high %v641_v7, %v645_v8  ;;  %v649_v11 = vld [vmem:[#allocation8 + $0xc0] sm:$0xff]  ;;  %v6563_v13 = vcombine.low %v641_v7, %v645_v8  ;;  %v646_v29 = vld [vmem:[#allocation8 + $0xa8] sm:$0xff]  ;;  %1477 = vmatpush1.bf16.msra.mxu1 %v6549_v22  ;;  %s7991_s25 = scalar_lea.vmem %s7990_s17, 256  ;;  %p7992_p4 = scmp.lt.s32.totalorder %s6295_s21, %s7990_s17 }
 0x16c   : > { %v653_v12 = vld [vmem:[#allocation8 + $0xe0] sm:$0xff]  ;;  %1508 = vmatprep.mubr.bf16.mxu1 %v8602_v23  ;;  %1478 = vmatprep.subr.bf16.mxu1 %v6558_v27  ;;  %v6566_v34 = vcombine.high %v642_v28, %v646_v29  ;;  %v650_v36 = vld [vmem:[#allocation8 + $0xc8] sm:$0xff]  ;;  %v6565_v40 = vcombine.low %v642_v28, %v646_v29  ;;  %s8785_s11 = scalar_lea.hbm %s8939_s3, %s7273_s26  ;;  %p7988_p10 = pneg %p7987_p3 }
 0x16d   : > { %v6572_v14 = vcombine.high %v649_v11, %v653_v12  ;;  %v657_v15 = vld [vmem:[#allocation8 + $0x100] sm:$0xff]  ;;  %v6571_v20 = vcombine.low %v649_v11, %v653_v12  ;;  %v654_v37 = vld [vmem:[#allocation8 + $0xe8] sm:$0xff]  ;;  %p7993_p6 = scmp.lt.s32.totalorder %s7991_s25, %s7985_s7 }
 0x16e   : > { %1438 = vmatpush1.bf16.msra.mxu0 %v6555_v9  ;;  %v661_v16 = vld [vmem:[#allocation8 + $0x120] sm:$0xff]  ;;  %v6574_v42 = vcombine.high %v650_v36, %v654_v37  ;;  %v658_v44 = vld [vmem:[#allocation8 + $0x108] sm:$0xff]  ;;  %v6573_v48 = vcombine.low %v650_v36, %v654_v37 }
 0x16f   : > { %1439 = vmatprep.subr.bf16.mxu0 %v6564_v10  ;;  %v6580_v26 = vcombine.high %v657_v15, %v661_v16  ;;  %v665_v30 = vld [vmem:[#allocation8 + $0x140] sm:$0xff]  ;;  %v6579_v33 = vcombine.low %v657_v15, %v661_v16  ;;  %1479 = vmatpush1.bf16.msra.mxu1 %v6557_v32  ;;  %v662_v45 = vld [vmem:[#allocation8 + $0x128] sm:$0xff]  ;;  %p7994_p12 = por %p7993_p6, %p7992_p4 }
 0x170   : > { %v669_v31 = vld [vmem:[#allocation8 + $0x160] sm:$0xff]  ;;  %1480 = vmatprep.subr.bf16.mxu1 %v6566_v34  ;;  %v6582_v50 = vcombine.high %v658_v44, %v662_v45  ;;  %v666_v52 = vld [vmem:[#allocation8 + $0x148] sm:$0xff]  ;;  %v6581_v56 = vcombine.low %v658_v44, %v662_v45 }
 0x171   : > { %v6588_v35 = vcombine.high %v665_v30, %v669_v31  ;;  %v673_v38 = vld [vmem:[#allocation8 + $0x180] sm:$0xff]  ;;  %v6587_v41 = vcombine.low %v665_v30, %v669_v31  ;;  %v670_v53 = vld [vmem:[#allocation8 + $0x168] sm:$0xff]  ;;  %p7995_p0 = pnand %p7994_p12, %p7988_p10 }
 0x172   : > { %1440 = vmatpush1.bf16.msra.mxu0 %v6563_v13  ;;  %v677_v39 = vld [vmem:[#allocation8 + $0x1a0] sm:$0xff]  ;;  %v6590_v58 = vcombine.high %v666_v52, %v670_v53  ;;  %v674_v60 = vld [vmem:[#allocation8 + $0x188] sm:$0xff]  ;;  %v6589_v0 = vcombine.low %v666_v52, %v670_v53 }
 0x173   : > { %1441 = vmatprep.subr.bf16.mxu0 %v6572_v14  ;;  %v6596_v43 = vcombine.high %v673_v38, %v677_v39  ;;  %v681_v46 = vld [vmem:[#allocation8 + $0x1c0] sm:$0xff]  ;;  %1481 = vmatpush1.bf16.msra.mxu1 %v6565_v40  ;;  %v6595_v49 = vcombine.low %v673_v38, %v677_v39  ;;  %v678_v61 = vld [vmem:[#allocation8 + $0x1a8] sm:$0xff] }
 0x174   : > { %v685_v47 = vld [vmem:[#allocation8 + $0x1e0] sm:$0xff]  ;;  %1482 = vmatprep.subr.bf16.mxu1 %v6574_v42  ;;  %v6598_v2 = vcombine.high %v674_v60, %v678_v61  ;;  %v682_v4 = vld [vmem:[#allocation8 + $0x1c8] sm:$0xff]  ;;  %v6597_v8 = vcombine.low %v674_v60, %v678_v61 }
 0x175   : > { %v6604_v51 = vcombine.high %v681_v46, %v685_v47  ;;  %v689_v54 = vld [vmem:[#allocation8 + $0x200] sm:$0xff]  ;;  %v6603_v57 = vcombine.low %v681_v46, %v685_v47  ;;  %v686_v5 = vld [vmem:[#allocation8 + $0x1e8] sm:$0xff] }
 0x176   : > { %1442 = vmatpush1.bf16.msra.mxu0 %v6571_v20  ;;  %v693_v55 = vld [vmem:[#allocation8 + $0x220] sm:$0xff]  ;;  %v6606_v10 = vcombine.high %v682_v4, %v686_v5  ;;  %v690_v12 = vld [vmem:[#allocation8 + $0x208] sm:$0xff]  ;;  %v6605_v16 = vcombine.low %v682_v4, %v686_v5 }
 0x177   : > { %1443 = vmatprep.subr.bf16.mxu0 %v6580_v26  ;;  %1483 = vmatpush1.bf16.msra.mxu1 %v6573_v48  ;;  %v6612_v59 = vcombine.high %v689_v54, %v693_v55  ;;  %v697_v62 = vld [vmem:[#allocation8 + $0x240] sm:$0xff]  ;;  %v6611_v1 = vcombine.low %v689_v54, %v693_v55  ;;  %v694_v13 = vld [vmem:[#allocation8 + $0x228] sm:$0xff]  ;;  %v627_v55 = vld [vmem:[#allocation8 + $0x10] sm:$0xff] }
 0x178   : > { %1484 = vmatprep.subr.bf16.mxu1 %v6582_v50  ;;  %v701_v63 = vld [vmem:[#allocation8 + $0x260] sm:$0xff]  ;;  %v6614_v18 = vcombine.high %v690_v12, %v694_v13  ;;  %v698_v20 = vld [vmem:[#allocation8 + $0x248] sm:$0xff]  ;;  %v6613_v25 = vcombine.low %v690_v12, %v694_v13  ;;  %v628_v12 = vld [vmem:[#allocation8 + $0x18] sm:$0xff] }
 0x179   : > { %v6620_v3 = vcombine.high %v697_v62, %v701_v63  ;;  %v705_v6 = vld [vmem:[#allocation8 + $0x280] sm:$0xff]  ;;  %v6619_v9 = vcombine.low %v697_v62, %v701_v63  ;;  %v702_v21 = vld [vmem:[#allocation8 + $0x268] sm:$0xff]  ;;  %v635_v63 = vld [vmem:[#allocation8 + $0x50] sm:$0xff] }
 0x17a   : > { %1444 = vmatpush1.bf16.msra.mxu0 %v6579_v33  ;;  %v709_v7 = vld [vmem:[#allocation8 + $0x2a0] sm:$0xff]  ;;  %v6622_v27 = vcombine.high %v698_v20, %v702_v21  ;;  %v706_v29 = vld [vmem:[#allocation8 + $0x288] sm:$0xff]  ;;  %v6621_v33 = vcombine.low %v698_v20, %v702_v21  ;;  %v632_v13 = vld [vmem:[#allocation8 + $0x38] sm:$0xff] }
 0x17b   : > { %1445 = vmatprep.subr.bf16.mxu0 %v6588_v35  ;;  %1485 = vmatpush1.bf16.msra.mxu1 %v6581_v56  ;;  %v6628_v11 = vcombine.high %v705_v6, %v709_v7  ;;  %v713_v14 = vld [vmem:[#allocation8 + $0x2c0] sm:$0xff]  ;;  %v6627_v17 = vcombine.low %v705_v6, %v709_v7  ;;  %v710_v30 = vld [vmem:[#allocation8 + $0x2a8] sm:$0xff]  ;;  %v631_v56 = vld [vmem:[#allocation8 + $0x30] sm:$0xff] }
 0x17c   : > { %1486 = vmatprep.subr.bf16.mxu1 %v6590_v58  ;;  %v717_v15 = vld [vmem:[#allocation8 + $0x2e0] sm:$0xff]  ;;  %v6630_v35 = vcombine.high %v706_v29, %v710_v30  ;;  %v714_v37 = vld [vmem:[#allocation8 + $0x2c8] sm:$0xff]  ;;  %v6551_v7 = vcombine.low %v627_v55, %v631_v56  ;;  %v636_v20 = vld [vmem:[#allocation8 + $0x58] sm:$0xff] }
 0x17d   : > { %v6636_v19 = vcombine.high %v713_v14, %v717_v15  ;;  %v721_v22 = vld [vmem:[#allocation8 + $0x300] sm:$0xff]  ;;  %v6635_v26 = vcombine.low %v713_v14, %v717_v15  ;;  %v718_v38 = vld [vmem:[#allocation8 + $0x2e8] sm:$0xff]  ;;  %v640_v21 = vld [vmem:[#allocation8 + $0x78] sm:$0xff] }
 0x17e   : > { %1446 = vmatpush1.bf16.msra.mxu0 %v6587_v41  ;;  %v725_v24 = vld [vmem:[#allocation8 + $0x320] sm:$0xff]  ;;  %v6629_v41 = vcombine.low %v706_v29, %v710_v30  ;;  %v722_v45 = vld [vmem:[#allocation8 + $0x308] sm:$0xff]  ;;  %v644_v29 = vld [vmem:[#allocation8 + $0x98] sm:$0xff] }
 0x17f   : > { %1447 = vmatprep.subr.bf16.mxu0 %v6596_v43  ;;  %1487 = vmatpush1.bf16.msra.mxu1 %v6589_v0  ;;  %v6644_v28 = vcombine.high %v721_v22, %v725_v24  ;;  %v729_v31 = vld [vmem:[#allocation8 + $0x340] sm:$0xff]  ;;  %v6643_v34 = vcombine.low %v721_v22, %v725_v24  ;;  %v6638_v43 = vcombine.high %v714_v37, %v718_v38  ;;  %v726_v46 = vld [vmem:[#allocation8 + $0x328] sm:$0xff]  ;;  %v639_v0 = vld [vmem:[#allocation8 + $0x70] sm:$0xff] }
 0x180   : > { %1488 = vmatprep.subr.bf16.mxu1 %v6598_v2  ;;  %v733_v32 = vld [vmem:[#allocation8 + $0x360] sm:$0xff]  ;;  %v730_v53 = vld [vmem:[#allocation8 + $0x348] sm:$0xff]  ;;  %v6645_v58 = vcombine.low %v722_v45, %v726_v46  ;;  %v6559_v15 = vcombine.low %v635_v63, %v639_v0  ;;  %v659_v24 = vld [vmem:[#allocation8 + $0x110] sm:$0xff] }
 0x181   : > { %v6652_v36 = vcombine.high %v729_v31, %v733_v32  ;;  %v737_v39 = vld [vmem:[#allocation8 + $0x380] sm:$0xff]  ;;  %v6651_v42 = vcombine.low %v729_v31, %v733_v32  ;;  %v734_v54 = vld [vmem:[#allocation8 + $0x368] sm:$0xff]  ;;  %v648_v30 = vld [vmem:[#allocation8 + $0xb8] sm:$0xff] }
 0x182   : > { %1448 = vmatpush1.bf16.msra.mxu0 %v6595_v49  ;;  %v741_v40 = vld [vmem:[#allocation8 + $0x3a0] sm:$0xff]  ;;  %v6637_v49 = vcombine.low %v714_v37, %v718_v38  ;;  %v742_v60 = vld [vmem:[#allocation8 + $0x3a8] sm:$0xff]  ;;  %v6654_v62 = vcombine.high %v730_v53, %v734_v54  ;;  %v667_v32 = vld [vmem:[#allocation8 + $0x150] sm:$0xff] }
 0x183   : > { %1449 = vmatprep.subr.bf16.mxu0 %v6604_v51  ;;  %1489 = vmatpush1.bf16.msra.mxu1 %v6597_v8  ;;  %v6660_v44 = vcombine.high %v737_v39, %v741_v40  ;;  %v745_v47 = vld [vmem:[#allocation8 + $0x3c0] sm:$0xff]  ;;  %v6659_v50 = vcombine.low %v737_v39, %v741_v40  ;;  %v6646_v51 = vcombine.high %v722_v45, %v726_v46  ;;  %v746_v4 = vld [vmem:[#allocation8 + $0x3c8] sm:$0xff]  ;;  %v643_v8 = vld [vmem:[#allocation8 + $0x90] sm:$0xff] }
 0x184   : > { %1490 = vmatprep.subr.bf16.mxu1 %v6606_v10  ;;  %v749_v48 = vld [vmem:[#allocation8 + $0x3e0] sm:$0xff]  ;;  %v750_v5 = vld [vmem:[#allocation8 + $0x3e8] sm:$0xff]  ;;  %v6560_v10 = vcombine.high %v635_v63, %v639_v0  ;;  %v652_v37 = vld [vmem:[#allocation8 + $0xd8] sm:$0xff] }
 0x185   : > { %v6668_v52 = vcombine.high %v745_v47, %v749_v48  ;;  %v6667_v61 = vcombine.low %v745_v47, %v749_v48  ;;  %v6670_v14 = vcombine.high %v746_v4, %v750_v5  ;;  %v656_v38 = vld [vmem:[#allocation8 + $0xf8] sm:$0xff]  ;;  %v675_v40 = vld [vmem:[#allocation8 + $0x190] sm:$0xff] }
 0x186   : > { %1450 = vmatpush1.bf16.msra.mxu0 %v6603_v57  ;;  %v621_v57 = vld [vmem:[%s8569_s23] sm:$0xff]  ;;  %v660_v45 = vld [vmem:[#allocation8 + $0x118] sm:$0xff] }
 0x187   : > { %1451 = vmatprep.subr.bf16.mxu0 %v6612_v59  ;;  %1491 = vmatpush1.bf16.msra.mxu1 %v6605_v16  ;;  %v738_v59 = vld [vmem:[#allocation8 + $0x388] sm:$0xff]  ;;  %v8607_v2 = vpack.c.bf16 %v621_v57, %v621_v57  ;;  %v651_v16 = vld [vmem:[#allocation8 + $0xd0] sm:$0xff]  ;;  %v664_v46 = vld [vmem:[#allocation8 + $0x138] sm:$0xff] }
 0x188   : > { %1492 = vmatprep.subr.bf16.mxu1 %v6614_v18  ;;  %v6662_v6 = vcombine.high %v738_v59, %v742_v60  ;;  %v683_v48 = vld [vmem:[#allocation8 + $0x1d0] sm:$0xff]  ;;  %v6586_v57 = vcombine.high %v660_v45, %v664_v46 }
 0x189   : > { %v699_v63 = vld [vmem:[#allocation8 + $0x250] sm:$0xff] }
 0x18a   : > { %1452 = vmatpush1.bf16.msra.mxu0 %v6611_v1  ;;  %v6552_v1 = vcombine.high %v627_v55, %v631_v56  ;;  %v691_v55 = vld [vmem:[#allocation8 + $0x210] sm:$0xff] }
 0x18b   : > { %1453 = vmatprep.subr.bf16.mxu0 %v6620_v3  ;;  %1493 = vmatpush1.bf16.msra.mxu1 %v6613_v25  ;;  %v6653_v3 = vcombine.low %v730_v53, %v734_v54  ;;  %v663_v25 = vld [vmem:[#allocation8 + $0x130] sm:$0xff]  ;;  %v672_v53 = vld [vmem:[#allocation8 + $0x178] sm:$0xff] }
 0x18c   : > { %1494 = vmatprep.subr.bf16.mxu1 %v6622_v27  ;;  %v6583_v39 = vcombine.low %v659_v24, %v663_v25  ;;  %v695_v56 = vld [vmem:[#allocation8 + $0x230] sm:$0xff] }
 0x18d   : > { %v703_v0 = vld [vmem:[#allocation8 + $0x270] sm:$0xff] }
 0x18e   : > { %1454 = vmatpush1.bf16.msra.mxu0 %v6619_v9  ;;  %v647_v9 = vld [vmem:[#allocation8 + $0xb0] sm:$0xff] }
 0x18f   : > { %1455 = vmatprep.subr.bf16.mxu0 %v6628_v11  ;;  %1495 = vmatpush1.bf16.msra.mxu1 %v6621_v33  ;;  %v6661_v11 = vcombine.low %v738_v59, %v742_v60  ;;  %v6568_v18 = vcombine.high %v643_v8, %v647_v9  ;;  %v6567_v22 = vcombine.low %v643_v8, %v647_v9  ;;  %v671_v33 = vld [vmem:[#allocation8 + $0x170] sm:$0xff]  ;;  %v676_v60 = vld [vmem:[#allocation8 + $0x198] sm:$0xff] }
 0x190   : > { %1496 = vmatprep.subr.bf16.mxu1 %v6630_v35  ;;  %v6584_v35 = vcombine.high %v659_v24, %v663_v25  ;;  %v6591_v47 = vcombine.low %v667_v32, %v671_v33  ;;  %v6585_v59 = vcombine.low %v660_v45, %v664_v46  ;;  %v707_v8 = vld [vmem:[#allocation8 + $0x290] sm:$0xff] }
 0x191   : > { %v711_v9 = vld [vmem:[#allocation8 + $0x2b0] sm:$0xff] }
 0x192   : > { %1456 = vmatpush1.bf16.msra.mxu0 %v6627_v17  ;;  %v655_v17 = vld [vmem:[#allocation8 + $0xf0] sm:$0xff]  ;;  %v6631_v24 = vcombine.low %v707_v8, %v711_v9 }
 0x193   : > { %1457 = vmatprep.subr.bf16.mxu0 %v6636_v19  ;;  %1497 = vmatpush1.bf16.msra.mxu1 %v6629_v41  ;;  %v6669_v19 = vcombine.low %v746_v4, %v750_v5  ;;  %v6576_v27 = vcombine.high %v651_v16, %v655_v17  ;;  %v6575_v31 = vcombine.low %v651_v16, %v655_v17  ;;  %v679_v41 = vld [vmem:[#allocation8 + $0x1b0] sm:$0xff]  ;;  %v684_v5 = vld [vmem:[#allocation8 + $0x1d8] sm:$0xff] }
 0x194   : > { %1498 = vmatprep.subr.bf16.mxu1 %v6638_v43  ;;  %v6592_v43 = vcombine.high %v667_v32, %v671_v33  ;;  %v6599_v54 = vcombine.low %v675_v40, %v679_v41  ;;  %v715_v16 = vld [vmem:[#allocation8 + $0x2d0] sm:$0xff] }
 0x195   : > { %v719_v17 = vld [vmem:[#allocation8 + $0x2f0] sm:$0xff] }
 0x196   : > { %1458 = vmatpush1.bf16.msra.mxu0 %v6635_v26  ;;  %v6554_v26 = vcombine.high %v628_v12, %v632_v13  ;;  %v723_v25 = vld [vmem:[#allocation8 + $0x310] sm:$0xff]  ;;  %v6639_v32 = vcombine.low %v715_v16, %v719_v17 }
 0x197   : > { %1459 = vmatprep.subr.bf16.mxu0 %v6644_v28  ;;  %1499 = vmatpush1.bf16.msra.mxu1 %v6637_v49  ;;  %v6553_v28 = vcombine.low %v628_v12, %v632_v13  ;;  %v687_v49 = vld [vmem:[#allocation8 + $0x1f0] sm:$0xff]  ;;  %v692_v13 = vld [vmem:[#allocation8 + $0x218] sm:$0xff] }
 0x198   : > { %1500 = vmatprep.subr.bf16.mxu1 %v6646_v51  ;;  %v6577_v51 = vcombine.low %v652_v37, %v656_v38 }
 0x19a   : > { %1460 = vmatpush1.bf16.msra.mxu0 %v6643_v34  ;;  %v6562_v34 = vcombine.high %v636_v20, %v640_v21 }
 0x19b   : > { %1461 = vmatprep.subr.bf16.mxu0 %v6652_v36  ;;  %1501 = vmatpush1.bf16.msra.mxu1 %v6645_v58  ;;  %v6561_v36 = vcombine.low %v636_v20, %v640_v21  ;;  %v6608_v58 = vcombine.high %v683_v48, %v687_v49  ;;  %v700_v21 = vld [vmem:[#allocation8 + $0x258] sm:$0xff] }
 0x19c   : > { %1502 = vmatprep.subr.bf16.mxu1 %v6654_v62  ;;  %v6607_v62 = vcombine.low %v683_v48, %v687_v49  ;;  %v724_v49 = vld [vmem:[#allocation8 + $0x318] sm:$0xff] }
 0x19e   : > { %1462 = vmatpush1.bf16.msra.mxu0 %v6651_v42  ;;  %v6570_v42 = vcombine.high %v644_v29, %v648_v30 }
 0x19f   : > { %1463 = vmatprep.subr.bf16.mxu0 %v6660_v44  ;;  %1503 = vmatpush1.bf16.msra.mxu1 %v6653_v3  ;;  %v6569_v44 = vcombine.low %v644_v29, %v648_v30  ;;  %v6616_v3 = vcombine.high %v691_v55, %v695_v56  ;;  %v708_v30 = vld [vmem:[#allocation8 + $0x298] sm:$0xff] }
 0x1a0   : > { %1504 = vmatprep.subr.bf16.mxu1 %v6662_v6  ;;  %v688_v6 = vld [vmem:[#allocation8 + $0x1f8] sm:$0xff] }
 0x1a1   : > { %v6609_v20 = vcombine.low %v684_v5, %v688_v6 }
 0x1a2   : > { %1464 = vmatpush1.bf16.msra.mxu0 %v6659_v50  ;;  %v6578_v50 = vcombine.high %v652_v37, %v656_v38 }
 0x1a3   : > { %1465 = vmatprep.subr.bf16.mxu0 %v6668_v52  ;;  %1505 = vmatpush1.bf16.msra.mxu1 %v6661_v11  ;;  %v668_v52 = vld [vmem:[#allocation8 + $0x158] sm:$0xff]  ;;  %v6624_v11 = vcombine.high %v699_v63, %v703_v0 }
 0x1a4   : > { %1506 = vmatprep.subr.bf16.mxu1 %v6670_v14  ;;  %v6593_v4 = vcombine.low %v668_v52, %v672_v53  ;;  %v696_v14 = vld [vmem:[#allocation8 + $0x238] sm:$0xff] }
 0x1a5   : > { %v6617_v29 = vcombine.low %v692_v13, %v696_v14 }
 0x1a6   : > { %1466 = vmatpush1.bf16.msra.mxu0 %v6667_v61  ;;  %v680_v61 = vld [vmem:[#allocation8 + $0x1b8] sm:$0xff] }
 0x1a7   : > { %1517 = vmatprep.subr.bf16.mxu0 %v6552_v1  ;;  %1507 = vmatpush1.bf16.msra.mxu1 %v6669_v19  ;;  %v6594_v1 = vcombine.high %v668_v52, %v672_v53  ;;  %v6601_v12 = vcombine.low %v676_v60, %v680_v61  ;;  %v6632_v19 = vcombine.high %v707_v8, %v711_v9  ;;  %v748_v8 = vld [vmem:[#allocation8 + $0x3d8] sm:$0xff] }
 0x1a8   : > { %1558 = vmatprep.subr.bf16.mxu1 %v6554_v26  ;;  %v727_v26 = vld [vmem:[#allocation8 + $0x330] sm:$0xff]  ;;  %v752_v9 = vld [vmem:[#allocation8 + $0x3f8] sm:$0xff] }
 0x1a9   : > { %1468 = vmatmul.mubr.bf16.vlgmr.msra.gmra.mrb[0].mxu0 %v8607_v2  ;;  %v6647_v38 = vcombine.low %v723_v25, %v727_v26 }
 0x1aa   : > { %1518 = vmatpush1.bf16.msra.mxu0 %v6551_v7  ;;  %1549 = vmatprep.mubr.bf16.mxu0 %v8602_v23  ;;  %v6615_v7 = vcombine.low %v691_v55, %v695_v56  ;;  %v732_v56 = vld [vmem:[#allocation8 + $0x358] sm:$0xff] }
 0x1ab   : > { %1519 = vmatprep.subr.bf16.mxu0 %v6560_v10  ;;  %1509 = vmatmul.mubr.bf16.vlgmr.msra.gmra.mrb[0].mxu1 %v8607_v2  ;;  %v6602_v10 = vcombine.high %v676_v60, %v680_v61 }
 0x1ac   : > { %1559 = vmatpush1.bf16.msra.mxu1 %v6553_v28  ;;  %1590 = vmatprep.mubr.bf16.mxu1 %v8602_v23  ;;  %v6600_v23 = vcombine.high %v675_v40, %v679_v41  ;;  %v6640_v28 = vcombine.high %v715_v16, %v719_v17  ;;  %v716_v41 = vld [vmem:[#allocation8 + $0x2d8] sm:$0xff]  ;;  %v1616_v16 = vld [vmem:[#allocation11 + $0x8] sm:$0xff] }
 0x1ad   : > { %1560 = vmatprep.subr.bf16.mxu1 %v6562_v34  ;;  %v6648_v34 = vcombine.high %v723_v25, %v727_v26  ;;  %v1620_v17 = vld [vmem:[#allocation11 + $0x28] sm:$0xff] }
 0x1ae   : > { %1520 = vmatpush1.bf16.msra.mxu0 %v6559_v15  ;;  %v6623_v15 = vcombine.low %v699_v63, %v703_v0  ;;  %v740_v63 = vld [vmem:[#allocation8 + $0x398] sm:$0xff]  ;;  %v1624_v25 = vld [vmem:[#allocation11 + $0x48] sm:$0xff] }
 0x1af   : > { %1521 = vmatprep.subr.bf16.mxu0 %v6568_v18  ;;  %v6610_v18 = vcombine.high %v684_v5, %v688_v6  ;;  %v744_v0 = vld [vmem:[#allocation8 + $0x3b8] sm:$0xff]  ;;  %v1628_v26 = vld [vmem:[#allocation11 + $0x68] sm:$0xff] }
 0x1b0   : > { %1561 = vmatpush1.bf16.msra.mxu1 %v6561_v36  ;;  %v735_v36 = vld [vmem:[#allocation8 + $0x370] sm:$0xff]  ;;  %v6666_v6 = vcombine.high %v740_v63, %v744_v0 }
 0x1b1   : > { %1562 = vmatprep.subr.bf16.mxu1 %v6570_v42  ;;  %v720_v42 = vld [vmem:[#allocation8 + $0x2f8] sm:$0xff] }
 0x1b2   : > { %1522 = vmatpush1.bf16.msra.mxu0 %v6567_v22  ;;  %v704_v22 = vld [vmem:[#allocation8 + $0x278] sm:$0xff]  ;;  %v6641_v52 = vcombine.low %v716_v41, %v720_v42 }
 0x1b3   : > { %1523 = vmatprep.subr.bf16.mxu0 %v6576_v27  ;;  %v6618_v27 = vcombine.high %v692_v13, %v696_v14  ;;  %v6626_v33 = vcombine.high %v700_v21, %v704_v22  ;;  %v6625_v37 = vcombine.low %v700_v21, %v704_v22  ;;  %v6665_v13 = vcombine.low %v740_v63, %v744_v0  ;;  %v8619_v63 = vld [vmem:[#allocation11 + $0x408] sm:$0xff] }
 0x1b4   : > { %1563 = vmatpush1.bf16.msra.mxu1 %v6569_v44  ;;  %v743_v44 = vld [vmem:[#allocation8 + $0x3b0] sm:$0xff]  ;;  %v6674_v14 = vcombine.high %v748_v8, %v752_v9  ;;  %v6673_v21 = vcombine.low %v748_v8, %v752_v9  ;;  %v6678_v22 = vcombine.high %v1616_v16, %v1620_v17  ;;  %v1687_v9 = vld [vmem:[#allocation11 + $0x240] sm:$0xff] }
 0x1b5   : > { %1564 = vmatprep.subr.bf16.mxu1 %v6578_v50  ;;  %v728_v50 = vld [vmem:[#allocation8 + $0x338] sm:$0xff] }
 0x1b6   : > { %1524 = vmatpush1.bf16.msra.mxu0 %v6575_v31  ;;  %v712_v31 = vld [vmem:[#allocation8 + $0x2b8] sm:$0xff]  ;;  %v6649_v60 = vcombine.low %v724_v49, %v728_v50 }
 0x1b7   : > { %1525 = vmatprep.subr.bf16.mxu0 %v6584_v35  ;;  %v731_v35 = vld [vmem:[#allocation8 + $0x350] sm:$0xff]  ;;  %v6633_v45 = vcombine.low %v708_v30, %v712_v31 }
 0x1b8   : > { %1565 = vmatpush1.bf16.msra.mxu1 %v6577_v51  ;;  %v6656_v40 = vcombine.high %v731_v35, %v735_v36  ;;  %v6655_v46 = vcombine.low %v731_v35, %v735_v36  ;;  %v751_v51 = vld [vmem:[#allocation8 + $0x3f0] sm:$0xff]  ;;  %v1655_v36 = vld [vmem:[#allocation11 + $0x140] sm:$0xff] }
 0x1b9   : > { %1566 = vmatprep.subr.bf16.mxu1 %v6586_v57  ;;  %v736_v57 = vld [vmem:[#allocation8 + $0x378] sm:$0xff] }
 0x1ba   : > { %1526 = vmatpush1.bf16.msra.mxu0 %v6583_v39  ;;  %v6634_v39 = vcombine.high %v708_v30, %v712_v31  ;;  %v6657_v5 = vcombine.low %v732_v56, %v736_v57  ;;  %v6677_v30 = vcombine.low %v1616_v16, %v1620_v17  ;;  %v6686_v31 = vcombine.high %v1624_v25, %v1628_v26  ;;  %v1695_v17 = vld [vmem:[#allocation11 + $0x280] sm:$0xff] }
 0x1bb   : > { %1527 = vmatprep.subr.bf16.mxu0 %v6592_v43  ;;  %v739_v43 = vld [vmem:[#allocation8 + $0x390] sm:$0xff] }
 0x1bc   : > { %1567 = vmatpush1.bf16.msra.mxu1 %v6585_v59  ;;  %v6664_v48 = vcombine.high %v739_v43, %v743_v44  ;;  %v6663_v53 = vcombine.low %v739_v43, %v743_v44  ;;  %v1619_v59 = vld [vmem:[#allocation11 + $0x20] sm:$0xff] }
 0x1bd   : > { %1568 = vmatprep.subr.bf16.mxu1 %v6594_v1  ;;  %v1663_v44 = vld [vmem:[#allocation11 + $0x180] sm:$0xff] }
 0x1be   : > { %1528 = vmatpush1.bf16.msra.mxu0 %v6591_v47  ;;  %v6642_v47 = vcombine.high %v716_v41, %v720_v42  ;;  %v1640_v41 = vld [vmem:[#allocation11 + $0xc8] sm:$0xff] }
 0x1bf   : > { %1529 = vmatprep.subr.bf16.mxu0 %v6600_v23  ;;  %v747_v23 = vld [vmem:[#allocation8 + $0x3d0] sm:$0xff] }
 0x1c0   : > { %1569 = vmatpush1.bf16.msra.mxu1 %v6593_v4  ;;  %v6672_v55 = vcombine.high %v747_v23, %v751_v51  ;;  %v6671_v61 = vcombine.low %v747_v23, %v751_v51  ;;  %v1627_v4 = vld [vmem:[#allocation11 + $0x60] sm:$0xff]  ;;  %v1644_v42 = vld [vmem:[#allocation11 + $0xe8] sm:$0xff] }
 0x1c1   : > { %1570 = vmatprep.subr.bf16.mxu1 %v6602_v10  ;;  %v1671_v23 = vld [vmem:[#allocation11 + $0x1c0] sm:$0xff] }
 0x1c2   : > { %1530 = vmatpush1.bf16.msra.mxu0 %v6599_v54  ;;  %v6650_v54 = vcombine.high %v724_v49, %v728_v50  ;;  %v1652_v49 = vld [vmem:[#allocation11 + $0x128] sm:$0xff]  ;;  %v1675_v51 = vld [vmem:[#allocation11 + $0x1e0] sm:$0xff] }
 0x1c3   : > { %1531 = vmatprep.subr.bf16.mxu0 %v6608_v58  ;;  %v1615_v58 = vld [vmem:[#allocation11] sm:$0xff] }
 0x1c4   : > { %1571 = vmatpush1.bf16.msra.mxu1 %v6601_v12  ;;  %v6676_v1 = vcombine.high %v1615_v58, %v1619_v59  ;;  %v1635_v12 = vld [vmem:[#allocation11 + $0xa0] sm:$0xff] }
 0x1c5   : > { %1572 = vmatprep.subr.bf16.mxu1 %v6610_v18 }
 0x1c6   : > { %1532 = vmatpush1.bf16.msra.mxu0 %v6607_v62  ;;  %v6658_v62 = vcombine.high %v732_v56, %v736_v57  ;;  %v1660_v56 = vld [vmem:[#allocation11 + $0x168] sm:$0xff]  ;;  %v6732_v57 = vcombine.high %v1671_v23, %v1675_v51 }
 0x1c7   : > { %1533 = vmatprep.subr.bf16.mxu0 %v6616_v3  ;;  %v1623_v3 = vld [vmem:[#allocation11 + $0x40] sm:$0xff] }
 0x1c8   : > { %1573 = vmatpush1.bf16.msra.mxu1 %v6609_v20  ;;  %v6684_v10 = vcombine.high %v1623_v3, %v1627_v4  ;;  %v1643_v20 = vld [vmem:[#allocation11 + $0xe0] sm:$0xff] }
 0x1c9   : > { %1574 = vmatprep.subr.bf16.mxu1 %v6618_v27 }
 0x1ca   : > { %1534 = vmatpush1.bf16.msra.mxu0 %v6615_v7  ;;  %v6675_v7 = vcombine.low %v1615_v58, %v1619_v59  ;;  %v1679_v58 = vld [vmem:[#allocation11 + $0x200] sm:$0xff] }
 0x1cb   : > { %1535 = vmatprep.subr.bf16.mxu0 %v6624_v11  ;;  %v1631_v11 = vld [vmem:[#allocation11 + $0x80] sm:$0xff] }
 0x1cc   : > { %1575 = vmatpush1.bf16.msra.mxu1 %v6617_v29  ;;  %v6692_v18 = vcombine.high %v1631_v11, %v1635_v12  ;;  %v1651_v29 = vld [vmem:[#allocation11 + $0x120] sm:$0xff] }
 0x1cd   : > { %1576 = vmatprep.subr.bf16.mxu1 %v6626_v33  ;;  %v1632_v33 = vld [vmem:[#allocation11 + $0x88] sm:$0xff]  ;;  %v1683_v59 = vld [vmem:[#allocation11 + $0x220] sm:$0xff] }
 0x1ce   : > { %1536 = vmatpush1.bf16.msra.mxu0 %v6623_v15  ;;  %v6683_v15 = vcombine.low %v1623_v3, %v1627_v4  ;;  %v8621_v3 = vld [vmem:[#allocation11 + $0x428] sm:$0xff] }
 0x1cf   : > { %1537 = vmatprep.subr.bf16.mxu0 %v6632_v19  ;;  %v1639_v19 = vld [vmem:[#allocation11 + $0xc0] sm:$0xff]  ;;  %v1664_v4 = vld [vmem:[#allocation11 + $0x188] sm:$0xff]  ;;  %v6805_v8 = vcombine.low %v8619_v63, %v8621_v3 }
 0x1d0   : > { %1577 = vmatpush1.bf16.msra.mxu1 %v6625_v37  ;;  %v6700_v27 = vcombine.high %v1639_v19, %v1643_v20  ;;  %v1659_v37 = vld [vmem:[#allocation11 + $0x160] sm:$0xff] }
 0x1d1   : > { %1578 = vmatprep.subr.bf16.mxu1 %v6634_v39  ;;  %v6716_v43 = vcombine.high %v1655_v36, %v1659_v37 }
 0x1d2   : > { %1538 = vmatpush1.bf16.msra.mxu0 %v6631_v24  ;;  %v6691_v24 = vcombine.low %v1631_v11, %v1635_v12 }
 0x1d3   : > { %1539 = vmatprep.subr.bf16.mxu0 %v6640_v28  ;;  %v1647_v28 = vld [vmem:[#allocation11 + $0x100] sm:$0xff] }
 0x1d4   : > { %1579 = vmatpush1.bf16.msra.mxu1 %v6633_v45  ;;  %v6708_v35 = vcombine.high %v1647_v28, %v1651_v29  ;;  %v1667_v45 = vld [vmem:[#allocation11 + $0x1a0] sm:$0xff] }
 0x1d5   : > { %1580 = vmatprep.subr.bf16.mxu1 %v6642_v47  ;;  %v6702_v47 = vcombine.high %v1640_v41, %v1644_v42  ;;  %v6724_v50 = vcombine.high %v1663_v44, %v1667_v45 }
 0x1d6   : > { %1540 = vmatpush1.bf16.msra.mxu0 %v6639_v32  ;;  %v6699_v32 = vcombine.low %v1639_v19, %v1643_v20 }
 0x1d7   : > { %1541 = vmatprep.subr.bf16.mxu0 %v6648_v34  ;;  %v1636_v34 = vld [vmem:[#allocation11 + $0xa8] sm:$0xff] }
 0x1d8   : > { %1581 = vmatpush1.bf16.msra.mxu1 %v6641_v52  ;;  %v6694_v39 = vcombine.high %v1632_v33, %v1636_v34  ;;  %v6701_v52 = vcombine.low %v1640_v41, %v1644_v42  ;;  %v1719_v42 = vld [vmem:[#allocation11 + $0x340] sm:$0xff] }
 0x1d9   : > { %1582 = vmatprep.subr.bf16.mxu1 %v6650_v54  ;;  %v6723_v54 = vcombine.low %v1663_v44, %v1667_v45 }
 0x1da   : > { %1542 = vmatpush1.bf16.msra.mxu0 %v6647_v38  ;;  %v6685_v38 = vcombine.low %v1624_v25, %v1628_v26  ;;  %v1703_v26 = vld [vmem:[#allocation11 + $0x2c0] sm:$0xff] }
 0x1db   : > { %1543 = vmatprep.subr.bf16.mxu0 %v6656_v40  ;;  %v6707_v40 = vcombine.low %v1647_v28, %v1651_v29 }
 0x1dc   : > { %1583 = vmatpush1.bf16.msra.mxu1 %v6649_v60 }
 0x1dd   : > { %1584 = vmatprep.subr.bf16.mxu1 %v6658_v62  ;;  %v8617_v62 = vld [vmem:[#allocation11 + $0x420] sm:$0xff] }
 0x1de   : > { %1544 = vmatpush1.bf16.msra.mxu0 %v6655_v46  ;;  %v6693_v46 = vcombine.low %v1632_v33, %v1636_v34  ;;  %v1711_v34 = vld [vmem:[#allocation11 + $0x300] sm:$0xff] }
 0x1df   : > { %1545 = vmatprep.subr.bf16.mxu0 %v6664_v48  ;;  %v1648_v48 = vld [vmem:[#allocation11 + $0x108] sm:$0xff] }
 0x1e0   : > { %1585 = vmatpush1.bf16.msra.mxu1 %v6657_v5  ;;  %v6709_v60 = vcombine.low %v1648_v48, %v1652_v49  ;;  %v1668_v5 = vld [vmem:[#allocation11 + $0x1a8] sm:$0xff] }
 0x1e1   : > { %1586 = vmatprep.subr.bf16.mxu1 %v6666_v6  ;;  %v6740_v6 = vcombine.high %v1679_v58, %v1683_v59  ;;  %v6726_v12 = vcombine.high %v1664_v4, %v1668_v5  ;;  %v6725_v19 = vcombine.low %v1664_v4, %v1668_v5 }
 0x1e2   : > { %1546 = vmatpush1.bf16.msra.mxu0 %v6663_v53  ;;  %v6710_v53 = vcombine.high %v1648_v48, %v1652_v49  ;;  %v1727_v49 = vld [vmem:[#allocation11 + $0x380] sm:$0xff] }
 0x1e3   : > { %1547 = vmatprep.subr.bf16.mxu0 %v6672_v55  ;;  %v1656_v55 = vld [vmem:[#allocation11 + $0x148] sm:$0xff] }
 0x1e4   : > { %1587 = vmatpush1.bf16.msra.mxu1 %v6665_v13  ;;  %v6718_v0 = vcombine.high %v1656_v55, %v1660_v56  ;;  %v6717_v11 = vcombine.low %v1656_v55, %v1660_v56  ;;  %v6739_v13 = vcombine.low %v1679_v58, %v1683_v59  ;;  %v1735_v56 = vld [vmem:[#allocation11 + $0x3c0] sm:$0xff] }
 0x1e5   : > { %1588 = vmatprep.subr.bf16.mxu1 %v6674_v14  ;;  %v1672_v14 = vld [vmem:[#allocation11 + $0x1c8] sm:$0xff] }
 0x1e6   : > { %1548 = vmatpush1.bf16.msra.mxu0 %v6671_v61  ;;  %v8615_v61 = vld [vmem:[#allocation11 + $0x400] sm:$0xff] }
 0x1e7   : > { %4729 = vmatprep.subr.bf16.mxu0 %v6676_v1  ;;  %v6731_v1 = vcombine.low %v1671_v23, %v1675_v51 }
 0x1e8   : > { %1589 = vmatpush1.bf16.msra.mxu1 %v6673_v21 }
 0x1e9   : > { %1550 = vmatmul.mubr.bf16.vlgmr.msra.gmra.mrb[4].mxu0 %v8607_v2  ;;  %4893 = vmatprep.subr.bf16.mxu1 %v6678_v22  ;;  %v1680_v22 = vld [vmem:[#allocation11 + $0x208] sm:$0xff] }
 0x1ea   : > { %4730 = vmatpush1.bf16.msra.mxu0 %v6675_v7  ;;  %v6803_v7 = vcombine.low %v8615_v61, %v8617_v62 }
 0x1eb   : > { %4731 = vmatprep.subr.bf16.mxu0 %v6684_v10  ;;  %1591 = vmatmul.mubr.bf16.vlgmr.msra.gmra.mrb[4].mxu1 %v8607_v2  ;;  %v6715_v2 = vcombine.low %v1655_v36, %v1659_v37  ;;  %v1691_v10 = vld [vmem:[#allocation11 + $0x260] sm:$0xff] }
 0x1ec   : > { %4894 = vmatpush1.bf16.msra.mxu1 %v6677_v30  ;;  %v6748_v16 = vcombine.high %v1687_v9, %v1691_v10  ;;  %v6747_v21 = vcombine.low %v1687_v9, %v1691_v10  ;;  %v1728_v10 = vld [vmem:[#allocation11 + $0x388] sm:$0xff] }
 0x1ed   : > { %4895 = vmatprep.subr.bf16.mxu1 %v6686_v31  ;;  %v1688_v31 = vld [vmem:[#allocation11 + $0x248] sm:$0xff] }
 0x1ee   : > { %4732 = vmatpush1.bf16.msra.mxu0 %v6683_v15  ;;  %v1676_v15 = vld [vmem:[#allocation11 + $0x1e8] sm:$0xff] }
 0x1ef   : > { %4733 = vmatprep.subr.bf16.mxu0 %v6692_v18  ;;  %v1699_v18 = vld [vmem:[#allocation11 + $0x2a0] sm:$0xff]  ;;  %v6734_v20 = vcombine.high %v1672_v14, %v1676_v15  ;;  %v6733_v28 = vcombine.low %v1672_v14, %v1676_v15  ;;  %v1736_v15 = vld [vmem:[#allocation11 + $0x3c8] sm:$0xff] }
 0x1f0   : > { %4896 = vmatpush1.bf16.msra.mxu1 %v6685_v38  ;;  %v6756_v25 = vcombine.high %v1695_v17, %v1699_v18  ;;  %v6755_v30 = vcombine.low %v1695_v17, %v1699_v18 }
 0x1f1   : > { %4897 = vmatprep.subr.bf16.mxu1 %v6694_v39  ;;  %v1696_v39 = vld [vmem:[#allocation11 + $0x288] sm:$0xff] }
 0x1f2   : > { %4734 = vmatpush1.bf16.msra.mxu0 %v6691_v24  ;;  %v1684_v24 = vld [vmem:[#allocation11 + $0x228] sm:$0xff] }
 0x1f3   : > { %4735 = vmatprep.subr.bf16.mxu0 %v6700_v27  ;;  %v1707_v27 = vld [vmem:[#allocation11 + $0x2e0] sm:$0xff]  ;;  %v6742_v29 = vcombine.high %v1680_v22, %v1684_v24  ;;  %v6741_v36 = vcombine.low %v1680_v22, %v1684_v24 }
 0x1f4   : > { %4898 = vmatpush1.bf16.msra.mxu1 %v6693_v46  ;;  %v6764_v33 = vcombine.high %v1703_v26, %v1707_v27  ;;  %v6763_v38 = vcombine.low %v1703_v26, %v1707_v27 }
 0x1f5   : > { %4899 = vmatprep.subr.bf16.mxu1 %v6702_v47  ;;  %v1704_v47 = vld [vmem:[#allocation11 + $0x2c8] sm:$0xff] }
 0x1f6   : > { %4736 = vmatpush1.bf16.msra.mxu0 %v6699_v32  ;;  %v1692_v32 = vld [vmem:[#allocation11 + $0x268] sm:$0xff] }
 0x1f7   : > { %4737 = vmatprep.subr.bf16.mxu0 %v6708_v35  ;;  %v1715_v35 = vld [vmem:[#allocation11 + $0x320] sm:$0xff]  ;;  %v6750_v37 = vcombine.high %v1688_v31, %v1692_v32  ;;  %v6749_v44 = vcombine.low %v1688_v31, %v1692_v32 }
 0x1f8   : > { %4900 = vmatpush1.bf16.msra.mxu1 %v6701_v52  ;;  %v6772_v41 = vcombine.high %v1711_v34, %v1715_v35  ;;  %v6771_v46 = vcombine.low %v1711_v34, %v1715_v35 }
 0x1f9   : > { %4901 = vmatprep.subr.bf16.mxu1 %v6710_v53  ;;  %v1712_v53 = vld [vmem:[#allocation11 + $0x308] sm:$0xff] }
 0x1fa   : > { %4738 = vmatpush1.bf16.msra.mxu0 %v6707_v40  ;;  %v1700_v40 = vld [vmem:[#allocation11 + $0x2a8] sm:$0xff] }
 0x1fb   : > { %4739 = vmatprep.subr.bf16.mxu0 %v6716_v43  ;;  %v1723_v43 = vld [vmem:[#allocation11 + $0x360] sm:$0xff]  ;;  %v6758_v45 = vcombine.high %v1696_v39, %v1700_v40  ;;  %v6757_v23 = vcombine.low %v1696_v39, %v1700_v40  ;;  %v1752_v39 = vld [vmem:[#allocation11 + $0x448] sm:$0xff] }
 0x1fc   : > { %4902 = vmatpush1.bf16.msra.mxu1 %v6709_v60  ;;  %v6780_v48 = vcombine.high %v1719_v42, %v1723_v43  ;;  %v6779_v52 = vcombine.low %v1719_v42, %v1723_v43  ;;  %v1756_v40 = vld [vmem:[#allocation11 + $0x468] sm:$0xff] }
 0x1fd   : > { %4903 = vmatprep.subr.bf16.mxu1 %v6718_v0  ;;  %v1720_v0 = vld [vmem:[#allocation11 + $0x348] sm:$0xff] }
 0x1fe   : > { %4740 = vmatpush1.bf16.msra.mxu0 %v6715_v2  ;;  %v1708_v2 = vld [vmem:[#allocation11 + $0x2e8] sm:$0xff] }
 0x1ff   : > { %4741 = vmatprep.subr.bf16.mxu0 %v6724_v50  ;;  %v1731_v50 = vld [vmem:[#allocation11 + $0x3a0] sm:$0xff]  ;;  %v6766_v51 = vcombine.high %v1704_v47, %v1708_v2  ;;  %v6765_v58 = vcombine.low %v1704_v47, %v1708_v2  ;;  %v1760_v2 = vld [vmem:[#allocation11 + $0x488] sm:$0xff] }
 0x200   : > { %4904 = vmatpush1.bf16.msra.mxu1 %v6717_v11  ;;  %v6788_v55 = vcombine.high %v1727_v49, %v1731_v50  ;;  %v6787_v60 = vcombine.low %v1727_v49, %v1731_v50  ;;  %v1732_v11 = vld [vmem:[#allocation11 + $0x3a8] sm:$0xff]  ;;  %v1763_v47 = vld [vmem:[#allocation11 + $0x4a0] sm:$0xff] }
 0x201   : > { %4905 = vmatprep.subr.bf16.mxu1 %v6726_v12  ;;  %v6804_v12 = vcombine.high %v8615_v61, %v8617_v62  ;;  %v6790_v14 = vcombine.high %v1728_v10, %v1732_v11  ;;  %v6789_v17 = vcombine.low %v1728_v10, %v1732_v11 }
 0x202   : > { %4742 = vmatpush1.bf16.msra.mxu0 %v6723_v54  ;;  %v1716_v54 = vld [vmem:[#allocation11 + $0x328] sm:$0xff] }
 0x203   : > { %4743 = vmatprep.subr.bf16.mxu0 %v6732_v57  ;;  %v1739_v57 = vld [vmem:[#allocation11 + $0x3e0] sm:$0xff]  ;;  %v6774_v59 = vcombine.high %v1712_v53, %v1716_v54  ;;  %v6773_v5 = vcombine.low %v1712_v53, %v1716_v54 }
 0x204   : > { %4906 = vmatpush1.bf16.msra.mxu1 %v6725_v19  ;;  %v6796_v4 = vcombine.high %v1735_v56, %v1739_v57  ;;  %v6795_v9 = vcombine.low %v1735_v56, %v1739_v57  ;;  %v1767_v53 = vld [vmem:[#allocation11 + $0x4c0] sm:$0xff]  ;;  %v1768_v56 = vld [vmem:[#allocation11 + $0x4c8] sm:$0xff] }
 0x205   : > { %4907 = vmatprep.subr.bf16.mxu1 %v6734_v20  ;;  %v6806_v20 = vcombine.high %v8619_v63, %v8621_v3  ;;  %v1772_v57 = vld [vmem:[#allocation11 + $0x4e8] sm:$0xff] }
 0x206   : > { %4744 = vmatpush1.bf16.msra.mxu0 %v6731_v1  ;;  %v1724_v1 = vld [vmem:[#allocation11 + $0x368] sm:$0xff]  ;;  %v6829_v10 = vcombine.low %v1768_v56, %v1772_v57 }
 0x207   : > { %4745 = vmatprep.subr.bf16.mxu0 %v6740_v6  ;;  %v6782_v6 = vcombine.high %v1720_v0, %v1724_v1 }
 0x208   : > { %4908 = vmatpush1.bf16.msra.mxu1 %v6733_v28 }
 0x209   : > { %4909 = vmatprep.subr.bf16.mxu1 %v6742_v29 }
 0x20a   : > { %4746 = vmatpush1.bf16.msra.mxu0 %v6739_v13  ;;  %v6781_v13 = vcombine.low %v1720_v0, %v1724_v1  ;;  %v1779_v1 = vld [vmem:[#allocation11 + $0x520] sm:$0xff] }
 0x20b   : > { %4747 = vmatprep.subr.bf16.mxu0 %v6748_v16  ;;  %v1740_v16 = vld [vmem:[#allocation11 + $0x3e8] sm:$0xff] }
 0x20c   : > { %4910 = vmatpush1.bf16.msra.mxu1 %v6741_v36  ;;  %v6798_v18 = vcombine.high %v1736_v15, %v1740_v16  ;;  %v6797_v19 = vcombine.low %v1736_v15, %v1740_v16  ;;  %v1751_v36 = vld [vmem:[#allocation11 + $0x440] sm:$0xff]  ;;  %v1784_v15 = vld [vmem:[#allocation11 + $0x548] sm:$0xff] }
 0x20d   : > { %4911 = vmatprep.subr.bf16.mxu1 %v6750_v37  ;;  %v1788_v16 = vld [vmem:[#allocation11 + $0x568] sm:$0xff] }
 0x20e   : > { %4748 = vmatpush1.bf16.msra.mxu0 %v6747_v21  ;;  %v755_v21 = vlaneseq }
 0x20f   : > { %4749 = vmatprep.subr.bf16.mxu0 %v6756_v25  ;;  %v8636_v25 = vld [vmem:[#allocation10] sm:$0xff] }
 0x210   : > { %4912 = vmatpush1.bf16.msra.mxu1 %v6749_v44  ;;  %v8631_v22 = vshrl.u32 %v755_v21, 7  ;;  %v1791_v21 = vld [vmem:[#allocation11 + $0x580] sm:$0xff] }
 0x211   : > { %4913 = vmatprep.subr.bf16.mxu1 %v6758_v45  ;;  %v6814_v45 = vcombine.high %v1752_v39, %v1756_v40 }
 0x212   : > { %4750 = vmatpush1.bf16.msra.mxu0 %v6755_v30  ;;  %v8634_v24 = vsub.s32 0, %v8631_v22  ;;  %v8639_v26 = vsub.s32 1, %v8631_v22 }
 0x213   : > { %4751 = vmatprep.subr.bf16.mxu0 %v6764_v33 }
 0x214   : > { %4914 = vmatpush1.bf16.msra.mxu1 %v6757_v23  ;;  %v758_v27 = vrot.slane %v8636_v25, %v8634_v24  ;;  %v762_v28 = vrot.slane %v8636_v25, %v8639_v26  ;;  %v6813_v23 = vcombine.low %v1752_v39, %v1756_v40 }
 0x215   : > { %4915 = vmatprep.subr.bf16.mxu1 %v6766_v51 }
 0x216   : > { %4752 = vmatpush1.bf16.msra.mxu0 %v6763_v38  ;;  %v1755_v38 = vld [vmem:[#allocation11 + $0x460] sm:$0xff] }
 0x217   : > { %4753 = vmatprep.subr.bf16.mxu0 %v6772_v41  ;;  %v769_v41 = vsub.s32 3, %v8631_v22  ;;  %v6812_v44 = vcombine.high %v1751_v36, %v1755_v38  ;;  %v6811_v50 = vcombine.low %v1751_v36, %v1755_v38  ;;  %v1800_v36 = vld [vmem:[#allocation11 + $0x5c8] sm:$0xff] }
 0x218   : > { %4916 = vmatpush1.bf16.msra.mxu1 %v6765_v58 }
 0x219   : > { %4917 = vmatprep.subr.bf16.mxu1 %v6774_v59  ;;  %v770_v49 = vrot.slane %v8636_v25, %v769_v41 }
 0x21a   : > { %4754 = vmatpush1.bf16.msra.mxu0 %v6771_v46  ;;  %v1759_v46 = vld [vmem:[#allocation11 + $0x480] sm:$0xff] }
 0x21b   : > { %4755 = vmatprep.subr.bf16.mxu0 %v6780_v48  ;;  %v1764_v48 = vld [vmem:[#allocation11 + $0x4a8] sm:$0xff]  ;;  %v6820_v51 = vcombine.high %v1759_v46, %v1763_v47  ;;  %v6819_v62 = vcombine.low %v1759_v46, %v1763_v47  ;;  %v1811_v46 = vld [vmem:[#allocation11 + $0x620] sm:$0xff] }
 0x21c   : > { %4918 = vmatpush1.bf16.msra.mxu1 %v6773_v5  ;;  %v6821_v63 = vcombine.low %v1760_v2, %v1764_v48  ;;  %v1780_v5 = vld [vmem:[#allocation11 + $0x528] sm:$0xff] }
 0x21d   : > { %4919 = vmatprep.subr.bf16.mxu1 %v6782_v6  ;;  %v1808_v47 = vld [vmem:[#allocation11 + $0x608] sm:$0xff] }
 0x21e   : > { %4756 = vmatpush1.bf16.msra.mxu0 %v6779_v52  ;;  %v6822_v52 = vcombine.high %v1760_v2, %v1764_v48  ;;  %v1812_v2 = vld [vmem:[#allocation11 + $0x628] sm:$0xff] }
 0x21f   : > { %4757 = vmatprep.subr.bf16.mxu0 %v6788_v55  ;;  %v1771_v55 = vld [vmem:[#allocation11 + $0x4e0] sm:$0xff] }
 0x220   : > { %4920 = vmatpush1.bf16.msra.mxu1 %v6781_v13  ;;  %v1783_v13 = vld [vmem:[#allocation11 + $0x540] sm:$0xff] }
 0x221   : > { %4921 = vmatprep.subr.bf16.mxu1 %v6790_v14  ;;  %v1787_v14 = vld [vmem:[#allocation11 + $0x560] sm:$0xff] }
 0x222   : > { %4758 = vmatpush1.bf16.msra.mxu0 %v6787_v60  ;;  %v1775_v60 = vld [vmem:[#allocation11 + $0x500] sm:$0xff] }
 0x223   : > { %4759 = vmatprep.subr.bf16.mxu0 %v6796_v4  ;;  %v1776_v4 = vld [vmem:[#allocation11 + $0x508] sm:$0xff]  ;;  %v6836_v11 = vcombine.high %v1775_v60, %v1779_v1 }
 0x224   : > { %4922 = vmatpush1.bf16.msra.mxu1 %v6789_v17  ;;  %v6835_v17 = vcombine.low %v1775_v60, %v1779_v1  ;;  %v1831_v1 = vld [vmem:[#allocation11 + $0x6c0] sm:$0xff] }
 0x225   : > { %4923 = vmatprep.subr.bf16.mxu1 %v6798_v18  ;;  %v6837_v18 = vcombine.low %v1776_v4, %v1780_v5 }
 0x226   : > { %4760 = vmatpush1.bf16.msra.mxu0 %v6795_v9  ;;  %v6827_v9 = vcombine.low %v1767_v53, %v1771_v55 }
 0x227   : > { %4770 = vmatprep.subr.bf16.mxu0 %v6804_v12  ;;  %v6838_v12 = vcombine.high %v1776_v4, %v1780_v5  ;;  %v1835_v4 = vld [vmem:[#allocation11 + $0x6e0] sm:$0xff]  ;;  %v1832_v5 = vld [vmem:[#allocation11 + $0x6c8] sm:$0xff] }
 0x228   : > { %4924 = vmatpush1.bf16.msra.mxu1 %v6797_v19  ;;  %v6844_v19 = vcombine.high %v1783_v13, %v1787_v14 }
 0x229   : > { %4934 = vmatprep.subr.bf16.mxu1 %v6806_v20  ;;  %v6846_v20 = vcombine.high %v1784_v15, %v1788_v16 }
 0x27c   : > { %v1469_v29 = vpop.f32.mrb[0].mxu0 }
 0x27d   : > { %v1470_v30 = vadd.f32 %v1469_v29, %v758_v27  ;;  %v1471_v31 = vpop.f32.mrb[1].mxu0  ;;  %v1795_v27 = vld [vmem:[#allocation11 + $0x5a0] sm:$0xff]  ;;  %v1796_v29 = vld [vmem:[#allocation11 + $0x5a8] sm:$0xff] }
 0x27e   : > { %v1472_v32 = vadd.f32 %v1471_v31, %v762_v28  ;;  %v1473_v33 = vpop.f32.mrb[2].mxu0  ;;  %v8663_v54 = vpop.f32.mrb[0].mxu1  ;;  %v1792_v28 = vld [vmem:[#allocation11 + $0x588] sm:$0xff]  ;;  %v6845_v31 = vcombine.low %v1784_v15, %v1788_v16  ;;  %v6851_v38 = vcombine.low %v1791_v21, %v1795_v27  ;;  %v1843_v15 = vld [vmem:[#allocation11 + $0x720] sm:$0xff] }
 0x27f   : > { %v1599_v34 = vmax.f32 %v1470_v30, 0.0  ;;  %v1474_v35 = vpop.f32.mrb[3].mxu0  ;;  %v1512_v58 = vpop.f32.mrb[1].mxu1  ;;  %v6843_v30 = vcombine.low %v1783_v13, %v1787_v14  ;;  %v6854_v33 = vcombine.high %v1792_v28, %v1796_v29  ;;  %v6853_v39 = vcombine.low %v1792_v28, %v1796_v29  ;;  %v1839_v14 = vld [vmem:[#allocation11 + $0x700] sm:$0xff]  ;;  %v1840_v16 = vld [vmem:[#allocation11 + $0x708] sm:$0xff] }
 0x280   : > { %v1600_v37 = vmax.f32 %v1472_v32, 0.0  ;;  %v1513_v59 = vadd.f32 %v1512_v58, %v770_v49  ;;  %v1514_v61 = vpop.f32.mrb[2].mxu1  ;;  %v6852_v32 = vcombine.high %v1791_v21, %v1795_v27  ;;  %v1803_v35 = vld [vmem:[#allocation11 + $0x5e0] sm:$0xff]  ;;  %v1848_v29 = vld [vmem:[#allocation11 + $0x748] sm:$0xff] }
 0x281   : > { %v8648_v43 = vpack.c.bf16 %v1599_v34, %v1599_v34  ;;  %v1515_v3 = vpop.f32.mrb[3].mxu1  ;;  %v1799_v34 = vld [vmem:[#allocation11 + $0x5c0] sm:$0xff] }
 0x282   : > { %v8646_v42 = vpack.c.bf16 %v1600_v37, %v1600_v37  ;;  %v1602_v0 = vmax.f32 %v1513_v59, 0.0  ;;  %v1804_v37 = vld [vmem:[#allocation11 + $0x5e8] sm:$0xff]  ;;  %v6860_v40 = vcombine.high %v1799_v34, %v1803_v35  ;;  %v6859_v48 = vcombine.low %v1799_v34, %v1803_v35  ;;  %v1823_v61 = vld [vmem:[#allocation11 + $0x680] sm:$0xff] }
 0x283   : > { %v6861_v49 = vcombine.low %v1800_v36, %v1804_v37  ;;  %v1828_v3 = vld [vmem:[#allocation11 + $0x6a8] sm:$0xff]  ;;  %v1847_v27 = vld [vmem:[#allocation11 + $0x740] sm:$0xff] }
 0x284   : > { %4761 = vmatprep.mubr.bf16.mxu0 %v8646_v42  ;;  %4925 = vmatprep.mubr.bf16.mxu1 %v8646_v42  ;;  %v8665_v6 = vpack.c.bf16 %v1602_v0, %v1602_v0  ;;  %v1851_v28 = vld [vmem:[#allocation11 + $0x760] sm:$0xff] }
 0x285   : > { %4762 = vmatmul.mubr.bf16.vlgmr.msra.gmra.mrb[8].mxu0 %v8648_v43  ;;  %4926 = vmatmul.mubr.bf16.vlgmr.msra.gmra.mrb[8].mxu1 %v8648_v43  ;;  %v6908_v34 = vcombine.high %v1847_v27, %v1851_v28 }
 0x286   : > { %4771 = vmatpush1.bf16.msra.mxu0 %v6803_v7  ;;  %4935 = vmatpush1.bf16.msra.mxu1 %v6805_v8  ;;  %v6828_v7 = vcombine.high %v1767_v53, %v1771_v55  ;;  %v6830_v8 = vcombine.high %v1768_v56, %v1772_v57  ;;  %v1816_v53 = vld [vmem:[#allocation11 + $0x648] sm:$0xff]  ;;  %v6869_v57 = vcombine.low %v1808_v47, %v1812_v2 }
 0x287   : > { %4772 = vmatprep.subr.bf16.mxu0 %v6812_v44  ;;  %4936 = vmatprep.subr.bf16.mxu1 %v6814_v45  ;;  %v6862_v44 = vcombine.high %v1800_v36, %v1804_v37  ;;  %v1807_v45 = vld [vmem:[#allocation11 + $0x600] sm:$0xff]  ;;  %v1820_v55 = vld [vmem:[#allocation11 + $0x668] sm:$0xff] }
 0x288   : > { %4802 = vmatprep.mubr.bf16.mxu0 %v8665_v6  ;;  %4966 = vmatprep.mubr.bf16.mxu1 %v8665_v6  ;;  %v6867_v56 = vcombine.low %v1807_v45, %v1811_v46  ;;  %v6878_v59 = vcombine.high %v1816_v53, %v1820_v55  ;;  %v1855_v36 = vld [vmem:[#allocation11 + $0x780] sm:$0xff] }
 0x289   : > { %v1859_v37 = vld [vmem:[#allocation11 + $0x7a0] sm:$0xff] }
 0x28a   : > { %4773 = vmatpush1.bf16.msra.mxu0 %v6811_v50  ;;  %4937 = vmatpush1.bf16.msra.mxu1 %v6813_v23  ;;  %v6868_v50 = vcombine.high %v1807_v45, %v1811_v46  ;;  %v6870_v23 = vcombine.high %v1808_v47, %v1812_v2  ;;  %v777_v46 = vsub.s32 5, %v8631_v22  ;;  %v6916_v47 = vcombine.high %v1855_v36, %v1859_v37 }
 0x28b   : > { %4774 = vmatprep.subr.bf16.mxu0 %v6820_v51  ;;  %4938 = vmatprep.subr.bf16.mxu1 %v6822_v52  ;;  %v1815_v51 = vld [vmem:[#allocation11 + $0x640] sm:$0xff] }
 0x28c   : > { %v1819_v52 = vld [vmem:[#allocation11 + $0x660] sm:$0xff] }
 0x28d   : > { %v6876_v58 = vcombine.high %v1815_v51, %v1819_v52 }
 0x28e   : > { %4775 = vmatpush1.bf16.msra.mxu0 %v6819_v62  ;;  %4939 = vmatpush1.bf16.msra.mxu1 %v6821_v63  ;;  %v1827_v62 = vld [vmem:[#allocation11 + $0x6a0] sm:$0xff]  ;;  %v1824_v63 = vld [vmem:[#allocation11 + $0x688] sm:$0xff] }
 0x28f   : > { %4776 = vmatprep.subr.bf16.mxu0 %v6828_v7  ;;  %4940 = vmatprep.subr.bf16.mxu1 %v6830_v8  ;;  %v6875_v7 = vcombine.low %v1815_v51, %v1819_v52  ;;  %v6877_v8 = vcombine.low %v1816_v53, %v1820_v55  ;;  %v6884_v60 = vcombine.high %v1823_v61, %v1827_v62 }
 0x290   : > { %v6886_v0 = vcombine.high %v1824_v63, %v1828_v3  ;;  %v6915_v52 = vcombine.low %v1855_v36, %v1859_v37  ;;  %v778_v55 = vrot.slane %v8636_v25, %v777_v46  ;;  %v1899_v36 = vld [vmem:[#allocation11 + $0x8e0] sm:$0xff]  ;;  %v1896_v37 = vld [vmem:[#allocation11 + $0x8c8] sm:$0xff] }
 0x292   : > { %4777 = vmatpush1.bf16.msra.mxu0 %v6827_v9  ;;  %4941 = vmatpush1.bf16.msra.mxu1 %v6829_v10  ;;  %v1836_v9 = vld [vmem:[#allocation11 + $0x6e8] sm:$0xff]  ;;  %v6883_v10 = vcombine.low %v1823_v61, %v1827_v62 }
 0x293   : > { %4778 = vmatprep.subr.bf16.mxu0 %v6836_v11  ;;  %4942 = vmatprep.subr.bf16.mxu1 %v6838_v12  ;;  %v6885_v11 = vcombine.low %v1824_v63, %v1828_v3  ;;  %v6892_v12 = vcombine.high %v1831_v1, %v1835_v4  ;;  %v6894_v13 = vcombine.high %v1832_v5, %v1836_v9  ;;  %v1872_v61 = vld [vmem:[#allocation11 + $0x808] sm:$0xff] }
 0x294   : > { %v1876_v62 = vld [vmem:[#allocation11 + $0x828] sm:$0xff] }
 0x296   : > { %4779 = vmatpush1.bf16.msra.mxu0 %v6835_v17  ;;  %4943 = vmatpush1.bf16.msra.mxu1 %v6837_v18  ;;  %v1844_v17 = vld [vmem:[#allocation11 + $0x728] sm:$0xff]  ;;  %v6891_v18 = vcombine.low %v1831_v1, %v1835_v4  ;;  %v6934_v4 = vcombine.high %v1872_v61, %v1876_v62 }
 0x297   : > { %4780 = vmatprep.subr.bf16.mxu0 %v6844_v19  ;;  %4944 = vmatprep.subr.bf16.mxu1 %v6846_v20  ;;  %v6893_v19 = vcombine.low %v1832_v5, %v1836_v9  ;;  %v6900_v20 = vcombine.high %v1839_v14, %v1843_v15  ;;  %v6902_v21 = vcombine.high %v1840_v16, %v1844_v17  ;;  %v1879_v5 = vld [vmem:[#allocation11 + $0x840] sm:$0xff] }
 0x29a   : > { %4781 = vmatpush1.bf16.msra.mxu0 %v6843_v30  ;;  %4945 = vmatpush1.bf16.msra.mxu1 %v6845_v31  ;;  %v1852_v30 = vld [vmem:[#allocation11 + $0x768] sm:$0xff]  ;;  %v765_v31 = vsub.s32 2, %v8631_v22 }
 0x29b   : > { %4782 = vmatprep.subr.bf16.mxu0 %v6852_v32  ;;  %4946 = vmatprep.subr.bf16.mxu1 %v6854_v33  ;;  %v6899_v32 = vcombine.low %v1839_v14, %v1843_v15  ;;  %v6901_v33 = vcombine.low %v1840_v16, %v1844_v17  ;;  %v6910_v35 = vcombine.high %v1848_v29, %v1852_v30 }
 0x29c   : > { %v6909_v45 = vcombine.low %v1848_v29, %v1852_v30  ;;  %v6933_v16 = vcombine.low %v1872_v61, %v1876_v62  ;;  %v1916_v61 = vld [vmem:[#allocation11 + $0x968] sm:$0xff] }
 0x29e   : > { %4783 = vmatpush1.bf16.msra.mxu0 %v6851_v38  ;;  %4947 = vmatpush1.bf16.msra.mxu1 %v6853_v39  ;;  %v1856_v38 = vld [vmem:[#allocation11 + $0x788] sm:$0xff] }
 0x29f   : > { %4784 = vmatprep.subr.bf16.mxu0 %v6860_v40  ;;  %4948 = vmatprep.subr.bf16.mxu1 %v6862_v44  ;;  %v1860_v39 = vld [vmem:[#allocation11 + $0x7a8] sm:$0xff]  ;;  %v766_v40 = vrot.slane %v8636_v25, %v765_v31  ;;  %v6907_v44 = vcombine.low %v1847_v27, %v1851_v28 }
 0x2a0   : > { %v6918_v2 = vcombine.high %v1856_v38, %v1860_v39  ;;  %v6917_v53 = vcombine.low %v1856_v38, %v1860_v39  ;;  %v1892_v27 = vld [vmem:[#allocation11 + $0x8a8] sm:$0xff] }
 0x2a1   : > { %v1511_v51 = vadd.f32 %v8663_v54, %v766_v40  ;;  %v1900_v38 = vld [vmem:[#allocation11 + $0x8e8] sm:$0xff] }
 0x2a2   : > { %4785 = vmatpush1.bf16.msra.mxu0 %v6859_v48  ;;  %4949 = vmatpush1.bf16.msra.mxu1 %v6861_v49  ;;  %v1863_v48 = vld [vmem:[#allocation11 + $0x7c0] sm:$0xff] }
 0x2a3   : > { %4786 = vmatprep.subr.bf16.mxu0 %v6868_v50  ;;  %4950 = vmatprep.subr.bf16.mxu1 %v6870_v23  ;;  %v1867_v49 = vld [vmem:[#allocation11 + $0x7e0] sm:$0xff]  ;;  %v1864_v50 = vld [vmem:[#allocation11 + $0x7c8] sm:$0xff]  ;;  %v1601_v3 = vmax.f32 %v1511_v51, 0.0 }
 0x2a4   : > { %v1868_v23 = vld [vmem:[#allocation11 + $0x7e8] sm:$0xff] }
 0x2a5   : > { %v8680_v14 = vpack.c.bf16 %v1601_v3, %v1601_v3  ;;  %v1908_v51 = vld [vmem:[#allocation11 + $0x928] sm:$0xff] }
 0x2a6   : > { %4787 = vmatpush1.bf16.msra.mxu0 %v6867_v56  ;;  %4951 = vmatpush1.bf16.msra.mxu1 %v6869_v57  ;;  %v6924_v56 = vcombine.high %v1863_v48, %v1867_v49  ;;  %v6926_v57 = vcombine.high %v1864_v50, %v1868_v23 }
 0x2a7   : > { %4788 = vmatprep.subr.bf16.mxu0 %v6876_v58  ;;  %4952 = vmatprep.subr.bf16.mxu1 %v6878_v59  ;;  %v1871_v58 = vld [vmem:[#allocation11 + $0x800] sm:$0xff] }
 0x2a8   : > { %v1875_v59 = vld [vmem:[#allocation11 + $0x820] sm:$0xff] }
 0x2a9   : > { %v6932_v1 = vcombine.high %v1871_v58, %v1875_v59  ;;  %v6931_v15 = vcombine.low %v1871_v58, %v1875_v59  ;;  %v1915_v58 = vld [vmem:[#allocation11 + $0x960] sm:$0xff]  ;;  %v1912_v59 = vld [vmem:[#allocation11 + $0x948] sm:$0xff] }
 0x2aa   : > { %4789 = vmatpush1.bf16.msra.mxu0 %v6875_v7  ;;  %4953 = vmatpush1.bf16.msra.mxu1 %v6877_v8  ;;  %v6923_v7 = vcombine.low %v1863_v48, %v1867_v49  ;;  %v6925_v8 = vcombine.low %v1864_v50, %v1868_v23  ;;  %v6958_v48 = vcombine.high %v1896_v37, %v1900_v38  ;;  %v1903_v49 = vld [vmem:[#allocation11 + $0x900] sm:$0xff]  ;;  %v1904_v23 = vld [vmem:[#allocation11 + $0x908] sm:$0xff] }
 0x2ab   : > { %4790 = vmatprep.subr.bf16.mxu0 %v6884_v60  ;;  %4954 = vmatprep.subr.bf16.mxu1 %v6886_v0  ;;  %v1907_v50 = vld [vmem:[#allocation11 + $0x920] sm:$0xff]  ;;  %v6965_v3 = vcombine.low %v1904_v23, %v1908_v51 }
 0x2ac   : > { %v6963_v62 = vcombine.low %v1903_v49, %v1907_v50 }
 0x2ae   : > { %4791 = vmatpush1.bf16.msra.mxu0 %v6883_v10  ;;  %4955 = vmatpush1.bf16.msra.mxu1 %v6885_v11  ;;  %v1883_v10 = vld [vmem:[#allocation11 + $0x860] sm:$0xff]  ;;  %v1880_v11 = vld [vmem:[#allocation11 + $0x848] sm:$0xff] }
 0x2af   : > { %4792 = vmatprep.subr.bf16.mxu0 %v6892_v12  ;;  %4956 = vmatprep.subr.bf16.mxu1 %v6894_v13  ;;  %v1884_v12 = vld [vmem:[#allocation11 + $0x868] sm:$0xff]  ;;  %v6940_v17 = vcombine.high %v1879_v5, %v1883_v10  ;;  %v6939_v29 = vcombine.low %v1879_v5, %v1883_v10  ;;  %v6973_v5 = vcombine.low %v1912_v59, %v1916_v61 }
 0x2b0   : > { %v6941_v30 = vcombine.low %v1880_v11, %v1884_v12 }
 0x2b2   : > { %4793 = vmatpush1.bf16.msra.mxu0 %v6891_v18  ;;  %4957 = vmatpush1.bf16.msra.mxu1 %v6893_v19  ;;  %v6942_v18 = vcombine.high %v1880_v11, %v1884_v12  ;;  %v1887_v19 = vld [vmem:[#allocation11 + $0x880] sm:$0xff] }
 0x2b3   : > { %4794 = vmatprep.subr.bf16.mxu0 %v6900_v20  ;;  %4958 = vmatprep.subr.bf16.mxu1 %v6902_v21  ;;  %v1891_v20 = vld [vmem:[#allocation11 + $0x8a0] sm:$0xff]  ;;  %v1888_v21 = vld [vmem:[#allocation11 + $0x888] sm:$0xff] }
 0x2b4   : > { %v1927_v11 = vld [vmem:[#allocation11 + $0x9c0] sm:$0xff] }
 0x2b5   : > { %v1931_v12 = vld [vmem:[#allocation11 + $0x9e0] sm:$0xff] }
 0x2b6   : > { %4795 = vmatpush1.bf16.msra.mxu0 %v6899_v32  ;;  %4959 = vmatpush1.bf16.msra.mxu1 %v6901_v33  ;;  %v6948_v32 = vcombine.high %v1887_v19, %v1891_v20  ;;  %v6950_v33 = vcombine.high %v1888_v21, %v1892_v27 }
 0x2b7   : > { %4796 = vmatprep.subr.bf16.mxu0 %v6908_v34  ;;  %4960 = vmatprep.subr.bf16.mxu1 %v6910_v35  ;;  %v1895_v34 = vld [vmem:[#allocation11 + $0x8c0] sm:$0xff] }
 0x2ba   : > { %4797 = vmatpush1.bf16.msra.mxu0 %v6907_v44  ;;  %4961 = vmatpush1.bf16.msra.mxu1 %v6909_v45  ;;  %v6947_v44 = vcombine.low %v1887_v19, %v1891_v20  ;;  %v6949_v45 = vcombine.low %v1888_v21, %v1892_v27  ;;  %v1935_v20 = vld [vmem:[#allocation11 + $0xa00] sm:$0xff]  ;;  %v1936_v27 = vld [vmem:[#allocation11 + $0xa08] sm:$0xff] }
 0x2bb   : > { %4798 = vmatprep.subr.bf16.mxu0 %v6916_v47  ;;  %4962 = vmatprep.subr.bf16.mxu1 %v6918_v2  ;;  %v6956_v2 = vcombine.high %v1895_v34, %v1899_v36  ;;  %v1939_v21 = vld [vmem:[#allocation11 + $0xa20] sm:$0xff] }
 0x2bc   : > { %v8678_v63 = vpop.f32.mrb[4].mxu0 }
 0x2bd   : > { %v1553_v54 = vpop.f32.mrb[5].mxu0 }
 0x2be   : > { %4799 = vmatpush1.bf16.msra.mxu0 %v6915_v52  ;;  %4963 = vmatpush1.bf16.msra.mxu1 %v6917_v53  ;;  %v1554_v60 = vadd.f32 %v1553_v54, %v778_v55  ;;  %v1555_v0 = vpop.f32.mrb[6].mxu0  ;;  %v8686_v35 = vpop.f32.mrb[4].mxu1  ;;  %v6955_v52 = vcombine.low %v1895_v34, %v1899_v36  ;;  %v6957_v53 = vcombine.low %v1896_v37, %v1900_v38  ;;  %v1943_v36 = vld [vmem:[#allocation11 + $0xa40] sm:$0xff]  ;;  %v1944_v38 = vld [vmem:[#allocation11 + $0xa48] sm:$0xff] }
 0x2bf   : > { %4800 = vmatprep.subr.bf16.mxu0 %v6924_v56  ;;  %4964 = vmatprep.subr.bf16.mxu1 %v6926_v57  ;;  %v1556_v9 = vpop.f32.mrb[7].mxu0  ;;  %v8690_v39 = vpop.f32.mrb[5].mxu1  ;;  %v6964_v55 = vcombine.high %v1903_v49, %v1907_v50  ;;  %v6966_v56 = vcombine.high %v1904_v23, %v1908_v51  ;;  %v1911_v57 = vld [vmem:[#allocation11 + $0x940] sm:$0xff]  ;;  %v1920_v0 = vld [vmem:[#allocation11 + $0x988] sm:$0xff] }
 0x2c0   : > { %v1604_v13 = vmax.f32 %v1554_v60, 0.0  ;;  %v1596_v40 = vpop.f32.mrb[6].mxu1  ;;  %v6972_v54 = vcombine.high %v1911_v57, %v1915_v58  ;;  %v1923_v60 = vld [vmem:[#allocation11 + $0x9a0] sm:$0xff]  ;;  %v1952_v50 = vld [vmem:[#allocation11 + $0xa88] sm:$0xff] }
 0x2c1   : > { %v1597_v47 = vpop.f32.mrb[7].mxu1  ;;  %v1947_v37 = vld [vmem:[#allocation11 + $0xa60] sm:$0xff]  ;;  %v1948_v40 = vld [vmem:[#allocation11 + $0xa68] sm:$0xff] }
 0x2c2   : > { %4801 = vmatpush1.bf16.msra.mxu0 %v6923_v7  ;;  %4965 = vmatpush1.bf16.msra.mxu1 %v6925_v8  ;;  %v8682_v28 = vpack.c.bf16 %v1604_v13, %v1604_v13  ;;  %v6974_v7 = vcombine.high %v1912_v59, %v1916_v61  ;;  %v1919_v8 = vld [vmem:[#allocation11 + $0x980] sm:$0xff]  ;;  %v1928_v13 = vld [vmem:[#allocation11 + $0x9c8] sm:$0xff]  ;;  %v7004_v47 = vcombine.high %v1943_v36, %v1947_v37 }
 0x2c3   : > { %4811 = vmatprep.subr.bf16.mxu0 %v6932_v1  ;;  %4975 = vmatprep.subr.bf16.mxu1 %v6934_v4  ;;  %v1924_v1 = vld [vmem:[#allocation11 + $0x9a8] sm:$0xff]  ;;  %v6971_v4 = vcombine.low %v1911_v57, %v1915_v58  ;;  %v6980_v9 = vcombine.high %v1919_v8, %v1923_v60  ;;  %v1955_v49 = vld [vmem:[#allocation11 + $0xaa0] sm:$0xff]  ;;  %v7003_v51 = vcombine.low %v1943_v36, %v1947_v37 }
 0x2c4   : > { %v6982_v10 = vcombine.high %v1920_v0, %v1924_v1  ;;  %v1956_v23 = vld [vmem:[#allocation11 + $0xaa8] sm:$0xff]  ;;  %v1963_v57 = vld [vmem:[#allocation11 + $0xae0] sm:$0xff] }
 0x2c5   : > { %4803 = vmatmul.mubr.bf16.vlgmr.msra.gmra.mrb[8].mxu0 %v8680_v14  ;;  %4967 = vmatmul.mubr.bf16.vlgmr.msra.gmra.mrb[8].mxu1 %v8680_v14  ;;  %v1960_v58 = vld [vmem:[#allocation11 + $0xac8] sm:$0xff] }
 0x2c6   : > { %4812 = vmatpush1.bf16.msra.mxu0 %v6931_v15  ;;  %4976 = vmatpush1.bf16.msra.mxu1 %v6933_v16  ;;  %v1932_v15 = vld [vmem:[#allocation11 + $0x9e8] sm:$0xff]  ;;  %v6979_v16 = vcombine.low %v1919_v8, %v1923_v60  ;;  %v1971_v8 = vld [vmem:[#allocation11 + $0xb20] sm:$0xff] }
 0x2c7   : > { %4813 = vmatprep.subr.bf16.mxu0 %v6940_v17  ;;  %4977 = vmatprep.subr.bf16.mxu1 %v6942_v18  ;;  %v6981_v17 = vcombine.low %v1920_v0, %v1924_v1  ;;  %v6988_v18 = vcombine.high %v1927_v11, %v1931_v12  ;;  %v6990_v19 = vcombine.high %v1928_v13, %v1932_v15  ;;  %v1964_v59 = vld [vmem:[#allocation11 + $0xae8] sm:$0xff] }
 0x2c8   : > { %4843 = vmatprep.mubr.bf16.mxu0 %v8682_v28  ;;  %5007 = vmatprep.mubr.bf16.mxu1 %v8682_v28  ;;  %v1968_v60 = vld [vmem:[#allocation11 + $0xb08] sm:$0xff] }
 0x2c9   : > { %v1972_v0 = vld [vmem:[#allocation11 + $0xb28] sm:$0xff] }
 0x2ca   : > { %4814 = vmatpush1.bf16.msra.mxu0 %v6939_v29  ;;  %4978 = vmatpush1.bf16.msra.mxu1 %v6941_v30  ;;  %v1940_v29 = vld [vmem:[#allocation11 + $0xa28] sm:$0xff]  ;;  %v6987_v30 = vcombine.low %v1927_v11, %v1931_v12  ;;  %v1979_v11 = vld [vmem:[#allocation11 + $0xb60] sm:$0xff] }
 0x2cb   : > { %4815 = vmatprep.subr.bf16.mxu0 %v6948_v32  ;;  %4979 = vmatprep.subr.bf16.mxu1 %v6950_v33  ;;  %v6989_v32 = vcombine.low %v1928_v13, %v1932_v15  ;;  %v6996_v33 = vcombine.high %v1935_v20, %v1939_v21  ;;  %v6998_v34 = vcombine.high %v1936_v27, %v1940_v29  ;;  %v1976_v12 = vld [vmem:[#allocation11 + $0xb48] sm:$0xff]  ;;  %v773_v15 = vsub.s32 4, %v8631_v22 }
 0x2cc   : > { %v1980_v13 = vld [vmem:[#allocation11 + $0xb68] sm:$0xff] }
 0x2ce   : > { %4816 = vmatpush1.bf16.msra.mxu0 %v6947_v44  ;;  %4980 = vmatpush1.bf16.msra.mxu1 %v6949_v45  ;;  %v6995_v44 = vcombine.low %v1935_v20, %v1939_v21  ;;  %v6997_v45 = vcombine.low %v1936_v27, %v1940_v29  ;;  %v1983_v20 = vld [vmem:[#allocation11 + $0xb80] sm:$0xff]  ;;  %v1984_v27 = vld [vmem:[#allocation11 + $0xb88] sm:$0xff] }
 0x2cf   : > { %4817 = vmatprep.subr.bf16.mxu0 %v6956_v2  ;;  %4981 = vmatprep.subr.bf16.mxu1 %v6958_v48  ;;  %v7006_v2 = vcombine.high %v1944_v38, %v1948_v40  ;;  %v1951_v48 = vld [vmem:[#allocation11 + $0xa80] sm:$0xff]  ;;  %v1988_v29 = vld [vmem:[#allocation11 + $0xba8] sm:$0xff] }
 0x2d0   : > { %v7011_v61 = vcombine.low %v1951_v48, %v1955_v49  ;;  %v1987_v21 = vld [vmem:[#allocation11 + $0xba0] sm:$0xff]  ;;  %v7046_v37 = vcombine.high %v1984_v27, %v1988_v29 }
 0x2d1   : > { %v7044_v36 = vcombine.high %v1983_v20, %v1987_v21 }
 0x2d2   : > { %4818 = vmatpush1.bf16.msra.mxu0 %v6955_v52  ;;  %4982 = vmatpush1.bf16.msra.mxu1 %v6957_v53  ;;  %v7005_v52 = vcombine.low %v1944_v38, %v1948_v40  ;;  %v7012_v53 = vcombine.high %v1951_v48, %v1955_v49  ;;  %v1991_v38 = vld [vmem:[#allocation11 + $0xbc0] sm:$0xff]  ;;  %v7043_v48 = vcombine.low %v1983_v20, %v1987_v21  ;;  %v2024_v20 = vld [vmem:[#allocation11 + $0xcc8] sm:$0xff] }
 0x2d3   : > { %4819 = vmatprep.subr.bf16.mxu0 %v6964_v55  ;;  %4983 = vmatprep.subr.bf16.mxu1 %v6966_v56  ;;  %v7014_v55 = vcombine.high %v1952_v50, %v1956_v23  ;;  %v1959_v56 = vld [vmem:[#allocation11 + $0xac0] sm:$0xff]  ;;  %v7045_v49 = vcombine.low %v1984_v27, %v1988_v29  ;;  %v2028_v21 = vld [vmem:[#allocation11 + $0xce8] sm:$0xff] }
 0x2d4   : > { %v7019_v1 = vcombine.low %v1959_v56, %v1963_v57  ;;  %v1995_v40 = vld [vmem:[#allocation11 + $0xbe0] sm:$0xff] }
 0x2d6   : > { %4820 = vmatpush1.bf16.msra.mxu0 %v6963_v62  ;;  %4984 = vmatpush1.bf16.msra.mxu1 %v6965_v3  ;;  %v7013_v62 = vcombine.low %v1952_v50, %v1956_v23  ;;  %v7020_v3 = vcombine.high %v1959_v56, %v1963_v57  ;;  %v7052_v50 = vcombine.high %v1991_v38, %v1995_v40 }
 0x2d7   : > { %4821 = vmatprep.subr.bf16.mxu0 %v6972_v54  ;;  %4985 = vmatprep.subr.bf16.mxu1 %v6974_v7  ;;  %v7022_v54 = vcombine.high %v1960_v58, %v1964_v59  ;;  %v1967_v7 = vld [vmem:[#allocation11 + $0xb00] sm:$0xff] }
 0x2da   : > { %4822 = vmatpush1.bf16.msra.mxu0 %v6971_v4  ;;  %4986 = vmatpush1.bf16.msra.mxu1 %v6973_v5  ;;  %v7021_v4 = vcombine.low %v1960_v58, %v1964_v59  ;;  %v7028_v5 = vcombine.high %v1967_v7, %v1971_v8 }
 0x2db   : > { %4823 = vmatprep.subr.bf16.mxu0 %v6980_v9  ;;  %4987 = vmatprep.subr.bf16.mxu1 %v6982_v10  ;;  %v7030_v9 = vcombine.high %v1968_v60, %v1972_v0  ;;  %v1975_v10 = vld [vmem:[#allocation11 + $0xb40] sm:$0xff] }
 0x2de   : > { %4824 = vmatpush1.bf16.msra.mxu0 %v6979_v16  ;;  %4988 = vmatpush1.bf16.msra.mxu1 %v6981_v17  ;;  %v7027_v16 = vcombine.low %v1967_v7, %v1971_v8  ;;  %v7029_v17 = vcombine.low %v1968_v60, %v1972_v0 }
 0x2df   : > { %4825 = vmatprep.subr.bf16.mxu0 %v6988_v18  ;;  %4989 = vmatprep.subr.bf16.mxu1 %v6990_v19  ;;  %v7036_v18 = vcombine.high %v1975_v10, %v1979_v11  ;;  %v7038_v19 = vcombine.high %v1976_v12, %v1980_v13 }
 0x2e2   : > { %4826 = vmatpush1.bf16.msra.mxu0 %v6987_v30  ;;  %4990 = vmatpush1.bf16.msra.mxu1 %v6989_v32  ;;  %v785_v30 = vsub.s32 7, %v8631_v22  ;;  %v774_v32 = vrot.slane %v8636_v25, %v773_v15 }
 0x2e3   : > { %4827 = vmatprep.subr.bf16.mxu0 %v6996_v33  ;;  %4991 = vmatprep.subr.bf16.mxu1 %v6998_v34  ;;  %v7035_v33 = vcombine.low %v1975_v10, %v1979_v11  ;;  %v7037_v34 = vcombine.low %v1976_v12, %v1980_v13  ;;  %v2020_v10 = vld [vmem:[#allocation11 + $0xca8] sm:$0xff] }
 0x2e6   : > { %4828 = vmatpush1.bf16.msra.mxu0 %v6995_v44  ;;  %4992 = vmatpush1.bf16.msra.mxu1 %v6997_v45  ;;  %v1992_v44 = vld [vmem:[#allocation11 + $0xbc8] sm:$0xff] }
 0x2e7   : > { %4829 = vmatprep.subr.bf16.mxu0 %v7004_v47  ;;  %4993 = vmatprep.subr.bf16.mxu1 %v7006_v2  ;;  %v1996_v45 = vld [vmem:[#allocation11 + $0xbe8] sm:$0xff]  ;;  %v786_v47 = vrot.slane %v8636_v25, %v785_v30  ;;  %v1552_v2 = vadd.f32 %v8678_v63, %v774_v32  ;;  %v7051_v25 = vcombine.low %v1991_v38, %v1995_v40 }
 0x2e8   : > { %v7054_v23 = vcombine.high %v1992_v44, %v1996_v45  ;;  %v7053_v58 = vcombine.low %v1992_v44, %v1996_v45  ;;  %v2036_v38 = vld [vmem:[#allocation11 + $0xd28] sm:$0xff]  ;;  %v7085_v44 = vcombine.low %v2024_v20, %v2028_v21 }
 0x2e9   : > { %v1595_v56 = vadd.f32 %v8690_v39, %v786_v47  ;;  %v1603_v57 = vmax.f32 %v1552_v2, 0.0  ;;  %v2039_v2 = vld [vmem:[#allocation11 + $0xd40] sm:$0xff] }
 0x2ea   : > { %4830 = vmatpush1.bf16.msra.mxu0 %v7003_v51  ;;  %4994 = vmatpush1.bf16.msra.mxu1 %v7005_v52  ;;  %v1999_v51 = vld [vmem:[#allocation11 + $0xc00] sm:$0xff] }
 0x2eb   : > { %4831 = vmatprep.subr.bf16.mxu0 %v7012_v53  ;;  %4995 = vmatprep.subr.bf16.mxu1 %v7014_v55  ;;  %v2003_v52 = vld [vmem:[#allocation11 + $0xc20] sm:$0xff]  ;;  %v2000_v53 = vld [vmem:[#allocation11 + $0xc08] sm:$0xff]  ;;  %v1606_v7 = vmax.f32 %v1595_v56, 0.0  ;;  %v8702_v8 = vpack.c.bf16 %v1603_v57, %v1603_v57 }
 0x2ec   : > { %v2004_v55 = vld [vmem:[#allocation11 + $0xc28] sm:$0xff]  ;;  %v7060_v63 = vcombine.high %v1999_v51, %v2003_v52  ;;  %v7059_v60 = vcombine.low %v1999_v51, %v2003_v52  ;;  %v2051_v56 = vld [vmem:[#allocation11 + $0xda0] sm:$0xff] }
 0x2ed   : > { %v7062_v59 = vcombine.high %v2000_v53, %v2004_v55  ;;  %v7061_v39 = vcombine.low %v2000_v53, %v2004_v55  ;;  %v8704_v11 = vpack.c.bf16 %v1606_v7, %v1606_v7  ;;  %v2047_v55 = vld [vmem:[#allocation11 + $0xd80] sm:$0xff]  ;;  %v2048_v57 = vld [vmem:[#allocation11 + $0xd88] sm:$0xff] }
 0x2ee   : > { %4832 = vmatpush1.bf16.msra.mxu0 %v7011_v61  ;;  %4996 = vmatpush1.bf16.msra.mxu1 %v7013_v62  ;;  %v2007_v61 = vld [vmem:[#allocation11 + $0xc40] sm:$0xff]  ;;  %v2060_v7 = vld [vmem:[#allocation11 + $0xde8] sm:$0xff] }
 0x2ef   : > { %4833 = vmatprep.subr.bf16.mxu0 %v7020_v3  ;;  %4997 = vmatprep.subr.bf16.mxu1 %v7022_v54  ;;  %v2011_v62 = vld [vmem:[#allocation11 + $0xc60] sm:$0xff]  ;;  %v2008_v3 = vld [vmem:[#allocation11 + $0xc48] sm:$0xff] }
 0x2f0   : > { %v2012_v54 = vld [vmem:[#allocation11 + $0xc68] sm:$0xff]  ;;  %v7068_v0 = vcombine.high %v2007_v61, %v2011_v62  ;;  %v7067_v12 = vcombine.low %v2007_v61, %v2011_v62  ;;  %v2055_v62 = vld [vmem:[#allocation11 + $0xdc0] sm:$0xff] }
 0x2f1   : > { %v7069_v13 = vcombine.low %v2008_v3, %v2012_v54 }
 0x2f2   : > { %4834 = vmatpush1.bf16.msra.mxu0 %v7019_v1  ;;  %4998 = vmatpush1.bf16.msra.mxu1 %v7021_v4  ;;  %v7070_v1 = vcombine.high %v2008_v3, %v2012_v54  ;;  %v2015_v4 = vld [vmem:[#allocation11 + $0xc80] sm:$0xff]  ;;  %v2056_v54 = vld [vmem:[#allocation11 + $0xdc8] sm:$0xff] }
 0x2f3   : > { %4835 = vmatprep.subr.bf16.mxu0 %v7028_v5  ;;  %4999 = vmatprep.subr.bf16.mxu1 %v7030_v9  ;;  %v2019_v5 = vld [vmem:[#allocation11 + $0xca0] sm:$0xff]  ;;  %v2016_v9 = vld [vmem:[#allocation11 + $0xc88] sm:$0xff] }
 0x2f4   : > { %v7075_v27 = vcombine.low %v2015_v4, %v2019_v5  ;;  %v7077_v29 = vcombine.low %v2016_v9, %v2020_v10  ;;  %v2059_v3 = vld [vmem:[#allocation11 + $0xde0] sm:$0xff] }
 0x2f6   : > { %4836 = vmatpush1.bf16.msra.mxu0 %v7027_v16  ;;  %5000 = vmatpush1.bf16.msra.mxu1 %v7029_v17  ;;  %v7076_v16 = vcombine.high %v2015_v4, %v2019_v5  ;;  %v7078_v17 = vcombine.high %v2016_v9, %v2020_v10  ;;  %v2063_v4 = vld [vmem:[#allocation11 + $0xe00] sm:$0xff]  ;;  %v2064_v9 = vld [vmem:[#allocation11 + $0xe08] sm:$0xff] }
 0x2f7   : > { %4837 = vmatprep.subr.bf16.mxu0 %v7036_v18  ;;  %5001 = vmatprep.subr.bf16.mxu1 %v7038_v19  ;;  %v2023_v18 = vld [vmem:[#allocation11 + $0xcc0] sm:$0xff]  ;;  %v2068_v10 = vld [vmem:[#allocation11 + $0xe28] sm:$0xff] }
 0x2f8   : > { %v2027_v19 = vld [vmem:[#allocation11 + $0xce0] sm:$0xff] }
 0x2f9   : > { %v7084_v32 = vcombine.high %v2023_v18, %v2027_v19  ;;  %v7083_v40 = vcombine.low %v2023_v18, %v2027_v19  ;;  %v2067_v5 = vld [vmem:[#allocation11 + $0xe20] sm:$0xff] }
 0x2fa   : > { %4838 = vmatpush1.bf16.msra.mxu0 %v7035_v33  ;;  %5002 = vmatpush1.bf16.msra.mxu1 %v7037_v34  ;;  %v7086_v33 = vcombine.high %v2024_v20, %v2028_v21  ;;  %v2031_v34 = vld [vmem:[#allocation11 + $0xd00] sm:$0xff]  ;;  %v2072_v20 = vld [vmem:[#allocation11 + $0xe48] sm:$0xff] }
 0x2fb   : > { %4839 = vmatprep.subr.bf16.mxu0 %v7044_v36  ;;  %5003 = vmatprep.subr.bf16.mxu1 %v7046_v37  ;;  %v2035_v36 = vld [vmem:[#allocation11 + $0xd20] sm:$0xff]  ;;  %v2032_v37 = vld [vmem:[#allocation11 + $0xd08] sm:$0xff] }
 0x2fc   : > { %v7092_v45 = vcombine.high %v2031_v34, %v2035_v36  ;;  %v7094_v47 = vcombine.high %v2032_v37, %v2036_v38  ;;  %v7093_v51 = vcombine.low %v2032_v37, %v2036_v38  ;;  %v2071_v18 = vld [vmem:[#allocation11 + $0xe40] sm:$0xff]  ;;  %v2076_v21 = vld [vmem:[#allocation11 + $0xe68] sm:$0xff] }
 0x2fd   : > { %v2075_v19 = vld [vmem:[#allocation11 + $0xe60] sm:$0xff]  ;;  %v2080_v37 = vld [vmem:[#allocation11 + $0xe88] sm:$0xff] }
 0x2fe   : > { %4840 = vmatpush1.bf16.msra.mxu0 %v7043_v48  ;;  %5004 = vmatpush1.bf16.msra.mxu1 %v7045_v49  ;;  %v2043_v48 = vld [vmem:[#allocation11 + $0xd60] sm:$0xff]  ;;  %v2040_v49 = vld [vmem:[#allocation11 + $0xd48] sm:$0xff] }
 0x2ff   : > { %4841 = vmatprep.subr.bf16.mxu0 %v7052_v50  ;;  %5005 = vmatprep.subr.bf16.mxu1 %v7054_v23  ;;  %v2044_v50 = vld [vmem:[#allocation11 + $0xd68] sm:$0xff]  ;;  %v7091_v23 = vcombine.low %v2031_v34, %v2035_v36  ;;  %v7100_v52 = vcombine.high %v2039_v2, %v2043_v48  ;;  %v2079_v34 = vld [vmem:[#allocation11 + $0xe80] sm:$0xff] }
 0x300   : > { %v7102_v53 = vcombine.high %v2040_v49, %v2044_v50  ;;  %v2083_v36 = vld [vmem:[#allocation11 + $0xea0] sm:$0xff]  ;;  %v2084_v38 = vld [vmem:[#allocation11 + $0xea8] sm:$0xff] }
 0x302   : > { %4842 = vmatpush1.bf16.msra.mxu0 %v7051_v25  ;;  %5006 = vmatpush1.bf16.msra.mxu1 %v7053_v58  ;;  %v2052_v25 = vld [vmem:[#allocation11 + $0xda8] sm:$0xff]  ;;  %v7099_v58 = vcombine.low %v2039_v2, %v2043_v48  ;;  %v2087_v2 = vld [vmem:[#allocation11 + $0xec0] sm:$0xff] }
 0x303   : > { %4852 = vmatprep.subr.bf16.mxu0 %v7060_v63  ;;  %5016 = vmatprep.subr.bf16.mxu1 %v7062_v59  ;;  %v7101_v63 = vcombine.low %v2040_v49, %v2044_v50  ;;  %v7108_v59 = vcombine.high %v2047_v55, %v2051_v56  ;;  %v7110_v61 = vcombine.high %v2048_v57, %v2052_v25  ;;  %v2091_v48 = vld [vmem:[#allocation11 + $0xee0] sm:$0xff]  ;;  %v2088_v49 = vld [vmem:[#allocation11 + $0xec8] sm:$0xff] }
 0x304   : > { %v2092_v50 = vld [vmem:[#allocation11 + $0xee8] sm:$0xff] }
 0x305   : > { %4844 = vmatmul.mubr.bf16.vlgmr.msra.gmra.mrb[8].mxu0 %v8702_v8  ;;  %5008 = vmatmul.mubr.bf16.vlgmr.msra.gmra.mrb[8].mxu1 %v8702_v8 }
 0x306   : > { %4853 = vmatpush1.bf16.msra.mxu0 %v7059_v60  ;;  %5017 = vmatpush1.bf16.msra.mxu1 %v7061_v39  ;;  %v7107_v60 = vcombine.low %v2047_v55, %v2051_v56  ;;  %v7109_v39 = vcombine.low %v2048_v57, %v2052_v25  ;;  %v2095_v55 = vld [vmem:[#allocation11 + $0xf00] sm:$0xff]  ;;  %v2096_v57 = vld [vmem:[#allocation11 + $0xf08] sm:$0xff] }
 0x307   : > { %4854 = vmatprep.subr.bf16.mxu0 %v7068_v0  ;;  %5018 = vmatprep.subr.bf16.mxu1 %v7070_v1  ;;  %v7116_v0 = vcombine.high %v2055_v62, %v2059_v3  ;;  %v7118_v1 = vcombine.high %v2056_v54, %v2060_v7  ;;  %v2099_v56 = vld [vmem:[#allocation11 + $0xf20] sm:$0xff]  ;;  %v2100_v25 = vld [vmem:[#allocation11 + $0xf28] sm:$0xff] }
 0x308   : > { %4884 = vmatprep.mubr.bf16.mxu0 %v8704_v11  ;;  %5048 = vmatprep.mubr.bf16.mxu1 %v8704_v11 }
 0x30a   : > { %4855 = vmatpush1.bf16.msra.mxu0 %v7067_v12  ;;  %5019 = vmatpush1.bf16.msra.mxu1 %v7069_v13  ;;  %v7115_v12 = vcombine.low %v2055_v62, %v2059_v3  ;;  %v7117_v13 = vcombine.low %v2056_v54, %v2060_v7  ;;  %v2103_v62 = vld [vmem:[#allocation11 + $0xf40] sm:$0xff]  ;;  %v2104_v54 = vld [vmem:[#allocation11 + $0xf48] sm:$0xff] }
 0x30b   : > { %4856 = vmatprep.subr.bf16.mxu0 %v7076_v16  ;;  %5020 = vmatprep.subr.bf16.mxu1 %v7078_v17  ;;  %v7124_v16 = vcombine.high %v2063_v4, %v2067_v5  ;;  %v7126_v17 = vcombine.high %v2064_v9, %v2068_v10  ;;  %v2107_v3 = vld [vmem:[#allocation11 + $0xf60] sm:$0xff]  ;;  %v2108_v7 = vld [vmem:[#allocation11 + $0xf68] sm:$0xff] }
 0x30e   : > { %4857 = vmatpush1.bf16.msra.mxu0 %v7075_v27  ;;  %5021 = vmatpush1.bf16.msra.mxu1 %v7077_v29  ;;  %v7123_v27 = vcombine.low %v2063_v4, %v2067_v5  ;;  %v7125_v29 = vcombine.low %v2064_v9, %v2068_v10  ;;  %v7166_v4 = vcombine.high %v2104_v54, %v2108_v7  ;;  %v2111_v5 = vld [vmem:[#allocation11 + $0xf80] sm:$0xff]  ;;  %v2112_v10 = vld [vmem:[#allocation11 + $0xf88] sm:$0xff] }
 0x30f   : > { %4858 = vmatprep.subr.bf16.mxu0 %v7084_v32  ;;  %5022 = vmatprep.subr.bf16.mxu1 %v7086_v33  ;;  %v7132_v32 = vcombine.high %v2071_v18, %v2075_v19  ;;  %v7134_v33 = vcombine.high %v2072_v20, %v2076_v21  ;;  %v2115_v9 = vld [vmem:[#allocation11 + $0xfa0] sm:$0xff] }
 0x312   : > { %4859 = vmatpush1.bf16.msra.mxu0 %v7083_v40  ;;  %5023 = vmatpush1.bf16.msra.mxu1 %v7085_v44  ;;  %v7131_v40 = vcombine.low %v2071_v18, %v2075_v19  ;;  %v7133_v44 = vcombine.low %v2072_v20, %v2076_v21  ;;  %v7172_v19 = vcombine.high %v2111_v5, %v2115_v9  ;;  %v2119_v21 = vld [vmem:[#allocation11 + $0xfc0] sm:$0xff] }
 0x313   : > { %4860 = vmatprep.subr.bf16.mxu0 %v7092_v45  ;;  %5024 = vmatprep.subr.bf16.mxu1 %v7094_v47  ;;  %v7140_v45 = vcombine.high %v2079_v34, %v2083_v36  ;;  %v7142_v47 = vcombine.high %v2080_v37, %v2084_v38 }
 0x316   : > { %4861 = vmatpush1.bf16.msra.mxu0 %v7091_v23  ;;  %5025 = vmatpush1.bf16.msra.mxu1 %v7093_v51  ;;  %v7139_v23 = vcombine.low %v2079_v34, %v2083_v36  ;;  %v7141_v51 = vcombine.low %v2080_v37, %v2084_v38 }
 0x317   : > { %4862 = vmatprep.subr.bf16.mxu0 %v7100_v52  ;;  %5026 = vmatprep.subr.bf16.mxu1 %v7102_v53  ;;  %v7148_v52 = vcombine.high %v2087_v2, %v2091_v48  ;;  %v7150_v53 = vcombine.high %v2088_v49, %v2092_v50 }
 0x31a   : > { %4863 = vmatpush1.bf16.msra.mxu0 %v7099_v58  ;;  %5027 = vmatpush1.bf16.msra.mxu1 %v7101_v63  ;;  %v7147_v58 = vcombine.low %v2087_v2, %v2091_v48  ;;  %v7149_v63 = vcombine.low %v2088_v49, %v2092_v50 }
 0x31b   : > { %4864 = vmatprep.subr.bf16.mxu0 %v7108_v59  ;;  %5028 = vmatprep.subr.bf16.mxu1 %v7110_v61  ;;  %v7156_v59 = vcombine.high %v2095_v55, %v2099_v56  ;;  %v7158_v61 = vcombine.high %v2096_v57, %v2100_v25 }
 0x31e   : > { %4865 = vmatpush1.bf16.msra.mxu0 %v7107_v60  ;;  %5029 = vmatpush1.bf16.msra.mxu1 %v7109_v39  ;;  %v7155_v60 = vcombine.low %v2095_v55, %v2099_v56  ;;  %v7157_v39 = vcombine.low %v2096_v57, %v2100_v25 }
 0x31f   : > { %4866 = vmatprep.subr.bf16.mxu0 %v7116_v0  ;;  %5030 = vmatprep.subr.bf16.mxu1 %v7118_v1  ;;  %v781_v0 = vsub.s32 6, %v8631_v22  ;;  %v7164_v1 = vcombine.high %v2103_v62, %v2107_v3 }
 0x322   : > { %4867 = vmatpush1.bf16.msra.mxu0 %v7115_v12  ;;  %5031 = vmatpush1.bf16.msra.mxu1 %v7117_v13  ;;  %v2116_v12 = vld [vmem:[#allocation11 + $0xfa8] sm:$0xff]  ;;  %v7163_v13 = vcombine.low %v2103_v62, %v2107_v3  ;;  %v1638_v62 = vld [vmem:[#allocation11 + $0xb8] sm:$0xff] }
 0x323   : > { %4868 = vmatprep.subr.bf16.mxu0 %v7124_v16  ;;  %5032 = vmatprep.subr.bf16.mxu1 %v7126_v17  ;;  %v7165_v16 = vcombine.low %v2104_v54, %v2108_v7  ;;  %v7670_v17 = vld [vmem:[#allocation10] sm:$0xff]  ;;  %v7174_v20 = vcombine.high %v2112_v10, %v2116_v12  ;;  %v7173_v34 = vcombine.low %v2112_v10, %v2116_v12 }
 0x324   : > { %v782_v18 = vrot.slane %v7670_v17, %v781_v0  ;;  %v1653_v17 = vld [vmem:[#allocation11 + $0x130] sm:$0xff] }
 0x326   : > { %4869 = vmatpush1.bf16.msra.mxu0 %v7123_v27  ;;  %5033 = vmatpush1.bf16.msra.mxu1 %v7125_v29  ;;  %v2123_v27 = vld [vmem:[#allocation11 + $0xfe0] sm:$0xff]  ;;  %v2120_v29 = vld [vmem:[#allocation11 + $0xfc8] sm:$0xff]  ;;  %v1593_v36 = vadd.f32 %v8686_v35, %v782_v18  ;;  %v1626_v35 = vld [vmem:[#allocation11 + $0x58] sm:$0xff] }
 0x327   : > { %4870 = vmatprep.subr.bf16.mxu0 %v7132_v32  ;;  %5034 = vmatprep.subr.bf16.mxu1 %v7134_v33  ;;  %v2124_v32 = vld [vmem:[#allocation11 + $0xfe8] sm:$0xff]  ;;  %v7171_v33 = vcombine.low %v2111_v5, %v2115_v9  ;;  %v7180_v37 = vcombine.high %v2119_v21, %v2123_v27  ;;  %v7179_v2 = vcombine.low %v2119_v21, %v2123_v27  ;;  %v1646_v5 = vld [vmem:[#allocation11 + $0xf8] sm:$0xff] }
 0x328   : > { %v7182_v38 = vcombine.high %v2120_v29, %v2124_v32  ;;  %v7181_v48 = vcombine.low %v2120_v29, %v2124_v32  ;;  %v1605_v49 = vmax.f32 %v1593_v36, 0.0  ;;  %v1654_v18 = vld [vmem:[#allocation11 + $0x138] sm:$0xff]  ;;  %v1657_v29 = vld [vmem:[#allocation11 + $0x150] sm:$0xff] }
 0x329   : > { %v1661_v32 = vld [vmem:[#allocation11 + $0x170] sm:$0xff] }
 0x32a   : > { %4871 = vmatpush1.bf16.msra.mxu0 %v7131_v40  ;;  %5035 = vmatpush1.bf16.msra.mxu1 %v7133_v44  ;;  %v1617_v40 = vld [vmem:[#allocation11 + $0x10] sm:$0xff]  ;;  %v8714_v56 = vpack.c.bf16 %v1605_v49, %v1605_v49 }
 0x32b   : > { %4872 = vmatprep.subr.bf16.mxu0 %v7140_v45  ;;  %5036 = vmatprep.subr.bf16.mxu1 %v7142_v47  ;;  %v1621_v44 = vld [vmem:[#allocation11 + $0x30] sm:$0xff]  ;;  %v1618_v45 = vld [vmem:[#allocation11 + $0x18] sm:$0xff] }
 0x32c   : > { %v1622_v47 = vld [vmem:[#allocation11 + $0x38] sm:$0xff]  ;;  %v6680_v50 = vcombine.high %v1617_v40, %v1621_v44  ;;  %v6679_v55 = vcombine.low %v1617_v40, %v1621_v44  ;;  %v1665_v44 = vld [vmem:[#allocation11 + $0x190] sm:$0xff] }
 0x32d   : > { %v6681_v57 = vcombine.low %v1618_v45, %v1622_v47 }
 0x32e   : > { %4873 = vmatpush1.bf16.msra.mxu0 %v7139_v23  ;;  %5037 = vmatpush1.bf16.msra.mxu1 %v7141_v51  ;;  %v6682_v23 = vcombine.high %v1618_v45, %v1622_v47  ;;  %v1625_v51 = vld [vmem:[#allocation11 + $0x50] sm:$0xff]  ;;  %v1666_v47 = vld [vmem:[#allocation11 + $0x198] sm:$0xff] }
 0x32f   : > { %4874 = vmatprep.subr.bf16.mxu0 %v7148_v52  ;;  %5038 = vmatprep.subr.bf16.mxu1 %v7150_v53  ;;  %v1629_v52 = vld [vmem:[#allocation11 + $0x70] sm:$0xff]  ;;  %v1630_v53 = vld [vmem:[#allocation11 + $0x78] sm:$0xff] }
 0x330   : > { %v6688_v25 = vcombine.high %v1625_v51, %v1629_v52  ;;  %v6687_v3 = vcombine.low %v1625_v51, %v1629_v52  ;;  %v6689_v54 = vcombine.low %v1626_v35, %v1630_v53  ;;  %v1669_v45 = vld [vmem:[#allocation11 + $0x1b0] sm:$0xff] }
 0x331   : > { %v1673_v51 = vld [vmem:[#allocation11 + $0x1d0] sm:$0xff] }
 0x332   : > { %4875 = vmatpush1.bf16.msra.mxu0 %v7147_v58  ;;  %5039 = vmatpush1.bf16.msra.mxu1 %v7149_v63  ;;  %v6690_v58 = vcombine.high %v1626_v35, %v1630_v53  ;;  %v1633_v63 = vld [vmem:[#allocation11 + $0x90] sm:$0xff]  ;;  %v1674_v35 = vld [vmem:[#allocation11 + $0x1d8] sm:$0xff] }
 0x333   : > { %4876 = vmatprep.subr.bf16.mxu0 %v7156_v59  ;;  %5040 = vmatprep.subr.bf16.mxu1 %v7158_v61  ;;  %v1637_v59 = vld [vmem:[#allocation11 + $0xb0] sm:$0xff]  ;;  %v1634_v61 = vld [vmem:[#allocation11 + $0x98] sm:$0xff] }
 0x334   : > { %v6696_v7 = vcombine.high %v1633_v63, %v1637_v59  ;;  %v6695_v9 = vcombine.low %v1633_v63, %v1637_v59  ;;  %v6697_v10 = vcombine.low %v1634_v61, %v1638_v62  ;;  %v1677_v52 = vld [vmem:[#allocation11 + $0x1f0] sm:$0xff]  ;;  %v1678_v53 = vld [vmem:[#allocation11 + $0x1f8] sm:$0xff] }
 0x335   : > { %v1681_v63 = vld [vmem:[#allocation11 + $0x210] sm:$0xff] }
 0x336   : > { %4877 = vmatpush1.bf16.msra.mxu0 %v7155_v60  ;;  %5041 = vmatpush1.bf16.msra.mxu1 %v7157_v39  ;;  %v6698_v60 = vcombine.high %v1634_v61, %v1638_v62  ;;  %v1641_v39 = vld [vmem:[#allocation11 + $0xd0] sm:$0xff]  ;;  %v1682_v61 = vld [vmem:[#allocation11 + $0x218] sm:$0xff] }
 0x337   : > { %4878 = vmatprep.subr.bf16.mxu0 %v7164_v1  ;;  %5042 = vmatprep.subr.bf16.mxu1 %v7166_v4  ;;  %v1645_v1 = vld [vmem:[#allocation11 + $0xf0] sm:$0xff]  ;;  %v1642_v4 = vld [vmem:[#allocation11 + $0xd8] sm:$0xff] }
 0x338   : > { %v6704_v12 = vcombine.high %v1641_v39, %v1645_v1  ;;  %v1685_v59 = vld [vmem:[#allocation11 + $0x230] sm:$0xff]  ;;  %v1686_v62 = vld [vmem:[#allocation11 + $0x238] sm:$0xff] }
 0x33a   : > { %4879 = vmatpush1.bf16.msra.mxu0 %v7163_v13  ;;  %5043 = vmatpush1.bf16.msra.mxu1 %v7165_v16  ;;  %v6706_v13 = vcombine.high %v1642_v4, %v1646_v5  ;;  %v1649_v16 = vld [vmem:[#allocation11 + $0x110] sm:$0xff] }
 0x33b   : > { %4880 = vmatprep.subr.bf16.mxu0 %v7172_v19  ;;  %5044 = vmatprep.subr.bf16.mxu1 %v7174_v20  ;;  %v6703_v19 = vcombine.low %v1641_v39, %v1645_v1  ;;  %v6705_v20 = vcombine.low %v1642_v4, %v1646_v5  ;;  %v6712_v21 = vcombine.high %v1649_v16, %v1653_v17  ;;  %v1689_v39 = vld [vmem:[#allocation11 + $0x250] sm:$0xff]  ;;  %v1690_v4 = vld [vmem:[#allocation11 + $0x258] sm:$0xff] }
 0x33c   : > { %v6711_v36 = vcombine.low %v1649_v16, %v1653_v17  ;;  %v1693_v1 = vld [vmem:[#allocation11 + $0x270] sm:$0xff]  ;;  %v1694_v5 = vld [vmem:[#allocation11 + $0x278] sm:$0xff] }
 0x33d   : > { %v1697_v16 = vld [vmem:[#allocation11 + $0x290] sm:$0xff] }
 0x33e   : > { %4881 = vmatpush1.bf16.msra.mxu0 %v7171_v33  ;;  %5045 = vmatpush1.bf16.msra.mxu1 %v7173_v34  ;;  %v1658_v33 = vld [vmem:[#allocation11 + $0x158] sm:$0xff]  ;;  %v1701_v17 = vld [vmem:[#allocation11 + $0x2b0] sm:$0xff] }
 0x33f   : > { %4882 = vmatprep.subr.bf16.mxu0 %v7180_v37  ;;  %5046 = vmatprep.subr.bf16.mxu1 %v7182_v38  ;;  %v1662_v34 = vld [vmem:[#allocation11 + $0x178] sm:$0xff]  ;;  %v6720_v38 = vcombine.high %v1657_v29, %v1661_v32 }
 0x340   : > { %v6722_v40 = vcombine.high %v1658_v33, %v1662_v34  ;;  %v6721_v49 = vcombine.low %v1658_v33, %v1662_v34  ;;  %v1706_v33 = vld [vmem:[#allocation11 + $0x2d8] sm:$0xff] }
 0x341   : > { %v1710_v34 = vld [vmem:[#allocation11 + $0x2f8] sm:$0xff] }
 0x342   : > { %4883 = vmatpush1.bf16.msra.mxu0 %v7179_v2  ;;  %5047 = vmatpush1.bf16.msra.mxu1 %v7181_v48  ;;  %v1670_v2 = vld [vmem:[#allocation11 + $0x1b8] sm:$0xff]  ;;  %v6719_v48 = vcombine.low %v1657_v29, %v1661_v32  ;;  %v1705_v29 = vld [vmem:[#allocation11 + $0x2d0] sm:$0xff] }
 0x343   : > { %5057 = vmatprep.subr.bf16.mxu0 %v6680_v50  ;;  %5221 = vmatprep.subr.bf16.mxu1 %v6682_v23  ;;  %v6728_v50 = vcombine.high %v1665_v44, %v1669_v45  ;;  %v6730_v23 = vcombine.high %v1666_v47, %v1670_v2  ;;  %v1709_v32 = vld [vmem:[#allocation11 + $0x2f0] sm:$0xff] }
 0x345   : > { %4885 = vmatmul.mubr.bf16.vlgmr.msra.gmra.mrb[8].mxu0 %v8714_v56  ;;  %5049 = vmatmul.mubr.bf16.vlgmr.msra.gmra.mrb[8].mxu1 %v8714_v56 }
 0x346   : > { %5058 = vmatpush1.bf16.msra.mxu0 %v6679_v55  ;;  %5089 = vmatprep.mubr.bf16.mxu0 %v8646_v42  ;;  %v6727_v55 = vcombine.low %v1665_v44, %v1669_v45  ;;  %v1713_v44 = vld [vmem:[#allocation11 + $0x310] sm:$0xff] }
 0x347   : > { %5222 = vmatpush1.bf16.msra.mxu1 %v6681_v57  ;;  %5253 = vmatprep.mubr.bf16.mxu1 %v8646_v42  ;;  %v1650_v42 = vld [vmem:[#allocation11 + $0x118] sm:$0xff]  ;;  %v6729_v57 = vcombine.low %v1666_v47, %v1670_v2  ;;  %v1717_v45 = vld [vmem:[#allocation11 + $0x330] sm:$0xff] }
 0x348   : > { %5059 = vmatprep.subr.bf16.mxu0 %v6688_v25  ;;  %5223 = vmatprep.subr.bf16.mxu1 %v6690_v58  ;;  %v6714_v27 = vcombine.high %v1650_v42, %v1654_v18  ;;  %v6713_v37 = vcombine.low %v1650_v42, %v1654_v18  ;;  %v6736_v25 = vcombine.high %v1673_v51, %v1677_v52  ;;  %v1698_v42 = vld [vmem:[#allocation11 + $0x298] sm:$0xff] }
 0x349   : > { %v6738_v58 = vcombine.high %v1674_v35, %v1678_v53  ;;  %v1702_v18 = vld [vmem:[#allocation11 + $0x2b8] sm:$0xff] }
 0x34a   : > { %5060 = vmatpush1.bf16.msra.mxu0 %v6687_v3  ;;  %v6735_v3 = vcombine.low %v1673_v51, %v1677_v52  ;;  %v1714_v47 = vld [vmem:[#allocation11 + $0x318] sm:$0xff]  ;;  %v1721_v51 = vld [vmem:[#allocation11 + $0x350] sm:$0xff] }
 0x34b   : > { %5224 = vmatpush1.bf16.msra.mxu1 %v6689_v54  ;;  %5061 = vmatprep.subr.bf16.mxu0 %v6696_v7  ;;  %v6737_v54 = vcombine.low %v1674_v35, %v1678_v53  ;;  %v6744_v7 = vcombine.high %v1681_v63, %v1685_v59  ;;  %v1718_v2 = vld [vmem:[#allocation11 + $0x338] sm:$0xff]  ;;  %v1725_v52 = vld [vmem:[#allocation11 + $0x370] sm:$0xff] }
 0x34c   : > { %5225 = vmatprep.subr.bf16.mxu1 %v6698_v60  ;;  %v6746_v60 = vcombine.high %v1682_v61, %v1686_v62  ;;  %v1722_v35 = vld [vmem:[#allocation11 + $0x358] sm:$0xff] }
 0x34d   : > { %v1726_v53 = vld [vmem:[#allocation11 + $0x378] sm:$0xff] }
 0x34e   : > { %5062 = vmatpush1.bf16.msra.mxu0 %v6695_v9  ;;  %v6743_v9 = vcombine.low %v1681_v63, %v1685_v59  ;;  %v1729_v63 = vld [vmem:[#allocation11 + $0x390] sm:$0xff] }
 0x34f   : > { %5226 = vmatpush1.bf16.msra.mxu1 %v6697_v10  ;;  %5063 = vmatprep.subr.bf16.mxu0 %v6704_v12  ;;  %v6745_v10 = vcombine.low %v1682_v61, %v1686_v62  ;;  %v6752_v12 = vcombine.high %v1689_v39, %v1693_v1  ;;  %v1733_v59 = vld [vmem:[#allocation11 + $0x3b0] sm:$0xff]  ;;  %v1730_v61 = vld [vmem:[#allocation11 + $0x398] sm:$0xff] }
 0x350   : > { %5227 = vmatprep.subr.bf16.mxu1 %v6706_v13  ;;  %v6754_v13 = vcombine.high %v1690_v4, %v1694_v5  ;;  %v1734_v62 = vld [vmem:[#allocation11 + $0x3b8] sm:$0xff] }
 0x352   : > { %5064 = vmatpush1.bf16.msra.mxu0 %v6703_v19  ;;  %v6751_v19 = vcombine.low %v1689_v39, %v1693_v1  ;;  %v1737_v39 = vld [vmem:[#allocation11 + $0x3d0] sm:$0xff] }
 0x353   : > { %5228 = vmatpush1.bf16.msra.mxu1 %v6705_v20  ;;  %5065 = vmatprep.subr.bf16.mxu0 %v6712_v21  ;;  %v6753_v20 = vcombine.low %v1690_v4, %v1694_v5  ;;  %v6760_v21 = vcombine.high %v1697_v16, %v1701_v17  ;;  %v1741_v1 = vld [vmem:[#allocation11 + $0x3f0] sm:$0xff]  ;;  %v1738_v4 = vld [vmem:[#allocation11 + $0x3d8] sm:$0xff] }
 0x354   : > { %5229 = vmatprep.subr.bf16.mxu1 %v6714_v27  ;;  %v6762_v27 = vcombine.high %v1698_v42, %v1702_v18  ;;  %v1742_v5 = vld [vmem:[#allocation11 + $0x3f8] sm:$0xff] }
 0x356   : > { %5066 = vmatpush1.bf16.msra.mxu0 %v6711_v36  ;;  %v6759_v36 = vcombine.low %v1697_v16, %v1701_v17  ;;  %v1745_v16 = vld [vmem:[#allocation11 + $0x410] sm:$0xff] }
 0x357   : > { %5230 = vmatpush1.bf16.msra.mxu1 %v6713_v37  ;;  %5067 = vmatprep.subr.bf16.mxu0 %v6720_v38  ;;  %v6761_v37 = vcombine.low %v1698_v42, %v1702_v18  ;;  %v6768_v38 = vcombine.high %v1705_v29, %v1709_v32  ;;  %v1749_v17 = vld [vmem:[#allocation11 + $0x430] sm:$0xff]  ;;  %v1746_v42 = vld [vmem:[#allocation11 + $0x418] sm:$0xff] }
 0x358   : > { %5231 = vmatprep.subr.bf16.mxu1 %v6722_v40  ;;  %v6770_v40 = vcombine.high %v1706_v33, %v1710_v34  ;;  %v1750_v18 = vld [vmem:[#allocation11 + $0x438] sm:$0xff] }
 0x35a   : > { %5068 = vmatpush1.bf16.msra.mxu0 %v6719_v48  ;;  %v6767_v48 = vcombine.low %v1705_v29, %v1709_v32  ;;  %v1753_v29 = vld [vmem:[#allocation11 + $0x450] sm:$0xff] }
 0x35b   : > { %5232 = vmatpush1.bf16.msra.mxu1 %v6721_v49  ;;  %5069 = vmatprep.subr.bf16.mxu0 %v6728_v50  ;;  %v6769_v49 = vcombine.low %v1706_v33, %v1710_v34  ;;  %v6776_v50 = vcombine.high %v1713_v44, %v1717_v45  ;;  %v1757_v32 = vld [vmem:[#allocation11 + $0x470] sm:$0xff]  ;;  %v6807_v33 = vcombine.low %v1745_v16, %v1749_v17  ;;  %v1754_v34 = vld [vmem:[#allocation11 + $0x458] sm:$0xff] }
 0x35c   : > { %5233 = vmatprep.subr.bf16.mxu1 %v6730_v23  ;;  %v6778_v23 = vcombine.high %v1714_v47, %v1718_v2 }
 0x35e   : > { %5070 = vmatpush1.bf16.msra.mxu0 %v6727_v55  ;;  %v6775_v55 = vcombine.low %v1713_v44, %v1717_v45  ;;  %v1765_v44 = vld [vmem:[#allocation11 + $0x4b0] sm:$0xff] }
 0x35f   : > { %5234 = vmatpush1.bf16.msra.mxu1 %v6729_v57  ;;  %5071 = vmatprep.subr.bf16.mxu0 %v6736_v25  ;;  %v6777_v57 = vcombine.low %v1714_v47, %v1718_v2  ;;  %v6784_v25 = vcombine.high %v1721_v51, %v1725_v52  ;;  %v1762_v47 = vld [vmem:[#allocation11 + $0x498] sm:$0xff] }
 0x360   : > { %5235 = vmatprep.subr.bf16.mxu1 %v6738_v58  ;;  %v6786_v58 = vcombine.high %v1722_v35, %v1726_v53  ;;  %v1766_v2 = vld [vmem:[#allocation11 + $0x4b8] sm:$0xff] }
 0x362   : > { %5072 = vmatpush1.bf16.msra.mxu0 %v6735_v3  ;;  %v6783_v3 = vcombine.low %v1721_v51, %v1725_v52  ;;  %v1769_v51 = vld [vmem:[#allocation11 + $0x4d0] sm:$0xff] }
 0x363   : > { %5236 = vmatpush1.bf16.msra.mxu1 %v6737_v54  ;;  %5073 = vmatprep.subr.bf16.mxu0 %v6744_v7  ;;  %v6785_v54 = vcombine.low %v1722_v35, %v1726_v53  ;;  %v6792_v7 = vcombine.high %v1729_v63, %v1733_v59  ;;  %v1773_v52 = vld [vmem:[#allocation11 + $0x4f0] sm:$0xff]  ;;  %v1770_v35 = vld [vmem:[#allocation11 + $0x4d8] sm:$0xff] }
 0x364   : > { %5237 = vmatprep.subr.bf16.mxu1 %v6746_v60  ;;  %v6794_v60 = vcombine.high %v1730_v61, %v1734_v62  ;;  %v1774_v53 = vld [vmem:[#allocation11 + $0x4f8] sm:$0xff] }
 0x366   : > { %5074 = vmatpush1.bf16.msra.mxu0 %v6743_v9  ;;  %v6791_v9 = vcombine.low %v1729_v63, %v1733_v59  ;;  %v1781_v63 = vld [vmem:[#allocation11 + $0x530] sm:$0xff]  ;;  %v1778_v59 = vld [vmem:[#allocation11 + $0x518] sm:$0xff] }
 0x367   : > { %5238 = vmatpush1.bf16.msra.mxu1 %v6745_v10  ;;  %5075 = vmatprep.subr.bf16.mxu0 %v6752_v12  ;;  %v6793_v10 = vcombine.low %v1730_v61, %v1734_v62  ;;  %v6800_v12 = vcombine.high %v1737_v39, %v1741_v1  ;;  %v1782_v61 = vld [vmem:[#allocation11 + $0x538] sm:$0xff]  ;;  %v6833_v62 = vcombine.low %v1770_v35, %v1774_v53 }
 0x368   : > { %5239 = vmatprep.subr.bf16.mxu1 %v6754_v13  ;;  %v6802_v13 = vcombine.high %v1738_v4, %v1742_v5 }
 0x36a   : > { %5076 = vmatpush1.bf16.msra.mxu0 %v6751_v19  ;;  %v6799_v19 = vcombine.low %v1737_v39, %v1741_v1  ;;  %v1786_v39 = vld [vmem:[#allocation11 + $0x558] sm:$0xff] }
 0x36b   : > { %5240 = vmatpush1.bf16.msra.mxu1 %v6753_v20  ;;  %5077 = vmatprep.subr.bf16.mxu0 %v6760_v21  ;;  %v6801_v20 = vcombine.low %v1738_v4, %v1742_v5  ;;  %v6808_v21 = vcombine.high %v1745_v16, %v1749_v17  ;;  %v1790_v1 = vld [vmem:[#allocation11 + $0x578] sm:$0xff]  ;;  %v6841_v5 = vcombine.low %v1778_v59, %v1782_v61 }
 0x36c   : > { %5241 = vmatprep.subr.bf16.mxu1 %v6762_v27  ;;  %v6810_v27 = vcombine.high %v1746_v42, %v1750_v18  ;;  %v1794_v16 = vld [vmem:[#allocation11 + $0x598] sm:$0xff] }
 0x36d   : > { %v1798_v17 = vld [vmem:[#allocation11 + $0x5b8] sm:$0xff] }
 0x36e   : > { %5078 = vmatpush1.bf16.msra.mxu0 %v6759_v36  ;;  %v1758_v36 = vld [vmem:[#allocation11 + $0x478] sm:$0xff] }
 0x36f   : > { %5242 = vmatpush1.bf16.msra.mxu1 %v6761_v37  ;;  %5079 = vmatprep.subr.bf16.mxu0 %v6768_v38  ;;  %v6809_v37 = vcombine.low %v1746_v42, %v1750_v18  ;;  %v6816_v38 = vcombine.high %v1753_v29, %v1757_v32  ;;  %v6818_v45 = vcombine.high %v1754_v34, %v1758_v36 }
 0x370   : > { %5243 = vmatprep.subr.bf16.mxu1 %v6770_v40  ;;  %v1761_v40 = vld [vmem:[#allocation11 + $0x490] sm:$0xff]  ;;  %v6849_v18 = vcombine.low %v1786_v39, %v1790_v1 }
 0x372   : > { %5080 = vmatpush1.bf16.msra.mxu0 %v6767_v48  ;;  %v6815_v48 = vcombine.low %v1753_v29, %v1757_v32  ;;  %v1802_v29 = vld [vmem:[#allocation11 + $0x5d8] sm:$0xff] }
 0x373   : > { %5244 = vmatpush1.bf16.msra.mxu1 %v6769_v49  ;;  %5081 = vmatprep.subr.bf16.mxu0 %v6776_v50  ;;  %v6817_v49 = vcombine.low %v1754_v34, %v1758_v36  ;;  %v6824_v50 = vcombine.high %v1761_v40, %v1765_v44  ;;  %v1806_v32 = vld [vmem:[#allocation11 + $0x5f8] sm:$0xff]  ;;  %v6857_v34 = vcombine.low %v1794_v16, %v1798_v17 }
 0x374   : > { %5245 = vmatprep.subr.bf16.mxu1 %v6778_v23  ;;  %v6826_v23 = vcombine.high %v1762_v47, %v1766_v2 }
 0x376   : > { %5082 = vmatpush1.bf16.msra.mxu0 %v6775_v55  ;;  %v6823_v55 = vcombine.low %v1761_v40, %v1765_v44  ;;  %v1813_v40 = vld [vmem:[#allocation11 + $0x630] sm:$0xff]  ;;  %v1810_v44 = vld [vmem:[#allocation11 + $0x618] sm:$0xff] }
 0x377   : > { %5246 = vmatpush1.bf16.msra.mxu1 %v6777_v57  ;;  %5083 = vmatprep.subr.bf16.mxu0 %v6784_v25  ;;  %v6832_v57 = vcombine.high %v1769_v51, %v1773_v52  ;;  %v6834_v25 = vcombine.high %v1770_v35, %v1774_v53 }
 0x378   : > { %5247 = vmatprep.subr.bf16.mxu1 %v6786_v58  ;;  %v1777_v58 = vld [vmem:[#allocation11 + $0x510] sm:$0xff] }
 0x379   : > { %v6839_v4 = vcombine.low %v1777_v58, %v1781_v63 }
 0x37a   : > { %5084 = vmatpush1.bf16.msra.mxu0 %v6783_v3  ;;  %v6840_v3 = vcombine.high %v1777_v58, %v1781_v63  ;;  %v1826_v58 = vld [vmem:[#allocation11 + $0x698] sm:$0xff] }
 0x37b   : > { %5248 = vmatpush1.bf16.msra.mxu1 %v6785_v54  ;;  %5085 = vmatprep.subr.bf16.mxu0 %v6792_v7  ;;  %v6842_v54 = vcombine.high %v1778_v59, %v1782_v61  ;;  %v1785_v7 = vld [vmem:[#allocation11 + $0x550] sm:$0xff]  ;;  %v1830_v63 = vld [vmem:[#allocation11 + $0x6b8] sm:$0xff] }
 0x37c   : > { %5249 = vmatprep.subr.bf16.mxu1 %v6794_v60  ;;  %v1789_v60 = vld [vmem:[#allocation11 + $0x570] sm:$0xff] }
 0x37d   : > { %v6847_v42 = vcombine.low %v1785_v7, %v1789_v60 }
 0x37e   : > { %5086 = vmatpush1.bf16.msra.mxu0 %v6791_v9  ;;  %v6848_v9 = vcombine.high %v1785_v7, %v1789_v60  ;;  %v1834_v7 = vld [vmem:[#allocation11 + $0x6d8] sm:$0xff] }
 0x37f   : > { %5250 = vmatpush1.bf16.msra.mxu1 %v6793_v10  ;;  %5087 = vmatprep.subr.bf16.mxu0 %v6800_v12  ;;  %v6850_v10 = vcombine.high %v1786_v39, %v1790_v1  ;;  %v1793_v12 = vld [vmem:[#allocation11 + $0x590] sm:$0xff]  ;;  %v1838_v60 = vld [vmem:[#allocation11 + $0x6f8] sm:$0xff]  ;;  %v6889_v1 = vcombine.low %v1826_v58, %v1830_v63 }
 0x380   : > { %5251 = vmatprep.subr.bf16.mxu1 %v6802_v13  ;;  %v1797_v13 = vld [vmem:[#allocation11 + $0x5b0] sm:$0xff] }
 0x382   : > { %5088 = vmatpush1.bf16.msra.mxu0 %v6799_v19  ;;  %v6856_v19 = vcombine.high %v1793_v12, %v1797_v13 }
 0x383   : > { %5252 = vmatpush1.bf16.msra.mxu1 %v6801_v20  ;;  %5098 = vmatprep.subr.bf16.mxu0 %v6808_v21  ;;  %v6858_v20 = vcombine.high %v1794_v16, %v1798_v17  ;;  %v1801_v21 = vld [vmem:[#allocation11 + $0x5d0] sm:$0xff]  ;;  %v6897_v17 = vcombine.low %v1834_v7, %v1838_v60 }
 0x384   : > { %5262 = vmatprep.subr.bf16.mxu1 %v6810_v27  ;;  %v1805_v27 = vld [vmem:[#allocation11 + $0x5f0] sm:$0xff] }
 0x385   : > { %5090 = vmatmul.mubr.bf16.vlgmr.msra.gmra.mrb[12].mxu0 %v8648_v43  ;;  %v6864_v36 = vcombine.high %v1801_v21, %v1805_v27 }
 0x386   : > { %5254 = vmatmul.mubr.bf16.vlgmr.msra.gmra.mrb[12].mxu1 %v8648_v43  ;;  %5099 = vmatpush1.bf16.msra.mxu0 %v6807_v33  ;;  %v6825_v43 = vcombine.low %v1762_v47, %v1766_v2  ;;  %v6855_v33 = vcombine.low %v1793_v12, %v1797_v13  ;;  %v6863_v47 = vcombine.low %v1801_v21, %v1805_v27  ;;  %v1842_v12 = vld [vmem:[#allocation11 + $0x718] sm:$0xff] }
 0x387   : > { %5130 = vmatprep.mubr.bf16.mxu0 %v8665_v6  ;;  %5263 = vmatpush1.bf16.msra.mxu1 %v6809_v37  ;;  %v6866_v37 = vcombine.high %v1802_v29, %v1806_v32  ;;  %v6865_v2 = vcombine.low %v1802_v29, %v1806_v32  ;;  %v1846_v13 = vld [vmem:[#allocation11 + $0x738] sm:$0xff] }
 0x388   : > { %5294 = vmatprep.mubr.bf16.mxu1 %v8665_v6  ;;  %5100 = vmatprep.subr.bf16.mxu0 %v6816_v38  ;;  %v6831_v6 = vcombine.low %v1769_v51, %v1773_v52  ;;  %v1809_v38 = vld [vmem:[#allocation11 + $0x610] sm:$0xff]  ;;  %v1818_v51 = vld [vmem:[#allocation11 + $0x658] sm:$0xff]  ;;  %v6905_v32 = vcombine.low %v1842_v12, %v1846_v13 }
 0x389   : > { %5264 = vmatprep.subr.bf16.mxu1 %v6818_v45  ;;  %v1814_v45 = vld [vmem:[#allocation11 + $0x638] sm:$0xff]  ;;  %v6871_v35 = vcombine.low %v1809_v38, %v1813_v40 }
 0x38a   : > { %5101 = vmatpush1.bf16.msra.mxu0 %v6815_v48  ;;  %v6872_v48 = vcombine.high %v1809_v38, %v1813_v40  ;;  %v1822_v52 = vld [vmem:[#allocation11 + $0x678] sm:$0xff]  ;;  %v6873_v53 = vcombine.low %v1810_v44, %v1814_v45 }
 0x38b   : > { %5265 = vmatpush1.bf16.msra.mxu1 %v6817_v49  ;;  %5102 = vmatprep.subr.bf16.mxu0 %v6824_v50  ;;  %v6874_v49 = vcombine.high %v1810_v44, %v1814_v45  ;;  %v1817_v50 = vld [vmem:[#allocation11 + $0x650] sm:$0xff]  ;;  %v6881_v61 = vcombine.low %v1818_v51, %v1822_v52  ;;  %v1850_v21 = vld [vmem:[#allocation11 + $0x758] sm:$0xff] }
 0x38c   : > { %5266 = vmatprep.subr.bf16.mxu1 %v6826_v23  ;;  %v1821_v23 = vld [vmem:[#allocation11 + $0x670] sm:$0xff]  ;;  %v1854_v27 = vld [vmem:[#allocation11 + $0x778] sm:$0xff] }
 0x38d   : > { %v6879_v59 = vcombine.low %v1817_v50, %v1821_v23  ;;  %v1858_v38 = vld [vmem:[#allocation11 + $0x798] sm:$0xff]  ;;  %v6913_v45 = vcombine.low %v1850_v21, %v1854_v27 }
 0x38e   : > { %5103 = vmatpush1.bf16.msra.mxu0 %v6823_v55  ;;  %v6880_v55 = vcombine.high %v1817_v50, %v1821_v23  ;;  %v1862_v40 = vld [vmem:[#allocation11 + $0x7b8] sm:$0xff] }
 0x38f   : > { %5267 = vmatpush1.bf16.msra.mxu1 %v6825_v43  ;;  %5104 = vmatprep.subr.bf16.mxu0 %v6832_v57  ;;  %v6882_v43 = vcombine.high %v1818_v51, %v1822_v52  ;;  %v1825_v57 = vld [vmem:[#allocation11 + $0x690] sm:$0xff]  ;;  %v1866_v50 = vld [vmem:[#allocation11 + $0x7d8] sm:$0xff]  ;;  %v6921_v52 = vcombine.low %v1858_v38, %v1862_v40 }
 0x390   : > { %5268 = vmatprep.subr.bf16.mxu1 %v6834_v25  ;;  %v1829_v25 = vld [vmem:[#allocation11 + $0x6b0] sm:$0xff]  ;;  %v1870_v23 = vld [vmem:[#allocation11 + $0x7f8] sm:$0xff] }
 0x391   : > { %v6887_v39 = vcombine.low %v1825_v57, %v1829_v25 }
 0x392   : > { %5105 = vmatpush1.bf16.msra.mxu0 %v6831_v6  ;;  %v6888_v6 = vcombine.high %v1825_v57, %v1829_v25  ;;  %v1874_v57 = vld [vmem:[#allocation11 + $0x818] sm:$0xff] }
 0x393   : > { %5269 = vmatpush1.bf16.msra.mxu1 %v6833_v62  ;;  %5106 = vmatprep.subr.bf16.mxu0 %v6840_v3  ;;  %v6890_v62 = vcombine.high %v1826_v58, %v1830_v63  ;;  %v1833_v3 = vld [vmem:[#allocation11 + $0x6d0] sm:$0xff]  ;;  %v1878_v25 = vld [vmem:[#allocation11 + $0x838] sm:$0xff]  ;;  %v6929_v63 = vcombine.low %v1866_v50, %v1870_v23 }
 0x394   : > { %5270 = vmatprep.subr.bf16.mxu1 %v6842_v54  ;;  %v1837_v54 = vld [vmem:[#allocation11 + $0x6f0] sm:$0xff] }
 0x395   : > { %v6895_v16 = vcombine.low %v1833_v3, %v1837_v54 }
 0x396   : > { %5107 = vmatpush1.bf16.msra.mxu0 %v6839_v4  ;;  %v6896_v4 = vcombine.high %v1833_v3, %v1837_v54  ;;  %v1882_v54 = vld [vmem:[#allocation11 + $0x858] sm:$0xff] }
 0x397   : > { %5271 = vmatpush1.bf16.msra.mxu1 %v6841_v5  ;;  %5108 = vmatprep.subr.bf16.mxu0 %v6848_v9  ;;  %v6898_v5 = vcombine.high %v1834_v7, %v1838_v60  ;;  %v1841_v9 = vld [vmem:[#allocation11 + $0x710] sm:$0xff]  ;;  %v1886_v7 = vld [vmem:[#allocation11 + $0x878] sm:$0xff]  ;;  %v6937_v60 = vcombine.low %v1874_v57, %v1878_v25 }
 0x398   : > { %5272 = vmatprep.subr.bf16.mxu1 %v6850_v10  ;;  %v1845_v10 = vld [vmem:[#allocation11 + $0x730] sm:$0xff] }
 0x399   : > { %v6903_v29 = vcombine.low %v1841_v9, %v1845_v10 }
 0x39a   : > { %5109 = vmatpush1.bf16.msra.mxu0 %v6847_v42  ;;  %v6904_v42 = vcombine.high %v1841_v9, %v1845_v10  ;;  %v1890_v9 = vld [vmem:[#allocation11 + $0x898] sm:$0xff] }
 0x39b   : > { %5273 = vmatpush1.bf16.msra.mxu1 %v6849_v18  ;;  %5110 = vmatprep.subr.bf16.mxu0 %v6856_v19  ;;  %v6906_v18 = vcombine.high %v1842_v12, %v1846_v13  ;;  %v1849_v19 = vld [vmem:[#allocation11 + $0x750] sm:$0xff]  ;;  %v1894_v10 = vld [vmem:[#allocation11 + $0x8b8] sm:$0xff]  ;;  %v6945_v13 = vcombine.low %v1882_v54, %v1886_v7 }
 0x39c   : > { %5274 = vmatprep.subr.bf16.mxu1 %v6858_v20  ;;  %v1853_v20 = vld [vmem:[#allocation11 + $0x770] sm:$0xff] }
 0x39d   : > { %v6911_v44 = vcombine.low %v1849_v19, %v1853_v20 }
 0x39e   : > { %5111 = vmatpush1.bf16.msra.mxu0 %v6855_v33  ;;  %v6912_v33 = vcombine.high %v1849_v19, %v1853_v20  ;;  %v1898_v19 = vld [vmem:[#allocation11 + $0x8d8] sm:$0xff] }
 0x39f   : > { %5275 = vmatpush1.bf16.msra.mxu1 %v6857_v34  ;;  %5112 = vmatprep.subr.bf16.mxu0 %v6864_v36  ;;  %v6914_v34 = vcombine.high %v1850_v21, %v1854_v27  ;;  %v1857_v36 = vld [vmem:[#allocation11 + $0x790] sm:$0xff]  ;;  %v1902_v20 = vld [vmem:[#allocation11 + $0x8f8] sm:$0xff] }
 0x3a0   : > { %5276 = vmatprep.subr.bf16.mxu1 %v6866_v37  ;;  %v1861_v37 = vld [vmem:[#allocation11 + $0x7b0] sm:$0xff] }
 0x3a1   : > { %v6919_v51 = vcombine.low %v1857_v36, %v1861_v37 }
 0x3a2   : > { %5113 = vmatpush1.bf16.msra.mxu0 %v6863_v47  ;;  %v6920_v47 = vcombine.high %v1857_v36, %v1861_v37  ;;  %v1910_v36 = vld [vmem:[#allocation11 + $0x938] sm:$0xff]  ;;  %v6961_v37 = vcombine.low %v1898_v19, %v1902_v20 }
 0x3a3   : > { %5277 = vmatpush1.bf16.msra.mxu1 %v6865_v2  ;;  %5114 = vmatprep.subr.bf16.mxu0 %v6872_v48  ;;  %v6922_v2 = vcombine.high %v1858_v38, %v1862_v40  ;;  %v1865_v48 = vld [vmem:[#allocation11 + $0x7d0] sm:$0xff] }
 0x3a4   : > { %5278 = vmatprep.subr.bf16.mxu1 %v6874_v49  ;;  %v1869_v49 = vld [vmem:[#allocation11 + $0x7f0] sm:$0xff] }
 0x3a5   : > { %v6927_v58 = vcombine.low %v1865_v48, %v1869_v49 }
 0x3a6   : > { %5115 = vmatpush1.bf16.msra.mxu0 %v6871_v35  ;;  %v6928_v35 = vcombine.high %v1865_v48, %v1869_v49 }
 0x3a7   : > { %5279 = vmatpush1.bf16.msra.mxu1 %v6873_v53  ;;  %5116 = vmatprep.subr.bf16.mxu0 %v6880_v55  ;;  %v6930_v53 = vcombine.high %v1866_v50, %v1870_v23  ;;  %v1873_v55 = vld [vmem:[#allocation11 + $0x810] sm:$0xff] }
 0x3a8   : > { %5280 = vmatprep.subr.bf16.mxu1 %v6882_v43  ;;  %v1877_v43 = vld [vmem:[#allocation11 + $0x830] sm:$0xff] }
 0x3a9   : > { %v6935_v3 = vcombine.low %v1873_v55, %v1877_v43 }
 0x3aa   : > { %5117 = vmatpush1.bf16.msra.mxu0 %v6879_v59  ;;  %v6936_v59 = vcombine.high %v1873_v55, %v1877_v43 }
 0x3ab   : > { %5281 = vmatpush1.bf16.msra.mxu1 %v6881_v61  ;;  %5118 = vmatprep.subr.bf16.mxu0 %v6888_v6  ;;  %v6938_v61 = vcombine.high %v1874_v57, %v1878_v25  ;;  %v1881_v6 = vld [vmem:[#allocation11 + $0x850] sm:$0xff] }
 0x3ac   : > { %5282 = vmatprep.subr.bf16.mxu1 %v6890_v62  ;;  %v1885_v62 = vld [vmem:[#allocation11 + $0x870] sm:$0xff] }
 0x3ad   : > { %v6943_v12 = vcombine.low %v1881_v6, %v1885_v62 }
 0x3ae   : > { %5119 = vmatpush1.bf16.msra.mxu0 %v6887_v39  ;;  %v6944_v39 = vcombine.high %v1881_v6, %v1885_v62 }
 0x3af   : > { %5283 = vmatpush1.bf16.msra.mxu1 %v6889_v1  ;;  %5120 = vmatprep.subr.bf16.mxu0 %v6896_v4  ;;  %v1889_v1 = vld [vmem:[#allocation11 + $0x890] sm:$0xff] }
 0x3b0   : > { %5284 = vmatprep.subr.bf16.mxu1 %v6898_v5  ;;  %v1893_v4 = vld [vmem:[#allocation11 + $0x8b0] sm:$0xff]  ;;  %v6946_v5 = vcombine.high %v1882_v54, %v1886_v7 }
 0x3b1   : > { %v6951_v21 = vcombine.low %v1889_v1, %v1893_v4  ;;  %v1937_v7 = vld [vmem:[#allocation11 + $0xa10] sm:$0xff] }
 0x3b2   : > { %5121 = vmatpush1.bf16.msra.mxu0 %v6895_v16  ;;  %v6952_v16 = vcombine.high %v1889_v1, %v1893_v4  ;;  %v1942_v1 = vld [vmem:[#allocation11 + $0xa38] sm:$0xff] }
 0x3b3   : > { %5285 = vmatpush1.bf16.msra.mxu1 %v6897_v17  ;;  %5122 = vmatprep.subr.bf16.mxu0 %v6904_v42  ;;  %v6954_v17 = vcombine.high %v1890_v9, %v1894_v10  ;;  %v1897_v42 = vld [vmem:[#allocation11 + $0x8d0] sm:$0xff] }
 0x3b4   : > { %5286 = vmatprep.subr.bf16.mxu1 %v6906_v18  ;;  %v1901_v18 = vld [vmem:[#allocation11 + $0x8f0] sm:$0xff] }
 0x3b5   : > { %v6960_v27 = vcombine.high %v1897_v42, %v1901_v18 }
 0x3b6   : > { %5123 = vmatpush1.bf16.msra.mxu0 %v6903_v29  ;;  %v6962_v29 = vcombine.high %v1898_v19, %v1902_v20 }
 0x3b7   : > { %5287 = vmatpush1.bf16.msra.mxu1 %v6905_v32  ;;  %5124 = vmatprep.subr.bf16.mxu0 %v6912_v33  ;;  %v1905_v32 = vld [vmem:[#allocation11 + $0x910] sm:$0xff] }
 0x3b8   : > { %5288 = vmatprep.subr.bf16.mxu1 %v6914_v34  ;;  %v1909_v33 = vld [vmem:[#allocation11 + $0x930] sm:$0xff]  ;;  %v1906_v34 = vld [vmem:[#allocation11 + $0x918] sm:$0xff] }
 0x3b9   : > { %v6968_v38 = vcombine.high %v1905_v32, %v1909_v33  ;;  %v6970_v40 = vcombine.high %v1906_v34, %v1910_v36  ;;  %v6967_v48 = vcombine.low %v1905_v32, %v1909_v33  ;;  %v6969_v49 = vcombine.low %v1906_v34, %v1910_v36 }
 0x3ba   : > { %5125 = vmatpush1.bf16.msra.mxu0 %v6911_v44  ;;  %v1913_v44 = vld [vmem:[#allocation11 + $0x950] sm:$0xff] }
 0x3bb   : > { %5289 = vmatpush1.bf16.msra.mxu1 %v6913_v45  ;;  %5126 = vmatprep.subr.bf16.mxu0 %v6920_v47  ;;  %v1917_v45 = vld [vmem:[#allocation11 + $0x970] sm:$0xff]  ;;  %v1914_v47 = vld [vmem:[#allocation11 + $0x958] sm:$0xff] }
 0x3bc   : > { %5290 = vmatprep.subr.bf16.mxu1 %v6922_v2  ;;  %v1918_v2 = vld [vmem:[#allocation11 + $0x978] sm:$0xff]  ;;  %v6976_v50 = vcombine.high %v1913_v44, %v1917_v45  ;;  %v6975_v55 = vcombine.low %v1913_v44, %v1917_v45 }
 0x3bd   : > { %v6978_v23 = vcombine.high %v1914_v47, %v1918_v2  ;;  %v6977_v43 = vcombine.low %v1914_v47, %v1918_v2 }
 0x3be   : > { %5127 = vmatpush1.bf16.msra.mxu0 %v6919_v51  ;;  %v1921_v51 = vld [vmem:[#allocation11 + $0x990] sm:$0xff] }
 0x3bf   : > { %5291 = vmatpush1.bf16.msra.mxu1 %v6921_v52  ;;  %5128 = vmatprep.subr.bf16.mxu0 %v6928_v35  ;;  %v1925_v52 = vld [vmem:[#allocation11 + $0x9b0] sm:$0xff]  ;;  %v1922_v35 = vld [vmem:[#allocation11 + $0x998] sm:$0xff] }
 0x3c0   : > { %5292 = vmatprep.subr.bf16.mxu1 %v6930_v53  ;;  %v1926_v53 = vld [vmem:[#allocation11 + $0x9b8] sm:$0xff]  ;;  %v6984_v57 = vcombine.high %v1921_v51, %v1925_v52  ;;  %v6983_v6 = vcombine.low %v1921_v51, %v1925_v52 }
 0x3c1   : > { %v6986_v25 = vcombine.high %v1922_v35, %v1926_v53  ;;  %v6985_v62 = vcombine.low %v1922_v35, %v1926_v53 }
 0x3c2   : > { %5129 = vmatpush1.bf16.msra.mxu0 %v6927_v58  ;;  %v1929_v58 = vld [vmem:[#allocation11 + $0x9d0] sm:$0xff] }
 0x3c3   : > { %5293 = vmatpush1.bf16.msra.mxu1 %v6929_v63  ;;  %5139 = vmatprep.subr.bf16.mxu0 %v6936_v59  ;;  %v1933_v63 = vld [vmem:[#allocation11 + $0x9f0] sm:$0xff]  ;;  %v1930_v59 = vld [vmem:[#allocation11 + $0x9d8] sm:$0xff] }
 0x3c4   : > { %5303 = vmatprep.subr.bf16.mxu1 %v6938_v61  ;;  %v1934_v61 = vld [vmem:[#allocation11 + $0x9f8] sm:$0xff]  ;;  %v6991_v4 = vcombine.low %v1929_v58, %v1933_v63 }
 0x3c5   : > { %5131 = vmatmul.mubr.bf16.vlgmr.msra.gmra.mrb[12].mxu0 %v8680_v14  ;;  %v6994_v54 = vcombine.high %v1930_v59, %v1934_v61 }
 0x3c6   : > { %5295 = vmatmul.mubr.bf16.vlgmr.msra.gmra.mrb[12].mxu1 %v8680_v14  ;;  %5140 = vmatpush1.bf16.msra.mxu0 %v6935_v3  ;;  %v6953_v14 = vcombine.low %v1890_v9, %v1894_v10  ;;  %v6992_v3 = vcombine.high %v1929_v58, %v1933_v63 }
 0x3c7   : > { %5171 = vmatprep.mubr.bf16.mxu0 %v8682_v28  ;;  %5304 = vmatpush1.bf16.msra.mxu1 %v6937_v60  ;;  %v1941_v60 = vld [vmem:[#allocation11 + $0xa30] sm:$0xff] }
 0x3c8   : > { %5335 = vmatprep.mubr.bf16.mxu1 %v8682_v28  ;;  %5141 = vmatprep.subr.bf16.mxu0 %v6944_v39  ;;  %v6959_v28 = vcombine.low %v1897_v42, %v1901_v18  ;;  %v1938_v39 = vld [vmem:[#allocation11 + $0xa18] sm:$0xff]  ;;  %v7000_v9 = vcombine.high %v1937_v7, %v1941_v60  ;;  %v6999_v42 = vcombine.low %v1937_v7, %v1941_v60 }
 0x3c9   : > { %5305 = vmatprep.subr.bf16.mxu1 %v6946_v5  ;;  %v6993_v5 = vcombine.low %v1930_v59, %v1934_v61  ;;  %v7002_v10 = vcombine.high %v1938_v39, %v1942_v1  ;;  %v7001_v18 = vcombine.low %v1938_v39, %v1942_v1 }
 0x3ca   : > { %5142 = vmatpush1.bf16.msra.mxu0 %v6943_v12  ;;  %v1945_v12 = vld [vmem:[#allocation11 + $0xa50] sm:$0xff] }
 0x3cb   : > { %5306 = vmatpush1.bf16.msra.mxu1 %v6945_v13  ;;  %5143 = vmatprep.subr.bf16.mxu0 %v6952_v16  ;;  %v1949_v13 = vld [vmem:[#allocation11 + $0xa70] sm:$0xff]  ;;  %v1946_v16 = vld [vmem:[#allocation11 + $0xa58] sm:$0xff] }
 0x3cc   : > { %5307 = vmatprep.subr.bf16.mxu1 %v6954_v17  ;;  %v1950_v17 = vld [vmem:[#allocation11 + $0xa78] sm:$0xff]  ;;  %v7008_v19 = vcombine.high %v1945_v12, %v1949_v13  ;;  %v7007_v32 = vcombine.low %v1945_v12, %v1949_v13 }
 0x3cd   : > { %v7010_v20 = vcombine.high %v1946_v16, %v1950_v17  ;;  %v7009_v33 = vcombine.low %v1946_v16, %v1950_v17 }
 0x3ce   : > { %5144 = vmatpush1.bf16.msra.mxu0 %v6951_v21  ;;  %v1953_v21 = vld [vmem:[#allocation11 + $0xa90] sm:$0xff] }
 0x3cf   : > { %5308 = vmatpush1.bf16.msra.mxu1 %v6953_v14  ;;  %5145 = vmatprep.subr.bf16.mxu0 %v6960_v27  ;;  %v1957_v14 = vld [vmem:[#allocation11 + $0xab0] sm:$0xff]  ;;  %v1954_v27 = vld [vmem:[#allocation11 + $0xa98] sm:$0xff] }
 0x3d0   : > { %5309 = vmatprep.subr.bf16.mxu1 %v6962_v29  ;;  %v1958_v29 = vld [vmem:[#allocation11 + $0xab8] sm:$0xff]  ;;  %v7016_v34 = vcombine.high %v1953_v21, %v1957_v14  ;;  %v7015_v44 = vcombine.low %v1953_v21, %v1957_v14 }
 0x3d1   : > { %v7018_v36 = vcombine.high %v1954_v27, %v1958_v29  ;;  %v7017_v45 = vcombine.low %v1954_v27, %v1958_v29 }
 0x3d2   : > { %5146 = vmatpush1.bf16.msra.mxu0 %v6959_v28  ;;  %v1961_v28 = vld [vmem:[#allocation11 + $0xad0] sm:$0xff] }
 0x3d3   : > { %5310 = vmatpush1.bf16.msra.mxu1 %v6961_v37  ;;  %5147 = vmatprep.subr.bf16.mxu0 %v6968_v38  ;;  %v1965_v37 = vld [vmem:[#allocation11 + $0xaf0] sm:$0xff]  ;;  %v1962_v38 = vld [vmem:[#allocation11 + $0xad8] sm:$0xff] }
 0x3d4   : > { %5311 = vmatprep.subr.bf16.mxu1 %v6970_v40  ;;  %v1966_v40 = vld [vmem:[#allocation11 + $0xaf8] sm:$0xff]  ;;  %v7024_v47 = vcombine.high %v1961_v28, %v1965_v37  ;;  %v7023_v51 = vcombine.low %v1961_v28, %v1965_v37 }
 0x3d5   : > { %v7026_v2 = vcombine.high %v1962_v38, %v1966_v40  ;;  %v7025_v52 = vcombine.low %v1962_v38, %v1966_v40  ;;  %v2014_v28 = vld [vmem:[#allocation11 + $0xc78] sm:$0xff]  ;;  %v2017_v40 = vld [vmem:[#allocation11 + $0xc90] sm:$0xff] }
 0x3d6   : > { %5148 = vmatpush1.bf16.msra.mxu0 %v6967_v48  ;;  %v1969_v48 = vld [vmem:[#allocation11 + $0xb10] sm:$0xff] }
 0x3d7   : > { %5312 = vmatpush1.bf16.msra.mxu1 %v6969_v49  ;;  %5149 = vmatprep.subr.bf16.mxu0 %v6976_v50  ;;  %v1973_v49 = vld [vmem:[#allocation11 + $0xb30] sm:$0xff]  ;;  %v1970_v50 = vld [vmem:[#allocation11 + $0xb18] sm:$0xff] }
 0x3d8   : > { %5313 = vmatprep.subr.bf16.mxu1 %v6978_v23  ;;  %v1974_v23 = vld [vmem:[#allocation11 + $0xb38] sm:$0xff]  ;;  %v7032_v35 = vcombine.high %v1969_v48, %v1973_v49  ;;  %v7031_v58 = vcombine.low %v1969_v48, %v1973_v49 }
 0x3d9   : > { %v7034_v53 = vcombine.high %v1970_v50, %v1974_v23  ;;  %v7033_v63 = vcombine.low %v1970_v50, %v1974_v23 }
 0x3da   : > { %5150 = vmatpush1.bf16.msra.mxu0 %v6975_v55  ;;  %v1977_v55 = vld [vmem:[#allocation11 + $0xb50] sm:$0xff] }
 0x3db   : > { %5314 = vmatpush1.bf16.msra.mxu1 %v6977_v43  ;;  %5151 = vmatprep.subr.bf16.mxu0 %v6984_v57  ;;  %v1981_v43 = vld [vmem:[#allocation11 + $0xb70] sm:$0xff]  ;;  %v1978_v57 = vld [vmem:[#allocation11 + $0xb58] sm:$0xff] }
 0x3dc   : > { %5315 = vmatprep.subr.bf16.mxu1 %v6986_v25  ;;  %v1982_v25 = vld [vmem:[#allocation11 + $0xb78] sm:$0xff]  ;;  %v7040_v59 = vcombine.high %v1977_v55, %v1981_v43  ;;  %v7039_v7 = vcombine.low %v1977_v55, %v1981_v43 }
 0x3dd   : > { %v7042_v61 = vcombine.high %v1978_v57, %v1982_v25  ;;  %v7041_v60 = vcombine.low %v1978_v57, %v1982_v25  ;;  %v2033_v25 = vld [vmem:[#allocation11 + $0xd10] sm:$0xff] }
 0x3de   : > { %5152 = vmatpush1.bf16.msra.mxu0 %v6983_v6  ;;  %v1985_v6 = vld [vmem:[#allocation11 + $0xb90] sm:$0xff] }
 0x3df   : > { %5316 = vmatpush1.bf16.msra.mxu1 %v6985_v62  ;;  %5153 = vmatprep.subr.bf16.mxu0 %v6992_v3  ;;  %v1989_v62 = vld [vmem:[#allocation11 + $0xbb0] sm:$0xff]  ;;  %v1986_v3 = vld [vmem:[#allocation11 + $0xb98] sm:$0xff] }
 0x3e0   : > { %5317 = vmatprep.subr.bf16.mxu1 %v6994_v54  ;;  %v1990_v54 = vld [vmem:[#allocation11 + $0xbb8] sm:$0xff]  ;;  %v7048_v39 = vcombine.high %v1985_v6, %v1989_v62  ;;  %v7047_v12 = vcombine.low %v1985_v6, %v1989_v62 }
 0x3e1   : > { %v7050_v1 = vcombine.high %v1986_v3, %v1990_v54  ;;  %v7049_v13 = vcombine.low %v1986_v3, %v1990_v54  ;;  %v2041_v3 = vld [vmem:[#allocation11 + $0xd50] sm:$0xff] }
 0x3e2   : > { %5154 = vmatpush1.bf16.msra.mxu0 %v6991_v4  ;;  %v1993_v4 = vld [vmem:[#allocation11 + $0xbd0] sm:$0xff] }
 0x3e3   : > { %5318 = vmatpush1.bf16.msra.mxu1 %v6993_v5  ;;  %5155 = vmatprep.subr.bf16.mxu0 %v7000_v9  ;;  %v1997_v5 = vld [vmem:[#allocation11 + $0xbf0] sm:$0xff]  ;;  %v1994_v9 = vld [vmem:[#allocation11 + $0xbd8] sm:$0xff] }
 0x3e4   : > { %5319 = vmatprep.subr.bf16.mxu1 %v7002_v10  ;;  %v1998_v10 = vld [vmem:[#allocation11 + $0xbf8] sm:$0xff]  ;;  %v7056_v16 = vcombine.high %v1993_v4, %v1997_v5  ;;  %v7055_v21 = vcombine.low %v1993_v4, %v1997_v5  ;;  %v2045_v54 = vld [vmem:[#allocation11 + $0xd70] sm:$0xff] }
 0x3e5   : > { %v7058_v17 = vcombine.high %v1994_v9, %v1998_v10  ;;  %v7057_v14 = vcombine.low %v1994_v9, %v1998_v10  ;;  %v7104_v4 = vcombine.high %v2041_v3, %v2045_v54  ;;  %v2049_v9 = vld [vmem:[#allocation11 + $0xd90] sm:$0xff] }
 0x3e6   : > { %5156 = vmatpush1.bf16.msra.mxu0 %v6999_v42  ;;  %v2001_v42 = vld [vmem:[#allocation11 + $0xc10] sm:$0xff] }
 0x3e7   : > { %5320 = vmatpush1.bf16.msra.mxu1 %v7001_v18  ;;  %5157 = vmatprep.subr.bf16.mxu0 %v7008_v19  ;;  %v2005_v18 = vld [vmem:[#allocation11 + $0xc30] sm:$0xff]  ;;  %v2002_v19 = vld [vmem:[#allocation11 + $0xc18] sm:$0xff] }
 0x3e8   : > { %5321 = vmatprep.subr.bf16.mxu1 %v7010_v20  ;;  %v2006_v20 = vld [vmem:[#allocation11 + $0xc38] sm:$0xff]  ;;  %v7064_v27 = vcombine.high %v2001_v42, %v2005_v18  ;;  %v2053_v10 = vld [vmem:[#allocation11 + $0xdb0] sm:$0xff] }
 0x3e9   : > { %v7066_v29 = vcombine.high %v2002_v19, %v2006_v20  ;;  %v7065_v37 = vcombine.low %v2002_v19, %v2006_v20 }
 0x3ea   : > { %5158 = vmatpush1.bf16.msra.mxu0 %v7007_v32  ;;  %v2009_v32 = vld [vmem:[#allocation11 + $0xc50] sm:$0xff] }
 0x3eb   : > { %5322 = vmatpush1.bf16.msra.mxu1 %v7009_v33  ;;  %5159 = vmatprep.subr.bf16.mxu0 %v7016_v34  ;;  %v2013_v33 = vld [vmem:[#allocation11 + $0xc70] sm:$0xff]  ;;  %v7063_v34 = vcombine.low %v2001_v42, %v2005_v18  ;;  %v7112_v42 = vcombine.high %v2049_v9, %v2053_v10 }
 0x3ec   : > { %5323 = vmatprep.subr.bf16.mxu1 %v7018_v36  ;;  %v2010_v36 = vld [vmem:[#allocation11 + $0xc58] sm:$0xff]  ;;  %v7072_v38 = vcombine.high %v2009_v32, %v2013_v33  ;;  %v7071_v48 = vcombine.low %v2009_v32, %v2013_v33 }
 0x3ed   : > { %v7073_v49 = vcombine.low %v2010_v36, %v2014_v28  ;;  %v2058_v32 = vld [vmem:[#allocation11 + $0xdd8] sm:$0xff] }
 0x3ee   : > { %5160 = vmatpush1.bf16.msra.mxu0 %v7015_v44  ;;  %v2021_v44 = vld [vmem:[#allocation11 + $0xcb0] sm:$0xff]  ;;  %v2062_v33 = vld [vmem:[#allocation11 + $0xdf8] sm:$0xff] }
 0x3ef   : > { %5324 = vmatpush1.bf16.msra.mxu1 %v7017_v45  ;;  %5161 = vmatprep.subr.bf16.mxu0 %v7024_v47  ;;  %v7074_v45 = vcombine.high %v2010_v36, %v2014_v28  ;;  %v2018_v47 = vld [vmem:[#allocation11 + $0xc98] sm:$0xff]  ;;  %v7080_v50 = vcombine.high %v2017_v40, %v2021_v44  ;;  %v7079_v55 = vcombine.low %v2017_v40, %v2021_v44 }
 0x3f0   : > { %5325 = vmatprep.subr.bf16.mxu1 %v7026_v2  ;;  %v2022_v2 = vld [vmem:[#allocation11 + $0xcb8] sm:$0xff]  ;;  %v7111_v28 = vcombine.low %v2049_v9, %v2053_v10 }
 0x3f1   : > { %v7082_v23 = vcombine.high %v2018_v47, %v2022_v2 }
 0x3f2   : > { %5162 = vmatpush1.bf16.msra.mxu0 %v7023_v51  ;;  %v2025_v51 = vld [vmem:[#allocation11 + $0xcd0] sm:$0xff] }
 0x3f3   : > { %5326 = vmatpush1.bf16.msra.mxu1 %v7025_v52  ;;  %5163 = vmatprep.subr.bf16.mxu0 %v7032_v35  ;;  %v2029_v52 = vld [vmem:[#allocation11 + $0xcf0] sm:$0xff]  ;;  %v2026_v35 = vld [vmem:[#allocation11 + $0xcd8] sm:$0xff] }
 0x3f4   : > { %5327 = vmatprep.subr.bf16.mxu1 %v7034_v53  ;;  %v2030_v53 = vld [vmem:[#allocation11 + $0xcf8] sm:$0xff]  ;;  %v7088_v43 = vcombine.high %v2025_v51, %v2029_v52 }
 0x3f5   : > { %v7090_v57 = vcombine.high %v2026_v35, %v2030_v53 }
 0x3f6   : > { %5164 = vmatpush1.bf16.msra.mxu0 %v7031_v58  ;;  %v2037_v58 = vld [vmem:[#allocation11 + $0xd30] sm:$0xff] }
 0x3f7   : > { %5328 = vmatpush1.bf16.msra.mxu1 %v7033_v63  ;;  %5165 = vmatprep.subr.bf16.mxu0 %v7040_v59  ;;  %v2034_v63 = vld [vmem:[#allocation11 + $0xd18] sm:$0xff]  ;;  %v7096_v6 = vcombine.high %v2033_v25, %v2037_v58 }
 0x3f8   : > { %5329 = vmatprep.subr.bf16.mxu1 %v7042_v61  ;;  %v2038_v59 = vld [vmem:[#allocation11 + $0xd38] sm:$0xff]  ;;  %v7089_v61 = vcombine.low %v2026_v35, %v2030_v53  ;;  %v2073_v35 = vld [vmem:[#allocation11 + $0xe50] sm:$0xff] }
 0x3f9   : > { %v7098_v62 = vcombine.high %v2034_v63, %v2038_v59  ;;  %v2077_v53 = vld [vmem:[#allocation11 + $0xe70] sm:$0xff] }
 0x3fa   : > { %5166 = vmatpush1.bf16.msra.mxu0 %v7039_v7  ;;  %v2042_v7 = vld [vmem:[#allocation11 + $0xd58] sm:$0xff] }
 0x3fb   : > { %5330 = vmatpush1.bf16.msra.mxu1 %v7041_v60  ;;  %5167 = vmatprep.subr.bf16.mxu0 %v7048_v39  ;;  %v2046_v60 = vld [vmem:[#allocation11 + $0xd78] sm:$0xff]  ;;  %v7095_v39 = vcombine.low %v2033_v25, %v2037_v58  ;;  %v7136_v25 = vcombine.high %v2073_v35, %v2077_v53 }
 0x3fc   : > { %5331 = vmatprep.subr.bf16.mxu1 %v7050_v1  ;;  %v7097_v1 = vcombine.low %v2034_v63, %v2038_v59  ;;  %v7106_v5 = vcombine.high %v2042_v7, %v2046_v60  ;;  %v2081_v63 = vld [vmem:[#allocation11 + $0xe90] sm:$0xff] }
 0x3fd   : > { %v2085_v59 = vld [vmem:[#allocation11 + $0xeb0] sm:$0xff] }
 0x3fe   : > { %5168 = vmatpush1.bf16.msra.mxu0 %v7047_v12  ;;  %v2050_v12 = vld [vmem:[#allocation11 + $0xd98] sm:$0xff] }
 0x3ff   : > { %5332 = vmatpush1.bf16.msra.mxu1 %v7049_v13  ;;  %5169 = vmatprep.subr.bf16.mxu0 %v7056_v16  ;;  %v2054_v13 = vld [vmem:[#allocation11 + $0xdb8] sm:$0xff]  ;;  %v7103_v16 = vcombine.low %v2041_v3, %v2045_v54  ;;  %v7144_v3 = vcombine.high %v2081_v63, %v2085_v59 }
 0x400   : > { %5333 = vmatprep.subr.bf16.mxu1 %v7058_v17  ;;  %v7105_v17 = vcombine.low %v2042_v7, %v2046_v60  ;;  %v7114_v20 = vcombine.high %v2050_v12, %v2054_v13  ;;  %v7113_v40 = vcombine.low %v2050_v12, %v2054_v13  ;;  %v2089_v7 = vld [vmem:[#allocation11 + $0xed0] sm:$0xff] }
 0x401   : > { %v2093_v60 = vld [vmem:[#allocation11 + $0xef0] sm:$0xff] }
 0x402   : > { %5170 = vmatpush1.bf16.msra.mxu0 %v7055_v21  ;;  %v2057_v21 = vld [vmem:[#allocation11 + $0xdd0] sm:$0xff]  ;;  %v7152_v9 = vcombine.high %v2089_v7, %v2093_v60 }
 0x403   : > { %5334 = vmatpush1.bf16.msra.mxu1 %v7057_v14  ;;  %5180 = vmatprep.subr.bf16.mxu0 %v7064_v27  ;;  %v2061_v14 = vld [vmem:[#allocation11 + $0xdf0] sm:$0xff] }
 0x404   : > { %5344 = vmatprep.subr.bf16.mxu1 %v7066_v29  ;;  %v7120_v44 = vcombine.high %v2057_v21, %v2061_v14  ;;  %v2097_v12 = vld [vmem:[#allocation11 + $0xf10] sm:$0xff] }
 0x405   : > { %5172 = vmatmul.mubr.bf16.vlgmr.msra.gmra.mrb[12].mxu0 %v8702_v8  ;;  %v2101_v13 = vld [vmem:[#allocation11 + $0xf30] sm:$0xff] }
 0x406   : > { %5336 = vmatmul.mubr.bf16.vlgmr.msra.gmra.mrb[12].mxu1 %v8702_v8  ;;  %5181 = vmatpush1.bf16.msra.mxu0 %v7063_v34  ;;  %v7081_v8 = vcombine.low %v2018_v47, %v2022_v2  ;;  %v2065_v47 = vld [vmem:[#allocation11 + $0xe10] sm:$0xff] }
 0x407   : > { %5212 = vmatprep.mubr.bf16.mxu0 %v8704_v11  ;;  %5345 = vmatpush1.bf16.msra.mxu1 %v7065_v37  ;;  %v2069_v2 = vld [vmem:[#allocation11 + $0xe30] sm:$0xff] }
 0x408   : > { %5376 = vmatprep.mubr.bf16.mxu1 %v8704_v11  ;;  %5182 = vmatprep.subr.bf16.mxu0 %v7072_v38  ;;  %v7087_v11 = vcombine.low %v2025_v51, %v2029_v52  ;;  %v7128_v51 = vcombine.high %v2065_v47, %v2069_v2 }
 0x409   : > { %5346 = vmatprep.subr.bf16.mxu1 %v7074_v45  ;;  %v7122_v45 = vcombine.high %v2058_v32, %v2062_v33 }
 0x40a   : > { %5183 = vmatpush1.bf16.msra.mxu0 %v7071_v48  ;;  %v2066_v48 = vld [vmem:[#allocation11 + $0xe18] sm:$0xff] }
 0x40b   : > { %5347 = vmatpush1.bf16.msra.mxu1 %v7073_v49  ;;  %5184 = vmatprep.subr.bf16.mxu0 %v7080_v50  ;;  %v2070_v49 = vld [vmem:[#allocation11 + $0xe38] sm:$0xff]  ;;  %v7119_v50 = vcombine.low %v2057_v21, %v2061_v14  ;;  %v7160_v21 = vcombine.high %v2097_v12, %v2101_v13 }
 0x40c   : > { %5348 = vmatprep.subr.bf16.mxu1 %v7082_v23  ;;  %v7121_v23 = vcombine.low %v2058_v32, %v2062_v33  ;;  %v7130_v52 = vcombine.high %v2066_v48, %v2070_v49  ;;  %v2105_v32 = vld [vmem:[#allocation11 + $0xf50] sm:$0xff] }
 0x40d   : > { %v2109_v33 = vld [vmem:[#allocation11 + $0xf70] sm:$0xff] }
 0x40e   : > { %5185 = vmatpush1.bf16.msra.mxu0 %v7079_v55  ;;  %v2074_v55 = vld [vmem:[#allocation11 + $0xe58] sm:$0xff] }
 0x40f   : > { %5349 = vmatpush1.bf16.msra.mxu1 %v7081_v8  ;;  %5186 = vmatprep.subr.bf16.mxu0 %v7088_v43  ;;  %v2078_v8 = vld [vmem:[#allocation11 + $0xe78] sm:$0xff]  ;;  %v7127_v43 = vcombine.low %v2065_v47, %v2069_v2 }
 0x410   : > { %5350 = vmatprep.subr.bf16.mxu1 %v7090_v57  ;;  %v7129_v57 = vcombine.low %v2066_v48, %v2070_v49  ;;  %v7138_v58 = vcombine.high %v2074_v55, %v2078_v8  ;;  %v2114_v47 = vld [vmem:[#allocation11 + $0xf98] sm:$0xff]  ;;  %v8740_v48 = vld [vmem:[#allocation13] sm:$0xff]  ;;  %v7167_v49 = vcombine.low %v2105_v32, %v2109_v33 }
 0x411   : > { %v2118_v2 = vld [vmem:[#allocation11 + $0xfb8] sm:$0xff] }
 0x412   : > { %5187 = vmatpush1.bf16.msra.mxu0 %v7087_v11  ;;  %v2082_v11 = vld [vmem:[#allocation11 + $0xe98] sm:$0xff] }
 0x413   : > { %5351 = vmatpush1.bf16.msra.mxu1 %v7089_v61  ;;  %5188 = vmatprep.subr.bf16.mxu0 %v7096_v6  ;;  %v2086_v61 = vld [vmem:[#allocation11 + $0xeb8] sm:$0xff]  ;;  %v7135_v6 = vcombine.low %v2073_v35, %v2077_v53  ;;  %v2125_v35 = vld [vmem:[#allocation11 + $0xff0] sm:$0xff]  ;;  %v2136_v53 = vrot.slane %v8740_v48, %v8639_v26 }
 0x414   : > { %5352 = vmatprep.subr.bf16.mxu1 %v7098_v62  ;;  %v7137_v62 = vcombine.low %v2074_v55, %v2078_v8  ;;  %v7146_v54 = vcombine.high %v2082_v11, %v2086_v61  ;;  %v2122_v55 = vld [vmem:[#allocation11 + $0xfd8] sm:$0xff] }
 0x415   : > { %v2126_v8 = vld [vmem:[#allocation11 + $0xff8] sm:$0xff] }
 0x416   : > { %5189 = vmatpush1.bf16.msra.mxu0 %v7095_v39  ;;  %v2090_v39 = vld [vmem:[#allocation11 + $0xed8] sm:$0xff] }
 0x417   : > { %5353 = vmatpush1.bf16.msra.mxu1 %v7097_v1  ;;  %5190 = vmatprep.subr.bf16.mxu0 %v7104_v4  ;;  %v2094_v1 = vld [vmem:[#allocation11 + $0xef8] sm:$0xff]  ;;  %v7143_v4 = vcombine.low %v2081_v63, %v2085_v59  ;;  %v7186_v63 = vcombine.high %v2122_v55, %v2126_v8 }
 0x418   : > { %v8732_v18 = vpop.f32.mrb[8].mxu0  ;;  %v8734_v19 = vpop.f32.mrb[8].mxu1  ;;  %5354 = vmatprep.subr.bf16.mxu1 %v7106_v5  ;;  %v7145_v5 = vcombine.low %v2082_v11, %v2086_v61  ;;  %v7154_v10 = vcombine.high %v2090_v39, %v2094_v1 }
 0x419   : > { %v8736_v27 = vpop.f32.mrb[9].mxu0  ;;  %v8738_v29 = vpop.f32.mrb[9].mxu1 }
 0x41a   : > { %v4890_v34 = vpop.f32.mrb[10].mxu0  ;;  %v5054_v36 = vpop.f32.mrb[10].mxu1  ;;  %5191 = vmatpush1.bf16.msra.mxu0 %v7103_v16  ;;  %v2098_v16 = vld [vmem:[#allocation11 + $0xf18] sm:$0xff]  ;;  %v7367_v59 = vadd.f32 %v8736_v27, %v2136_v53 }
 0x41b   : > { %5355 = vmatpush1.bf16.msra.mxu1 %v7105_v17  ;;  %v4891_v37 = vpop.f32.mrb[11].mxu0  ;;  %v5055_v38 = vpop.f32.mrb[11].mxu1  ;;  %5192 = vmatprep.subr.bf16.mxu0 %v7112_v42  ;;  %v2102_v17 = vld [vmem:[#allocation11 + $0xf38] sm:$0xff]  ;;  %v7151_v42 = vcombine.low %v2089_v7, %v2093_v60  ;;  %v7574_v7 = vld [vmem:[#allocation14] sm:$0xff]  }
 0x41c   : > { %5356 = vmatprep.subr.bf16.mxu1 %v7114_v20  ;;  %v7153_v20 = vcombine.low %v2090_v39, %v2094_v1  ;;  %v7162_v14 = vcombine.high %v2098_v16, %v2102_v17  ;;  %v2106_v34 = vld [vmem:[#allocation11 + $0xf58] sm:$0xff]  ;;  %v7161_v37 = vcombine.low %v2098_v16, %v2102_v17  ;;  %v7168_v38 = vcombine.high %v2105_v32, %v2109_v33  ;;  %v7575_v60 = vld [vmem:[#allocation14 + $0x80] sm:$0xff]   ;;  %v7576_v39 = vld [vmem:[#allocation14 + $0x48] sm:$0xff]  }
 0x41d   : > { %v2110_v36 = vld [vmem:[#allocation11 + $0xf78] sm:$0xff]  ;;  %v7584_v16 = vld [vmem:[#allocation14 + $0x58] sm:$0xff]   ;;  %v7591_v32 = vld [vmem:[#allocation14 + $0xa0] sm:$0xff]  }
 0x41e   : > { %5193 = vmatpush1.bf16.msra.mxu0 %v7111_v28  ;;  %v7159_v28 = vcombine.low %v2097_v12, %v2101_v13  ;;  %v7582_v12 = vld [vmem:[#allocation14 + $0x10] sm:$0xff]   ;;  %v7585_v17 = vld [vmem:[#allocation14 + $0xd8] sm:$0xff]   ;;  %v7592_v33 = vld [vmem:[#allocation14 + $0x68] sm:$0xff]  }
 0x41f   : > { %5357 = vmatpush1.bf16.msra.mxu1 %v7113_v40  ;;  %5194 = vmatprep.subr.bf16.mxu0 %v7120_v44  ;;  %v7170_v40 = vcombine.high %v2106_v34, %v2110_v36  ;;  %v2113_v44 = vld [vmem:[#allocation11 + $0xf90] sm:$0xff]  ;;  %v7583_v13 = vld [vmem:[#allocation14 + $0x90] sm:$0xff]  }
 0x420   : > { %5358 = vmatprep.subr.bf16.mxu1 %v7122_v45  ;;  %v2117_v45 = vld [vmem:[#allocation11 + $0xfb0] sm:$0xff] }
 0x422   : > { %5195 = vmatpush1.bf16.msra.mxu0 %v7119_v50  ;;  %v7169_v50 = vcombine.low %v2106_v34, %v2110_v36  ;;  %v7593_v34 = vld [vmem:[#allocation14 + $0xe8] sm:$0xff]  }
 0x423   : > { %5359 = vmatpush1.bf16.msra.mxu1 %v7121_v23  ;;  %5196 = vmatprep.subr.bf16.mxu0 %v7128_v51  ;;  %v7176_v23 = vcombine.high %v2113_v44, %v2117_v45  ;;  %v7178_v51 = vcombine.high %v2114_v47, %v2118_v2  ;;  %v7594_v36 = vld [vmem:[#allocation14 + $0x28] sm:$0xff]  }
 0x424   : > { %5360 = vmatprep.subr.bf16.mxu1 %v7130_v52  ;;  %v2121_v52 = vld [vmem:[#allocation11 + $0xfd0] sm:$0xff] }
 0x425   : > { %v7183_v61 = vcombine.low %v2121_v52, %v2125_v35 }
 0x426   : > { %5197 = vmatpush1.bf16.msra.mxu0 %v7127_v43  ;;  %v2144_v43 = vrot.slane %v8740_v48, %v769_v41  ;;  %v7573_v41 = vld [vmem:[#allocation14 + $0xc0] sm:$0xff]  }
 0x427   : > { %5361 = vmatpush1.bf16.msra.mxu1 %v7129_v57  ;;  %5198 = vmatprep.subr.bf16.mxu0 %v7136_v25  ;;  %v7175_v57 = vcombine.low %v2113_v44, %v2117_v45  ;;  %v7177_v25 = vcombine.low %v2114_v47, %v2118_v2  ;;  %v7597_v44 = vld [vmem:[#allocation14 + $0xf0] sm:$0xff]  }
 0x428   : > { %5362 = vmatprep.subr.bf16.mxu1 %v7138_v58  ;;  %v7184_v58 = vcombine.high %v2121_v52, %v2125_v35  ;;  %v7369_v11 = vadd.f32 %v8738_v29, %v2144_v43  ;;  %v7577_v29 = vld [vmem:[#allocation14 + $0xc8] sm:$0xff]   ;;  %v7598_v45 = vld [vmem:[#allocation14 + $0x30] sm:$0xff]   ;;  %v7604_v35 = vld [vmem:[#allocation14 + $0x140] sm:$0xff]  }
 0x429   : > { %v7599_v2 = vld [vmem:[#allocation14 + $0xb0] sm:$0xff]   ;;  %v7607_v43 = vld [vmem:[#allocation14 + $0x180] sm:$0xff]  }
 0x42a   : > { %5199 = vmatpush1.bf16.msra.mxu0 %v7135_v6  ;;  %v7185_v6 = vcombine.low %v2122_v55, %v2126_v8  ;;  %v7605_v55 = vld [vmem:[#allocation14 + $0x1c0] sm:$0xff]  }
 0x42b   : > { %5363 = vmatpush1.bf16.msra.mxu1 %v7137_v62  ;;  %5200 = vmatprep.subr.bf16.mxu0 %v7144_v3  ;;  %v7572_v62 = vld [vmem:[#allocation14 + $0x40] sm:$0xff]   ;;  %v5386_v3 = vmax.f32 %v7367_v59, 0.0  ;;  %v7612_v59 = vld [vmem:[#allocation14 + $0x150] sm:$0xff]  }
 0x42c   : > { %5364 = vmatprep.subr.bf16.mxu1 %v7146_v54  ;;  %v5388_v54 = vmax.f32 %v7369_v11, 0.0  ;;  %v7613_v11 = vld [vmem:[#allocation14 + $0x1d0] sm:$0xff]  }
 0x42d   : > { %v5394_v27 = vpack.c.bf16 %v5386_v3, %v5386_v3  ;;  %v7618_v3 = vld [vmem:[#allocation14 + $0x118] sm:$0xff]  }
 0x42e   : > { %5201 = vmatpush1.bf16.msra.mxu0 %v7143_v4  ;;  %v5396_v1 = vpack.c.bf16 %v5388_v54, %v5388_v54  ;;  %v7578_v4 = vld [vmem:[#allocation14 + $0x8] sm:$0xff]   ;;  %v7619_v54 = vld [vmem:[#allocation14 + $0x198] sm:$0xff]  }
 0x42f   : > { %5365 = vmatpush1.bf16.msra.mxu1 %v7145_v5  ;;  %5202 = vmatprep.subr.bf16.mxu0 %v7152_v9  ;;  %v7579_v5 = vld [vmem:[#allocation14 + $0x88] sm:$0xff]   ;;  %v7580_v9 = vld [vmem:[#allocation14 + $0x50] sm:$0xff]  }
 0x430   : > { %5366 = vmatprep.subr.bf16.mxu1 %v7154_v10  ;;  %v7581_v10 = vld [vmem:[#allocation14 + $0xd0] sm:$0xff]  }
 0x432   : > { %5203 = vmatpush1.bf16.msra.mxu0 %v7151_v42  ;;  %v7587_v42 = vld [vmem:[#allocation14 + $0x98] sm:$0xff]  }
 0x433   : > { %5367 = vmatpush1.bf16.msra.mxu1 %v7153_v20  ;;  %5204 = vmatprep.subr.bf16.mxu0 %v7160_v21  ;;  %v7588_v20 = vld [vmem:[#allocation14 + $0x60] sm:$0xff]  }
 0x434   : > { %5368 = vmatprep.subr.bf16.mxu1 %v7162_v14  ;;  %v7589_v21 = vld [vmem:[#allocation14 + $0xe0] sm:$0xff]  }
 0x435   : > { %v7590_v14 = vld [vmem:[#allocation14 + $0x20] sm:$0xff]  }
 0x436   : > { %5205 = vmatpush1.bf16.msra.mxu0 %v7159_v28  ;;  %v2132_v28 = vrot.slane %v8740_v48, %v8634_v24 }
 0x437   : > { %5369 = vmatpush1.bf16.msra.mxu1 %v7161_v37  ;;  %5206 = vmatprep.subr.bf16.mxu0 %v7168_v38  ;;  %v7595_v37 = vld [vmem:[#allocation14 + $0xa8] sm:$0xff]   ;;  %v7596_v38 = vld [vmem:[#allocation14 + $0x70] sm:$0xff]  }
 0x438   : > { %5370 = vmatprep.subr.bf16.mxu1 %v7170_v40  ;;  %v2140_v40 = vrot.slane %v8740_v48, %v765_v31  ;;  %v7366_v47 = vadd.f32 %v8732_v18, %v2132_v28  ;;  %v7603_v31 = vld [vmem:[#allocation14 + $0xb8] sm:$0xff]   ;;  %v7606_v18 = vld [vmem:[#allocation14 + $0x100] sm:$0xff]  }
 0x43a   : > { %5207 = vmatpush1.bf16.msra.mxu0 %v7167_v49  ;;  %v7600_v49 = vld [vmem:[#allocation14 + $0x78] sm:$0xff]   ;;  %v5385_v52 = vmax.f32 %v7366_v47, 0.0 }
 0x43b   : > { %5371 = vmatpush1.bf16.msra.mxu1 %v7169_v50  ;;  %5208 = vmatprep.subr.bf16.mxu0 %v7176_v23  ;;  %v7368_v50 = vadd.f32 %v8734_v19, %v2140_v40  ;;  %v7601_v23 = vld [vmem:[#allocation14 + $0xf8] sm:$0xff]  }
 0x43c   : > { %5372 = vmatprep.subr.bf16.mxu1 %v7178_v51  ;;  %v7602_v51 = vld [vmem:[#allocation14 + $0x38] sm:$0xff]   ;;  %v5393_v8 = vpack.c.bf16 %v5385_v52, %v5385_v52 }
 0x43d   : > { %v5387_v53 = vmax.f32 %v7368_v50, 0.0 }
 0x43e   : > { %5209 = vmatpush1.bf16.msra.mxu0 %v7175_v57  ;;  %v7608_v57 = vld [vmem:[#allocation14 + $0x148] sm:$0xff]  }
 0x43f   : > { %5373 = vmatpush1.bf16.msra.mxu1 %v7177_v25  ;;  %5210 = vmatprep.subr.bf16.mxu0 %v7184_v58  ;;  %v5395_v19 = vpack.c.bf16 %v5387_v53, %v5387_v53  ;;  %v7609_v25 = vld [vmem:[#allocation14 + $0x1c8] sm:$0xff]  }
 0x440   : > { %5374 = vmatprep.subr.bf16.mxu1 %v7186_v63  ;;  %v7610_v58 = vld [vmem:[#allocation14 + $0x108] sm:$0xff]  }
 0x441   : > { %v7611_v63 = vld [vmem:[#allocation14 + $0x188] sm:$0xff]  }
 0x442   : > { %5211 = vmatpush1.bf16.msra.mxu0 %v7183_v61  ;;  %v7614_v61 = vld [vmem:[#allocation14 + $0x110] sm:$0xff]  }
 0x443   : > { %5375 = vmatpush1.bf16.msra.mxu1 %v7185_v6  ;;  %7278 = vmatprep.subr.bf16.mxu0 %v7572_v62  ;;  %v7615_v6 = vld [vmem:[#allocation14 + $0x190] sm:$0xff]   ;;  %v7616_v62 = vld [vmem:[#allocation14 + $0x158] sm:$0xff]  }
 0x444   : > { %7300 = vmatprep.subr.bf16.mxu1 %v7573_v41  ;;  %v7617_v41 = vld [vmem:[#allocation14 + $0x1d8] sm:$0xff]  }
 0x445   : > { %5213 = vmatmul.mubr.bf16.vlgmr.msra.gmra.mrb[12].mxu0 %v8714_v56 }
 0x446   : > { %5377 = vmatmul.mubr.bf16.vlgmr.msra.gmra.mrb[12].mxu1 %v8714_v56  ;;  %7279 = vmatpush3.bf16.msra.mxu0 %v7574_v7  ;;  %v7586_v56 = vld [vmem:[#allocation14 + $0x18] sm:$0xff]   ;;  %v7620_v7 = vld [vmem:[#allocation14 + $0x160] sm:$0xff]  }
 0x447   : > { %5952 = vmatprep.mubr.bf16.mxu0 %v5394_v27  ;;  %7301 = vmatpush3.bf16.msra.mxu1 %v7575_v60  ;;  %v7621_v60 = vld [vmem:[#allocation14 + $0x1e0] sm:$0xff]  }
 0x448   : > { %5992 = vmatprep.mubr.bf16.mxu1 %v5396_v1  ;;  %7280 = vmatprep.subr.bf16.mxu0 %v7576_v39  ;;  %v7622_v39 = vld [vmem:[#allocation14 + $0x120] sm:$0xff]   ;;  %v7625_v1 = vld [vmem:[#allocation14 + $0x1e8] sm:$0xff]  }
 0x449   : > { %7302 = vmatprep.subr.bf16.mxu1 %v7577_v29  ;;  %v7623_v27 = vld [vmem:[#allocation14 + $0x1a0] sm:$0xff]   ;;  %v7624_v29 = vld [vmem:[#allocation14 + $0x168] sm:$0xff]  }
 0x44a   : > { %7281 = vmatpush3.bf16.msra.mxu0 %v7578_v4  ;;  %v7626_v4 = vld [vmem:[#allocation14 + $0x128] sm:$0xff]  }
 0x44b   : > { %7303 = vmatpush3.bf16.msra.mxu1 %v7579_v5  ;;  %7282 = vmatprep.subr.bf16.mxu0 %v7580_v9  ;;  %v7627_v5 = vld [vmem:[#allocation14 + $0x1a8] sm:$0xff]   ;;  %v7628_v9 = vld [vmem:[#allocation14 + $0x170] sm:$0xff]  }
 0x44c   : > { %7304 = vmatprep.subr.bf16.mxu1 %v7581_v10  ;;  %v7629_v10 = vld [vmem:[#allocation14 + $0x1f0] sm:$0xff]  }
 0x44e   : > { %7283 = vmatpush3.bf16.msra.mxu0 %v7582_v12  ;;  %v7630_v12 = vld [vmem:[#allocation14 + $0x130] sm:$0xff]  }
 0x44f   : > { %7305 = vmatpush3.bf16.msra.mxu1 %v7583_v13  ;;  %7284 = vmatprep.subr.bf16.mxu0 %v7584_v16  ;;  %v7631_v13 = vld [vmem:[#allocation14 + $0x1b0] sm:$0xff]   ;;  %v7632_v16 = vld [vmem:[#allocation14 + $0x178] sm:$0xff]  }
 0x450   : > { %7306 = vmatprep.subr.bf16.mxu1 %v7585_v17  ;;  %v7633_v17 = vld [vmem:[#allocation14 + $0x1f8] sm:$0xff]  }
 0x452   : > { %7285 = vmatpush3.bf16.msra.mxu0 %v7586_v56  ;;  %v7634_v56 = vld [vmem:[#allocation14 + $0x138] sm:$0xff]  }
 0x453   : > { %7307 = vmatpush3.bf16.msra.mxu1 %v7587_v42  ;;  %7286 = vmatprep.subr.bf16.mxu0 %v7588_v20  ;;  %v7635_v42 = vld [vmem:[#allocation14 + $0x1b8] sm:$0xff]   ;;  %v2148_v20 = vrot.slane %v8740_v48, %v773_v15 }
 0x454   : > { %7308 = vmatprep.subr.bf16.mxu1 %v7589_v21  ;;  %v2156_v21 = vrot.slane %v8740_v48, %v781_v0 }
 0x456   : > { %7287 = vmatpush3.bf16.msra.mxu0 %v7590_v14  ;;  %v2152_v14 = vrot.slane %v8740_v48, %v777_v46 }
 0x457   : > { %7309 = vmatpush3.bf16.msra.mxu1 %v7591_v32  ;;  %7288 = vmatprep.subr.bf16.mxu0 %v7592_v33  ;;  %v2160_v32 = vrot.slane %v8740_v48, %v785_v30 }
 0x458   : > { %7310 = vmatprep.subr.bf16.mxu1 %v7593_v34 }
 0x45a   : > { %7289 = vmatpush3.bf16.msra.mxu0 %v7594_v36 }
 0x45b   : > { %7311 = vmatpush3.bf16.msra.mxu1 %v7595_v37  ;;  %7290 = vmatprep.subr.bf16.mxu0 %v7596_v38 }
 0x45c   : > { %7312 = vmatprep.subr.bf16.mxu1 %v7597_v44 }
 0x45e   : > { %7291 = vmatpush3.bf16.msra.mxu0 %v7598_v45 }
 0x45f   : > { %7313 = vmatpush3.bf16.msra.mxu1 %v7599_v2  ;;  %7292 = vmatprep.subr.bf16.mxu0 %v7600_v49 }
 0x460   : > { %7314 = vmatprep.subr.bf16.mxu1 %v7601_v23 }
 0x462   : > { %7293 = vmatpush3.bf16.msra.mxu0 %v7602_v51 }
 0x463   : > { %7315 = vmatpush3.bf16.msra.mxu1 %v7603_v31  ;;  %7322 = vmatprep.subr.bf16.mxu0 %v7604_v35  ;;  %v7187_v31 = vld [vmem:[#allocation16] ss:$0 sm:$0xff] }
 0x464   : > { %7344 = vmatprep.subr.bf16.mxu1 %v7605_v55 }
 0x465   : > { %5953 = vmatmul.mubr.bf16.vlgmr.msra.gmra.mrb[16].mxu0 %v5393_v8 }
 0x466   : > { %5993 = vmatmul.mubr.bf16.vlgmr.msra.gmra.mrb[16].mxu1 %v5395_v19  ;;  %7323 = vmatpush3.bf16.msra.mxu0 %v7606_v18 }
 0x467   : > { %7345 = vmatpush3.bf16.msra.mxu1 %v7607_v43  ;;  %7324 = vmatprep.subr.bf16.mxu0 %v7608_v57 }
 0x468   : > { %7346 = vmatprep.subr.bf16.mxu1 %v7609_v25 }
 0x46a   : > { %7325 = vmatpush3.bf16.msra.mxu0 %v7610_v58 }
 0x46b   : > { %7347 = vmatpush3.bf16.msra.mxu1 %v7611_v63  ;;  %7326 = vmatprep.subr.bf16.mxu0 %v7612_v59  ;;  %v7638_v63 = vld [vmem:[#allocation17 + $0x4] ss:$8 sps:$4 sm:$0xff]   ;;  %v7636_v59 = vld [vmem:[#allocation17] ss:$8 sps:$4 sm:$0xff]  }
 0x46c   : > { %7348 = vmatprep.subr.bf16.mxu1 %v7613_v11  ;;  %v7641_v11 = vld [vmem:[#allocation17 + $0x14] ss:$8 sps:$4 sm:$0xff]  }
 0x46e   : > { %7327 = vmatpush3.bf16.msra.mxu0 %v7614_v61  ;;  %v7639_v61 = vld [vmem:[#allocation17 + $0x10] ss:$8 sps:$4 sm:$0xff]  }
 0x46f   : > { %7349 = vmatpush3.bf16.msra.mxu1 %v7615_v6  ;;  %7328 = vmatprep.subr.bf16.mxu0 %v7616_v62  ;;  %v7644_v6 = vld [vmem:[#allocation17 + $0x24] ss:$8 sps:$4 sm:$0xff]   ;;  %v7642_v62 = vld [vmem:[#allocation17 + $0x20] ss:$8 sps:$4 sm:$0xff]  }
 0x470   : > { %7350 = vmatprep.subr.bf16.mxu1 %v7617_v41  ;;  %v7647_v41 = vld [vmem:[#allocation17 + $0x34] ss:$8 sps:$4 sm:$0xff]  }
 0x472   : > { %7329 = vmatpush3.bf16.msra.mxu0 %v7618_v3  ;;  %v7645_v3 = vld [vmem:[#allocation17 + $0x30] ss:$8 sps:$4 sm:$0xff]  }
 0x473   : > { %7351 = vmatpush3.bf16.msra.mxu1 %v7619_v54  ;;  %7330 = vmatprep.subr.bf16.mxu0 %v7620_v7  ;;  %v7648_v54 = vld [vmem:[#allocation17 + $0x40] ss:$8 sps:$4 sm:$0xff]   ;;  %v7650_v7 = vld [vmem:[#allocation17 + $0x44] ss:$8 sps:$4 sm:$0xff]  }
 0x474   : > { %7352 = vmatprep.subr.bf16.mxu1 %v7621_v60  ;;  %v7653_v60 = vld [vmem:[#allocation17 + $0x54] ss:$8 sps:$4 sm:$0xff]  }
 0x476   : > { %7331 = vmatpush3.bf16.msra.mxu0 %v7622_v39  ;;  %v8122_v39 = vmov 0  }
 0x477   : > { %7353 = vmatpush3.bf16.msra.mxu1 %v7623_v27  ;;  %7332 = vmatprep.subr.bf16.mxu0 %v7624_v29  ;;  %v7651_v27 = vld [vmem:[#allocation17 + $0x50] ss:$8 sps:$4 sm:$0xff]   ;;  %v7656_v29 = vld [vmem:[#allocation17 + $0x64] ss:$8 sps:$4 sm:$0xff]  }
 0x478   : > { %7354 = vmatprep.subr.bf16.mxu1 %v7625_v1  ;;  %v7654_v1 = vld [vmem:[#allocation17 + $0x60] ss:$8 sps:$4 sm:$0xff]  }
 0x47a   : > { %7333 = vmatpush3.bf16.msra.mxu0 %v7626_v4  ;;  %v7659_v4 = vld [vmem:[#allocation17 + $0x74] ss:$8 sps:$4 sm:$0xff]  }
 0x47b   : > { %7355 = vmatpush3.bf16.msra.mxu1 %v7627_v5  ;;  %7334 = vmatprep.subr.bf16.mxu0 %v7628_v9  ;;  %v7657_v5 = vld [vmem:[#allocation17 + $0x70] ss:$8 sps:$4 sm:$0xff]  }
 0x47c   : > { %7356 = vmatprep.subr.bf16.mxu1 %v7629_v10 }
 0x47e   : > { %7335 = vmatpush3.bf16.msra.mxu0 %v7630_v12 }
 0x47f   : > { %7357 = vmatpush3.bf16.msra.mxu1 %v7631_v13  ;;  %7336 = vmatprep.subr.bf16.mxu0 %v7632_v16 }
 0x480   : > { %7358 = vmatprep.subr.bf16.mxu1 %v7633_v17 }
 0x482   : > { %7337 = vmatpush3.bf16.msra.mxu0 %v7634_v56 }
 0x483   : > { %7359 = vmatpush3.bf16.msra.mxu1 %v7635_v42  ;;  %6201 = vmatprep.subr.bf16.mxu0 %v7638_v63 }
 0x518   : > { %v5214_v33 = vpop.f32.mrb[12].mxu0 }
 0x519   : > { %v7370_v34 = vadd.f32 %v5214_v33, %v2148_v20  ;;  %v5378_v36 = vpop.f32.mrb[12].mxu1  ;;  %v5216_v28 = vpop.f32.mrb[13].mxu0 }
 0x51a   : > { %v7372_v37 = vadd.f32 %v5378_v36, %v2156_v21  ;;  %v7371_v38 = vadd.f32 %v5216_v28, %v2152_v14  ;;  %v5380_v40 = vpop.f32.mrb[13].mxu1  ;;  %v5218_v15 = vpop.f32.mrb[14].mxu0  ;;  %v6087_v28 = vld [vmem:[%s523_s28] sm:$0xff] }
 0x51b   : > { %v5389_v44 = vmax.f32 %v7370_v34, 0.0  ;;  %v7373_v45 = vadd.f32 %v5380_v40, %v2160_v32  ;;  %v5382_v47 = vpop.f32.mrb[14].mxu1  ;;  %v5219_v0 = vpop.f32.mrb[15].mxu0  ;;  %v8123_v40 = vmov 0.0  }
 0x51c   : > { %v5391_v2 = vmax.f32 %v7372_v37, 0.0  ;;  %v5390_v49 = vmax.f32 %v7371_v38, 0.0  ;;  %v5383_v50 = vpop.f32.mrb[15].mxu1  ;;  %v6090_v38 = vld [vmem:[%s532_s13] sm:$0xff] }
 0x51d   : > { %v5392_v46 = vmax.f32 %v7373_v45, 0.0  ;;  %v5397_v22 = vpack.c.bf16 %v5389_v44, %v5389_v44  ;;  %v6109_v47 = vld [vmem:[#allocation19] sm:$0x3] }
 0x51e   : > { %v5398_v23 = vpack.c.bf16 %v5390_v49, %v5390_v49  ;;  %v5399_v30 = vpack.c.bf16 %v5391_v2, %v5391_v2  ;;  %v6114_v0 = vrot.slane %v6109_v47, %v8634_v24  ;;  %v6118_v2 = vrot.slane %v6109_v47, %v8639_v26 }
 0x51f   : > { %v5400_v51 = vpack.c.bf16 %v5392_v46, %v5392_v46 }
 0x520   : > { %6032 = vmatprep.mubr.bf16.mxu0 %v5398_v23 }
 0x521   : > { %6072 = vmatprep.mubr.bf16.mxu1 %v5400_v51  ;;  %6033 = vmatmul.mubr.bf16.vlgmr.msra.gmra.mrb[20].mxu0 %v5397_v22 }
 0x522   : > { %6073 = vmatmul.mubr.bf16.vlgmr.msra.gmra.mrb[20].mxu1 %v5399_v30  ;;  %6202 = vmatpush1.bf16.msra.mxu0 %v7636_v59 }
 0x523   : > { %6203 = vmatprep.subr.bf16.mxu0 %v7641_v11  ;;  %6233 = vmatprep.mubr.bf16.mxu0 %v8122_v39 }
 0x526   : > { %6204 = vmatpush1.bf16.msra.mxu0 %v7639_v61 }
 0x527   : > { %6205 = vmatprep.subr.bf16.mxu0 %v7644_v6 }
 0x52a   : > { %6206 = vmatpush1.bf16.msra.mxu0 %v7642_v62 }
 0x52b   : > { %6207 = vmatprep.subr.bf16.mxu0 %v7647_v41 }
 0x52e   : > { %6208 = vmatpush1.bf16.msra.mxu0 %v7645_v3 }
 0x52f   : > { %6209 = vmatprep.subr.bf16.mxu0 %v7650_v7 }
 0x532   : > { %6210 = vmatpush1.bf16.msra.mxu0 %v7648_v54 }
 0x533   : > { %6211 = vmatprep.subr.bf16.mxu0 %v7653_v60 }
 0x536   : > { %6212 = vmatpush1.bf16.msra.mxu0 %v7651_v27 }
 0x537   : > { %6213 = vmatprep.subr.bf16.mxu0 %v7656_v29 }
 0x538   : > { %v7294_v48 = vpop.f32.mrb[16].mxu0 }
 0x539   : > { %v7316_v52 = vpop.f32.mrb[16].mxu1  ;;  %v7295_v35 = vpop.f32.mrb[17].mxu0 }
 0x53a   : > { %v7296_v53 = vadd.f32 %v7295_v35, %v7294_v48  ;;  %v7317_v55 = vpop.f32.mrb[17].mxu1  ;;  %v7297_v18 = vpop.f32.mrb[18].mxu0  ;;  %6214 = vmatpush1.bf16.msra.mxu0 %v7654_v1 }
 0x53b   : > { %v7318_v8 = vadd.f32 %v7317_v55, %v7316_v52  ;;  %v7319_v43 = vpop.f32.mrb[18].mxu1  ;;  %v7298_v57 = vpop.f32.mrb[19].mxu0  ;;  %6215 = vmatprep.subr.bf16.mxu0 %v7659_v4 }
 0x53c   : > { %v5955_v19 = vadd.f32 %v7296_v53, %v7187_v31  ;;  %v7320_v25 = vpop.f32.mrb[19].mxu1 }
 0x53e   : > { %v5995_v58 = vadd.f32 %v7318_v8, %v5955_v19  ;;  %6216 = vmatpush1.bf16.msra.mxu0 %v7657_v5 }
 0x5f4   : > { %v7338_v9 = vpop.f32.mrb[20].mxu0 }
 0x5f5   : > { %v7360_v10 = vpop.f32.mrb[20].mxu1  ;;  %v7339_v12 = vpop.f32.mrb[21].mxu0 }
 0x5f6   : > { %v7340_v13 = vadd.f32 %v7339_v12, %v7338_v9  ;;  %v7361_v16 = vpop.f32.mrb[21].mxu1  ;;  %v7341_v17 = vpop.f32.mrb[22].mxu0 }
 0x5f7   : > { %v7362_v56 = vadd.f32 %v7361_v16, %v7360_v10  ;;  %v7363_v42 = vpop.f32.mrb[22].mxu1  ;;  %v7342_v20 = vpop.f32.mrb[23].mxu0 }
 0x5f8   : > { %v6035_v21 = vadd.f32 %v7340_v13, %v5995_v58  ;;  %v7364_v14 = vpop.f32.mrb[23].mxu1 }
 0x5fa   : > { %v6075_v32 = vadd.f32 %v7362_v56, %v6035_v21 }
 0x5fc   : > { %v7252_v33 = vmul.f32 -1.442695, %v6075_v32 }
 0x5fe   : > { %7660 = vpow2.f32 %v7252_v33 }
 0x608   : > { %v7661_v34 = vpop.eup %7660 }
 0x609   : > { %v6083_v36 = vadd.f32 1.0, %v7661_v34 }
 0x60b   : > { %7662 = vrcp.f32 %v6083_v36 }
 0x615   : > { %v7663_v37 = vpop.eup %7662 }
 0x616   : > { %vm6088_vm0 = vcmp.gt.f32.partialorder %v7663_v37, %v6087_v28  ;;  %6086 = vst [vmem:[%s619_s14] sm:$0xff] %v7663_v37 }
 0x617   : > { %v6089_v15 = vsel %vm6088_vm0, 1.0, %v8123_v40 }
 0x618   : > { %v6091_v44 = vadd.f32 %v6090_v38, %v6089_v15 }
 0x61a   : > { %v6092_v45 = vpack.c.bf16 %v6091_v44, %v6091_v44 }
 0x61c   : > { %6234 = vmatmul.mubr.bf16.vlgmr.msra.gmra.mrb[24].mxu0 %v6092_v45 }
 0x6ef   : > { %v6235_v49 = vpop.f32.mrb[24].mxu0 }
 0x6f0   : > { %v6236_v50 = vadd.f32 %v6235_v49, %v6114_v0  ;;  %v6237_v46 = vpop.f32.mrb[25].mxu0 }
 0x6f1   : > { %v6238_v23 = vadd.f32 %v6237_v46, %v6118_v2  ;;  %v6239_v22 = vpop.f32.mrb[26].mxu0 }
 0x6f2   : > { %v6240_v51 = vpop.f32.mrb[27].mxu0 }
 0x6f3   : > { %v6242_v30 = vmax.f32 %v6236_v50, %v6238_v23 }
 0x6f5   : > { %6243 = vmax.xlane.f32.xlu0 %v6242_v30 }
 0x782   : > { %v6244_v48 = vpop.xlane.xlu0 %6243 }
 0x783   : > { %v6245_v52 = vsub.f32 %v6236_v50, %v6244_v48  ;;  %v6246_v31 = vsub.f32 %v6238_v23, %v6244_v48 }
 0x785   : > { %v6247_v35 = vmul.f32 1.442695, %v6245_v52  ;;  %v6249_v53 = vmul.f32 1.442695, %v6246_v31 }
 0x787   : > { %7664 = vpow2.f32 %v6247_v35 }
 0x788   : > { %7666 = vpow2.f32 %v6249_v53 }
 0x791   : > { %v7665_v24 = vpop.eup %7664 }
 0x792   : > { %v7667_v26 = vpop.eup %7666 }
 0x793   : > { %v6251_v55 = vadd.f32 %v7667_v26, %v7665_v24 }
 0x795   : > { %6252 = vadd.xlane.f32.xlu0 %v6251_v55 }
 0x796   : > { %7998 = shalt.err (!%p7995_p0)
}
 0x797   : > { %s7999_s1 = scalar_lea.hbm %s8785_s11, 128  ;;  %s8003_s15 = scalar_lea.hbm %s8939_s3, 256 }
 0x798   : > { %p8000_p5 = scmp.ne.s32.totalorder %s8785_s11, %s7999_s1  ;;  %p8004_p8 = scmp.lt.u32.totalorder %s8785_s11, %s8939_s3 }
 0x799   : > { %p8005_p11 = scmp.lt.u32.totalorder %s8003_s15, %s7999_s1  ;;  %p8007_p13 = scmp.lt.u32.totalorder %s7999_s1, %s8785_s11 }
 0x79a   : > { %p8001_p9 = pnand %p8000_p5, %p8940_p2 }
 0x79b   : > { %p8006_p1 = por %p8005_p11, %p8004_p8 }
 0x79c   : > { %p8002_p7 = pneg %p8001_p9 }
 0x79d   : > { %p8008_p3 = por %p8007_p13, %p8006_p1 }
 0x79f   : > { %p8009_p10 = pnand %p8008_p3, %p8002_p7 }
 0x7a1   : > { %8012 = shalt.err (!%p8009_p10)
}
 0x7a2   : > { %7461 = dma.vmem_to_hbm [thread:$0]  (%p8940_p2), %s6295_s21, 128, %s8785_s11, %s6267_s30  }
 0x7a3   : > { %s7277_s13 = sshll.u32 %s8212_s27, 8  ;;  %s612_s14 = scalar_lea.vmem [#allocation20], %s6534_s12 }
 0x7a4   : > { %s6281_s26 = sshll.u32 %s612_s14, 4  ;;  %s8941_s7 = sld [smem:[#allocation43_spill]]  ;;  %s8813_s26 = int_to_ptr.vmem [resolvable:$true] %s6281_s26 }
 0x7a5   : > { %s6262_s21 = scalar_lea.sflag [#allocation4], %s8563_s18  ;;  %s8013_s27 = scalar_lea.vmem %s8813_s26, 256 }
 0x7a6   : > { %p8014_p4 = scmp.ne.s32.totalorder %s8813_s26, %s8013_s27  ;;  %s8125_s12 = smov [#allocation20]  }
 0x7a7   : > { %s8017_s11 = sshll.u32 %s8125_s12, 4  ;;  %s8018_s11 = int_to_ptr.vmem [resolvable:$false] %s8017_s11 }
 0x7a8   : > { %p8015_p6 = pnand %p8014_p4, %p8940_p2  ;;  %s8019_s30 = scalar_lea.vmem %s8018_s11, 512 }
 0x7a9   : > { %p8020_p0 = scmp.lt.s32.totalorder %s8813_s26, %s8018_s11  ;;  %p8021_p5 = scmp.lt.s32.totalorder %s8019_s30, %s8013_s27 }
 0x7aa   : > { %s8811_s20 = scalar_lea.hbm %s8941_s7, %s7277_s13  ;;  %p8016_p12 = pneg %p8015_p6 }
 0x7ab   : > { %p8022_p9 = por %p8021_p5, %p8020_p0 }
 0x7ad   : > { %p8023_p7 = pnand %p8022_p9, %p8016_p12 }
 0x822   : > { %v6253_v18 = vpop.xlane.xlu0 %6252 }
 0x823   : > { %7668 = vlog2.f32 %v6253_v18 }
 0x82d   : > { %v7669_v8 = vpop.eup %7668 }
 0x82e   : > { %v6255_v43 = vmul.f32 0.6931472, %v7669_v8 }
 0x830   : > { %v6256_v57 = vadd.f32 %v6255_v43, %v6244_v48 }
 0x832   : > { %v6257_v19 = vsub.f32 %v6236_v50, %v6256_v57  ;;  %v6258_v25 = vsub.f32 %v6238_v23, %v6256_v57 }
 0x834   : > { %6259 = vst [vmem:[%s612_s14] sm:$0xff] %v6257_v19  ;;  %6260 = vst [vmem:[%s612_s14 + $0x8] sm:$0xff] %v6258_v25 }
 0x835   : > { %8026 = shalt.err (!%p8023_p7)
}
 0x836   : > { %s8027_s18 = scalar_lea.hbm %s8811_s20, 256  ;;  %s8031_s1 = scalar_lea.hbm %s8941_s7, 512 }
 0x837   : > { %p8028_p8 = scmp.ne.s32.totalorder %s8811_s20, %s8027_s18  ;;  %p8032_p13 = scmp.lt.u32.totalorder %s8811_s20, %s8941_s7 }
 0x838   : > { %p8033_p3 = scmp.lt.u32.totalorder %s8031_s1, %s8027_s18  ;;  %p8035_p4 = scmp.lt.u32.totalorder %s8027_s18, %s8811_s20 }
 0x839   : > { %p8029_p11 = pnand %p8028_p8, %p8940_p2 }
 0x83a   : > { %p8034_p10 = por %p8033_p3, %p8032_p13 }
 0x83b   : > { %p8030_p1 = pneg %p8029_p11 }
 0x83c   : > { %p8036_p6 = por %p8035_p4, %p8034_p10 }
 0x83e   : > { %p8037_p12 = pnand %p8036_p6, %p8030_p1 }
 0x840   : > { %8040 = shalt.err (!%p8037_p12)
}
 0x841   : > { %7460 = dma.vmem_to_hbm [thread:$0]  (%p8940_p2), %s8813_s26, 256, %s8811_s20, %s6262_s21  }
 0x842 PF: > { %s8942_s15 = sld [smem:[#allocation31_spill]]  ;;  %s8943_s0 = sld [smem:[#allocation36_spill]] }
 0x843   : > { %p8945_p5 = scmp.ge.s32.totalorder %s8103_s24, 2 }
 0x848   : > { %s6306_s28 = sand.u32 1, %s8942_s15   ;;  %p8944_p0 = scmp.ne.s32.totalorder %s8943_s0, 0 }
 0x849   : > { %s6307_s13 = scalar_lea.sflag [#allocation4], %s6306_s28 }
 0x84a   : > { %p7500_p9 = pnand %p8945_p5, %p8944_p0 }
 0x84c   : > { %8082 = dma.done.wait (!%p7500_p9), %s6307_s13, 256  }
 0x84d   : > { %8084 = vsyncadd (!%p7500_p9), %s6307_s13, 4294967040  ;;  %s6316_s14 = scalar_lea.sflag [#allocation22], %s6306_s28 }
 0x84e   : > { %8086 = dma.done.wait (!%p7500_p9), %s6316_s14, 128  }
 0x84f   : > { %8088 = vsyncadd (!%p7500_p9), %s6316_s14, 4294967168  ;;  %s8946_s24 = sld [smem:[#allocation34_spill]]  ;;  %s8947_s16 = sld [smem:[#allocation32_spill]] }
 0x850   : > { %s8948_s23 = sld [smem:[#allocation35_spill]]  ;;  %s8949_s21 = smov %s8095_s22 }
 0x855   : > { %p36_p2 = scmp.ge.s32.totalorder %s8946_s24, 4   ;;  %s8950_s22 = smov %s8947_s16 }
 0x857   :  { %38 = sbr.rel (!%p36_p2) target bundleno = 22 (0x16), region = 182 }
 0x85e   :  { %6321 = vsyncpa [#allocation3], 1 }
 0x85f   :  { %6323 = vsyncpa [#allocation3 + $0x1], 1 }
 0x860   :  { %6324 = vsyncpa [#allocation6], 1 }
 0x861   :  { %6326 = vsyncpa [#allocation6 + $0x1], 1 }
 0x862   :  { %6327 = vsyncpa [#allocation9], 1 }
 0x863   :  { %6328 = vsyncpa [#allocation12], 1 }
 0x864   :  { %6329 = vsyncpa [#allocation15], 1 }
 0x865   :  { %6330 = vsyncpa [#allocation18], 1 }
 0x866   :  { %6331 = vsyncpa [#allocation4], 1 }
 0x867   :  { %6333 = vsyncpa [#allocation4 + $0x1], 1 }
 0x868   :  { %6334 = vsyncpa [#allocation22], 1 }
 0x869   :  { %6336 = vsyncpa [#allocation22 + $0x1], 1 }

</bundles_post_ra>
